<compile_context>
chip_gen: v7x
topology: tpu7x:2x2x1
jax: 0.10.0
libtpu: 0.0.40
codegen_flags: <defaults>
</compile_context>

<pallas_src>
import math
import jax
import jax.numpy as jnp
from jax import lax
from jax.experimental import pallas as pl
from jax.experimental.pallas import tpu as pltpu

BF16 = jnp.bfloat16
F32 = jnp.float32


def _round_up(x, m):
    return ((x + m - 1) // m) * m


# ----------------------------------------------------------------------------
# Kernel 1: fused GRU over time + sum over the time axis.
#   x_ref   : (T, tn, D) bf16  time-major tile of the (T, N_pad, D) input
#   wih_ref : (D, 3D)   bf16   input weights, columns [r | z | n]
#   bih_ref : (1, 3D)   f32    b_ih with b_hr / b_hz folded in
#   whh_ref : (D, 3D)   bf16   fused recurrent weights, columns [r | z | n]
#   bhn_ref : (1, D)    f32
#   ysum_ref: (tn, D)   bf16   = sum_t h_t
# ----------------------------------------------------------------------------
def gru_sum_kernel(x_ref, wih_ref, bih_ref, whh_ref, bhn_ref, ysum_ref, gi_ref):
    T, tn, D = x_ref.shape

    # Hoisted input projection: one big (T*tn, D) x (D, 3D) matmul.
    x2 = x_ref[...].reshape(T * tn, D)
    gi = jnp.dot(x2, wih_ref[...], preferred_element_type=F32) + bih_ref[...]
    gi_ref[...] = gi.reshape(T, tn, 3 * D).astype(BF16)       # single bf16 scratch store

    bhn = bhn_ref[...]

    def step(t, carry):
        h, ysum = carry
        # One fused lane-dense recurrent dot per step (critical path).
        gh = jnp.dot(h.astype(BF16), whh_ref[...], preferred_element_type=F32)
        g = gi_ref[t].astype(F32)                              # (tn, 3D)
        r = jax.nn.sigmoid(g[:, 0:D] + gh[:, 0:D])
        z = jax.nn.sigmoid(g[:, D:2 * D] + gh[:, D:2 * D])
        n = jnp.tanh(g[:, 2 * D:] + r * (gh[:, 2 * D:] + bhn))
        h_new = (1.0 - z) * n + z * h
        return h_new, ysum + h_new

    h0 = jnp.zeros((tn, D), F32)
    unroll = T if T <= 16 else 4                               # partial unroll for LLO
    _, ysum = lax.fori_loop(0, T, step, (h0, jnp.zeros((tn, D), F32)),
                            unroll=unroll)
    ysum_ref[...] = ysum.astype(ysum_ref.dtype)                # one bf16 store


def _pick_gru_tile(T, N, D):
    # VMEM per tile ~ 6*T*tn*D B (bf16 gi scratch) + 4*T*tn*D B (dbl-buffered bf16 x).
    budget = 20 << 20                                          # of the 32 MiB scoped limit
    tn = budget // max(1, 10 * T * D)
    tn = int(max(8, min(512, (tn // 8) * 8)))
    n_pad = _round_up(N, 8)
    if n_pad <= tn:
        # Whole problem fits in one tile; still try to give v7x megacore 2 programs.
        tn = n_pad // 2 if (n_pad >= 16 and n_pad % 16 == 0) else n_pad
    n_pad = _round_up(n_pad, tn)
    return tn, n_pad


def gru_sum(x_tmajor, gp, tn):
    T, N, D = x_tmajor.shape                                   # N already padded to tn
    wmap = lambda i: (0, 0)
    return pl.pallas_call(
        gru_sum_kernel,
        out_shape=jax.ShapeDtypeStruct((N, D), BF16),
        grid=(N // tn,),
        in_specs=[
            pl.BlockSpec((T, tn, D), lambda i: (0, i, 0)),
            pl.BlockSpec((D, 3 * D), wmap),
            pl.BlockSpec((1, 3 * D), wmap),
            pl.BlockSpec((D, 3 * D), wmap),
            pl.BlockSpec((1, D), wmap),
        ],
        out_specs=pl.BlockSpec((tn, D), lambda i: (i, 0)),
        scratch_shapes=[pltpu.VMEM((T, tn, 3 * D), BF16)],
        compiler_params=pltpu.CompilerParams(
            dimension_semantics=("parallel",),
            vmem_limit_bytes=32 << 20),
    )(x_tmajor, gp['wih_t'], gp['bih'], gp['whh_t'], gp['bhn'])


# ----------------------------------------------------------------------------
# Kernel 2: fused encoder (ISAB x2 = 4 MABs) + tiled decoder linear.
#   grid = (B, NTP // tntp); encoder runs only on the first vocab tile and its
#   result is cached in a VMEM scratch reused by every decoder tile.
# ----------------------------------------------------------------------------
def _make_enc_dec_kernel(D, NH):
    dh = D // NH

    def mab(q, k, wq, bq, wkv, bkv, wo, bo):
        # q: (Nq, D) bf16, k: (Nk, D) bf16.
        # wq: (D, D) bf16 (unscaled; reused for residual AND heads).
        # wkv: (D, 2D) bf16, K-half pre-scaled by 1/sqrt(D); biases f32.
        Q = jnp.dot(q, wq, preferred_element_type=F32) + bq            # (Nq, D)
        KV = jnp.dot(k, wkv, preferred_element_type=F32) + bkv         # (Nk, 2D)
        Qb = Q.astype(BF16)
        Kb = KV[:, :D].astype(BF16)
        Vb = KV[:, D:].astype(BF16)
        heads = []
        for h in range(NH):                                            # per-head score/PV only
            sl = slice(h * dh, (h + 1) * dh)
            s = lax.dot_general(Qb[:, sl], Kb[:, sl], (((1,), (1,)), ((), ())),
                                preferred_element_type=F32)            # (Nq, Nk)
            s = s - jnp.max(s, axis=-1, keepdims=True)
            e = jnp.exp(s)
            a = e * pl.reciprocal(jnp.sum(e, axis=-1, keepdims=True), approx=True)
            heads.append(jnp.dot(a.astype(BF16), Vb[:, sl],
                                 preferred_element_type=F32))          # (Nq, dh)
        O = Q + jnp.concatenate(heads, axis=-1)                        # residual + heads
        ff = jnp.dot(O.astype(BF16), wo, preferred_element_type=F32) + bo
        return (O + jnp.maximum(ff, 0.0)).astype(BF16)                 # ln=False

    def kernel(y_ref, i0_ref, i1_ref,
               wq_s, bq_s, wkv_s, bkv_s, wo_s, bo_s,
               dw_ref, db_ref, out_ref, yenc_ref):
        # Encoder: compute once per batch element (first vocab tile), cache in VMEM.
        @pl.when(pl.program_id(1) == 0)
        def _():
            Y = y_ref[0]                                               # (S, D) bf16
            inducing = (i0_ref[...], i1_ref[...])
            for layer in range(2):                                     # ISAB0, ISAB1
                m0, m1 = 2 * layer, 2 * layer + 1
                Hm = mab(inducing[layer], Y,
                         wq_s[m0], bq_s[m0], wkv_s[m0], bkv_s[m0], wo_s[m0], bo_s[m0])
                Y = mab(Y, Hm,
                        wq_s[m1], bq_s[m1], wkv_s[m1], bkv_s[m1], wo_s[m1], bo_s[m1])
            yenc_ref[...] = Y

        # Decoder linear, lane-dense vocab tile.
        out_ref[0] = (jnp.dot(yenc_ref[...], dw_ref[...],
                              preferred_element_type=F32) + db_ref[...]).astype(out_ref.dtype)

    return kernel


def encoder_decoder(Y, ep, dec_w_t, dec_b, num_heads):
    B, S, D = Y.shape
    num_inds = ep['I0'].shape[0]
    NTP = dec_w_t.shape[1]
    tntp = min(NTP, 2048)
    n_vocab_tiles = NTP // tntp
    kernel = _make_enc_dec_kernel(D, num_heads)

    const2 = lambda b, v: (0, 0)
    const3 = lambda b, v: (0, 0, 0)
    in_specs = [
        pl.BlockSpec((1, S, D), lambda b, v: (b, 0, 0)),
        pl.BlockSpec((num_inds, D), const2),
        pl.BlockSpec((num_inds, D), const2),
        pl.BlockSpec(ep['wq_s'].shape, const3),
        pl.BlockSpec(ep['bq_s'].shape, const3),
        pl.BlockSpec(ep['wkv_s'].shape, const3),
        pl.BlockSpec(ep['bkv_s'].shape, const3),
        pl.BlockSpec(ep['wo_s'].shape, const3),
        pl.BlockSpec(ep['bo_s'].shape, const3),
        pl.BlockSpec((D, tntp), lambda b, v: (0, v)),
        pl.BlockSpec((1, tntp), lambda b, v: (0, v)),
    ]
    # TODO(synk): when B==1 on v7x the second TensorCore idles; an extra S-tile
    # grid axis would restore megacore parallelism for single-batch calls.
    return pl.pallas_call(
        kernel,
        out_shape=jax.ShapeDtypeStruct((B, S, NTP), BF16),
        grid=(B, n_vocab_tiles),
        in_specs=in_specs,
        out_specs=pl.BlockSpec((1, S, tntp), lambda b, v: (b, 0, v)),
        scratch_shapes=[pltpu.VMEM((S, D), BF16)],
        compiler_params=pltpu.CompilerParams(
            dimension_semantics=("parallel", "arbitrary"),
            vmem_limit_bytes=32 << 20),
    )(Y, ep['I0'], ep['I1'],
      ep['wq_s'], ep['bq_s'], ep['wkv_s'], ep['bkv_s'], ep['wo_s'], ep['bo_s'],
      dec_w_t, dec_b)


# ----------------------------------------------------------------------------
# Parameter init (PyTorch-shaped) and packing into kernel layout.
# ----------------------------------------------------------------------------
def init_torch_params(key, ntoken, D, num_inds):
    keys = iter(jax.random.split(key, 64))

    def u(shape, bound):
        return jax.random.uniform(next(keys), shape, F32, -bound, bound)

    kD = 1.0 / math.sqrt(D)
    p = {
        'emb_w': u((ntoken, D), 0.1),              # nn.Embedding, uniform(-0.1, 0.1)
        'gru_wih': u((3 * D, D), kD),              # rows ordered [r | z | n]
        'gru_whh': u((3 * D, D), kD),
        'gru_bih': u((3 * D,), kD),
        'gru_bhh': u((3 * D,), kD),
        'dec_w': u((ntoken, D), kD),
        'dec_b': u((ntoken,), kD),
    }
    xav = math.sqrt(6.0 / (num_inds + D))
    for li in range(2):
        p[f'I{li}'] = u((num_inds, D), xav)        # inducing points
        for mi in range(2):
            pre = f'isab{li}_mab{mi}_'
            for nm in ('q', 'k', 'v', 'o'):
                p[pre + f'fc{nm}_w'] = u((D, D), kD)
                p[pre + f'fc{nm}_b'] = u((D,), kD)
    return p


def pack_params(p, D, num_heads, ntoken):
    scale = 1.0 / math.sqrt(D)
    packed = {'emb': p['emb_w'].astype(BF16)}

    # GRU: fused (D, 3D) weights; b_hr / b_hz folded into the input bias.
    bih, bhh = p['gru_bih'], p['gru_bhh']
    bih_fused = jnp.concatenate([bih[0:D] + bhh[0:D],
                                 bih[D:2 * D] + bhh[D:2 * D],
                                 bih[2 * D:3 * D]]).reshape(1, 3 * D)
    packed['gru'] = {
        'wih_t': p['gru_wih'].T.astype(BF16),                  # (D, 3D)
        'bih': bih_fused.astype(F32),
        'whh_t': p['gru_whh'].T.astype(BF16),                  # (D, 3D), cols [r|z|n]
        'bhn': bhh[2 * D:3 * D].reshape(1, D).astype(F32),
    }

    # Encoder: 2 ISABs x 2 MABs -> stacked tensors (leading dim 4).
    # 1/sqrt(D) attention scale folded into the K weights/bias.
    lists = {k: [] for k in ('wq', 'bq', 'wkv', 'bkv', 'wo', 'bo')}
    for li in range(2):
        for mi in range(2):
            pre = f'isab{li}_mab{mi}_'
            wq_t = p[pre + 'fcq_w'].T
            wk_t = p[pre + 'fck_w'].T
            wv_t = p[pre + 'fcv_w'].T
            wo_t = p[pre + 'fco_w'].T
            bq, bk = p[pre + 'fcq_b'], p[pre + 'fck_b']
            bv, bo = p[pre + 'fcv_b'], p[pre + 'fco_b']
            lists['wq'].append(wq_t)
            lists['bq'].append(bq.reshape(1, D))
            lists['wkv'].append(jnp.concatenate([wk_t * scale, wv_t], axis=-1))
            lists['bkv'].append(jnp.concatenate([bk * scale, bv]).reshape(1, 2 * D))
            lists['wo'].append(wo_t)
            lists['bo'].append(bo.reshape(1, D))

    packed['enc'] = {
        'I0': p['I0'].astype(BF16), 'I1': p['I1'].astype(BF16),
        'wq_s': jnp.stack(lists['wq']).astype(BF16),
        'bq_s': jnp.stack(lists['bq']).astype(F32),
        'wkv_s': jnp.stack(lists['wkv']).astype(BF16),
        'bkv_s': jnp.stack(lists['bkv']).astype(F32),
        'wo_s': jnp.stack(lists['wo']).astype(BF16),
        'bo_s': jnp.stack(lists['bo']).astype(F32),
    }

    # Decoder, padded to a lane-dense vocab; large vocabs padded to the tile width.
    NTP = max(128, _round_up(ntoken, 128))
    if NTP > 2048:
        NTP = _round_up(NTP, 2048)
    dec_w_t = jnp.zeros((D, NTP), F32).at[:, :ntoken].set(p['dec_w'].T)
    dec_b = jnp.zeros((1, NTP), F32).at[:, :ntoken].set(p['dec_b'].reshape(1, -1))
    packed['dec_w_t'] = dec_w_t.astype(BF16)
    packed['dec_b'] = dec_b
    return packed


# ----------------------------------------------------------------------------
# Full forward pass (embedding gather is XLA glue; everything else is Pallas).
# ----------------------------------------------------------------------------
def set_transformer_forward(X, params, num_heads, ntoken):
    B, S, T = X.shape
    D = params['emb'].shape[1]
    N = B * S
    tn, n_pad = _pick_gru_tile(T, N, D)

    tok_t = X.reshape(N, T).T                                  # (T, N) int32 (~free)
    if n_pad != N:
        tok_t = jnp.pad(tok_t, ((0, 0), (0, n_pad - N)))       # pad indices, not acts
    # TODO(synk): embedding gather stays in XLA (no clean Pallas gather here).
    x_t = params['emb'][tok_t]                                 # (T, n_pad, D) bf16, time-major

    ysum = gru_sum(x_t, params['gru'], tn)                     # (n_pad, D) bf16 = sum_t h_t
    Y = ysum[:N].reshape(B, S, D)
    logits_p = encoder_decoder(Y, params['enc'],
                               params['dec_w_t'], params['dec_b'], num_heads)
    return logits_p[..., :ntoken].astype(F32)                  # drop vocab padding, f32 out


if __name__ == "__main__":
    ntoken, D, num_inds, num_heads = 16, 32, 8, 4
    B, S, T = 2, 4, 8
    assert D % num_heads == 0

    key = jax.random.PRNGKey(0)
    kp, kx = jax.random.split(key)
    torch_p = init_torch_params(kp, ntoken, D, num_inds)
    params = pack_params(torch_p, D, num_heads, ntoken)
    X = jax.random.randint(kx, (B, S, T), 0, ntoken, dtype=jnp.int32)

    fwd = jax.jit(set_transformer_forward, static_argnums=(2, 3))
    out = jax.block_until_ready(fwd(X, params, num_heads, ntoken))
    assert out.shape == (B, S, ntoken), out.shape
    assert bool(jnp.all(jnp.isfinite(out)))
    print("KERNEL_OK")
</pallas_src>

<mosaic_0001>
module attributes {stable_mosaic.version = 11 : i64} {
  func.func @kernel(%arg0: i32, %arg1: i32, %arg2: memref<1x4x32xbf16, #tpu.memory_space<vmem>>, %arg3: memref<8x32xbf16, #tpu.memory_space<vmem>>, %arg4: memref<8x32xbf16, #tpu.memory_space<vmem>>, %arg5: memref<4x32x32xbf16, #tpu.memory_space<vmem>>, %arg6: memref<4x1x32xf32, #tpu.memory_space<vmem>>, %arg7: memref<4x32x64xbf16, #tpu.memory_space<vmem>>, %arg8: memref<4x1x64xf32, #tpu.memory_space<vmem>>, %arg9: memref<4x32x32xbf16, #tpu.memory_space<vmem>>, %arg10: memref<4x1x32xf32, #tpu.memory_space<vmem>>, %arg11: memref<32x128xbf16, #tpu.memory_space<vmem>>, %arg12: memref<1x128xf32, #tpu.memory_space<vmem>>, %arg13: memref<1x4x128xbf16, #tpu.memory_space<vmem>>, %arg14: memref<4x32xbf16, #tpu.memory_space<vmem>>) attributes {dimension_semantics = [#tpu.dimension_semantics<parallel>, #tpu.dimension_semantics<arbitrary>], iteration_bounds = array<i64: 2, 1>, scalar_prefetch = 0 : i64, scratch_operands = 1 : i64, tpu.core_type = #tpu.core_type<tc>, window_params = [{transform_indices = @transform_0, window_bounds = array<i64: 1, 4, 32>}, {pipeline_mode = #tpu.pipeline_mode<synchronous>, transform_indices = @transform_1, window_bounds = array<i64: 8, 32>}, {pipeline_mode = #tpu.pipeline_mode<synchronous>, transform_indices = @transform_2, window_bounds = array<i64: 8, 32>}, {pipeline_mode = #tpu.pipeline_mode<synchronous>, transform_indices = @transform_3, window_bounds = array<i64: 4, 32, 32>}, {pipeline_mode = #tpu.pipeline_mode<synchronous>, transform_indices = @transform_4, window_bounds = array<i64: 4, 1, 32>}, {pipeline_mode = #tpu.pipeline_mode<synchronous>, transform_indices = @transform_5, window_bounds = array<i64: 4, 32, 64>}, {pipeline_mode = #tpu.pipeline_mode<synchronous>, transform_indices = @transform_6, window_bounds = array<i64: 4, 1, 64>}, {pipeline_mode = #tpu.pipeline_mode<synchronous>, transform_indices = @transform_7, window_bounds = array<i64: 4, 32, 32>}, {pipeline_mode = #tpu.pipeline_mode<synchronous>, transform_indices = @transform_8, window_bounds = array<i64: 4, 1, 32>}, {transform_indices = @transform_9, window_bounds = array<i64: 32, 128>}, {transform_indices = @transform_10, window_bounds = array<i64: 1, 128>}, {transform_indices = @transform_11, window_bounds = array<i64: 1, 4, 128>}]} {
    %c0_i32 = arith.constant 0 : i32
    %0 = arith.cmpi eq, %arg1, %c0_i32 : i32
    %1 = arith.extui %0 : i1 to i32
    %c0_i32_0 = arith.constant 0 : i32
    %2 = arith.cmpi ne, %1, %c0_i32_0 : i32
    scf.if %2 {
      %c0_9 = arith.constant 0 : index
      %c0_10 = arith.constant 0 : index
      %c0_11 = arith.constant 0 : index
      %13 = vector.load %arg2[%c0_9, %c0_10, %c0_11] : memref<1x4x32xbf16, #tpu.memory_space<vmem>>, vector<1x4x32xbf16>
      %14 = vector.shape_cast %13 : vector<1x4x32xbf16> to vector<4x32xbf16>
      %c0_12 = arith.constant 0 : index
      %c0_13 = arith.constant 0 : index
      %15 = vector.load %arg3[%c0_12, %c0_13] : memref<8x32xbf16, #tpu.memory_space<vmem>>, vector<8x32xbf16>
      %c0_14 = arith.constant 0 : index
      %c0_15 = arith.constant 0 : index
      %16 = vector.load %arg4[%c0_14, %c0_15] : memref<8x32xbf16, #tpu.memory_space<vmem>>, vector<8x32xbf16>
      %c0_16 = arith.constant 0 : index
      %c0_17 = arith.constant 0 : index
      %c0_18 = arith.constant 0 : index
      %17 = vector.load %arg5[%c0_16, %c0_17, %c0_18] : memref<4x32x32xbf16, #tpu.memory_space<vmem>>, vector<1x32x32xbf16>
      %18 = vector.shape_cast %17 : vector<1x32x32xbf16> to vector<32x32xbf16>
      %c0_19 = arith.constant 0 : index
      %c0_20 = arith.constant 0 : index
      %c0_21 = arith.constant 0 : index
      %19 = vector.load %arg6[%c0_19, %c0_20, %c0_21] : memref<4x1x32xf32, #tpu.memory_space<vmem>>, vector<1x1x32xf32>
      %20 = vector.shape_cast %19 : vector<1x1x32xf32> to vector<1x32xf32>
      %c0_22 = arith.constant 0 : index
      %c0_23 = arith.constant 0 : index
      %c0_24 = arith.constant 0 : index
      %21 = vector.load %arg7[%c0_22, %c0_23, %c0_24] : memref<4x32x64xbf16, #tpu.memory_space<vmem>>, vector<1x32x64xbf16>
      %22 = vector.shape_cast %21 : vector<1x32x64xbf16> to vector<32x64xbf16>
      %c0_25 = arith.constant 0 : index
      %c0_26 = arith.constant 0 : index
      %c0_27 = arith.constant 0 : index
      %23 = vector.load %arg8[%c0_25, %c0_26, %c0_27] : memref<4x1x64xf32, #tpu.memory_space<vmem>>, vector<1x1x64xf32>
      %24 = vector.shape_cast %23 : vector<1x1x64xf32> to vector<1x64xf32>
      %c0_28 = arith.constant 0 : index
      %c0_29 = arith.constant 0 : index
      %c0_30 = arith.constant 0 : index
      %25 = vector.load %arg9[%c0_28, %c0_29, %c0_30] : memref<4x32x32xbf16, #tpu.memory_space<vmem>>, vector<1x32x32xbf16>
      %26 = vector.shape_cast %25 : vector<1x32x32xbf16> to vector<32x32xbf16>
      %c0_31 = arith.constant 0 : index
      %c0_32 = arith.constant 0 : index
      %c0_33 = arith.constant 0 : index
      %27 = vector.load %arg10[%c0_31, %c0_32, %c0_33] : memref<4x1x32xf32, #tpu.memory_space<vmem>>, vector<1x1x32xf32>
      %28 = vector.shape_cast %27 : vector<1x1x32xf32> to vector<1x32xf32>
      %cst_34 = arith.constant dense<0.000000e+00> : vector<8x32xf32>
      %29 = tpu.matmul %15, %18, %cst_34 {dimension_numbers = #tpu.dot_dimension_numbers<[1], [0], [0], [1], [0, 0, 1, 1], [], []>} : vector<8x32xbf16>, vector<32x32xbf16>, vector<8x32xf32> -> vector<8x32xf32>
      %30 = vector.broadcast %20 : vector<1x32xf32> to vector<8x32xf32>
      %31 = arith.addf %29, %30 : vector<8x32xf32>
      %cst_35 = arith.constant dense<0.000000e+00> : vector<4x64xf32>
      %32 = tpu.matmul %14, %22, %cst_35 {dimension_numbers = #tpu.dot_dimension_numbers<[1], [0], [0], [1], [0, 0, 1, 1], [], []>} : vector<4x32xbf16>, vector<32x64xbf16>, vector<4x64xf32> -> vector<4x64xf32>
      %33 = vector.broadcast %24 : vector<1x64xf32> to vector<4x64xf32>
      %34 = arith.addf %32, %33 : vector<4x64xf32>
      %35 = arith.truncf %31 : vector<8x32xf32> to vector<8x32xbf16>
      %36 = vector.extract_strided_slice %34 {offsets = [0, 0], sizes = [4, 32], strides = [1, 1]} : vector<4x64xf32> to vector<4x32xf32>
      %37 = arith.truncf %36 : vector<4x32xf32> to vector<4x32xbf16>
      %38 = vector.extract_strided_slice %34 {offsets = [0, 32], sizes = [4, 32], strides = [1, 1]} : vector<4x64xf32> to vector<4x32xf32>
      %39 = arith.truncf %38 : vector<4x32xf32> to vector<4x32xbf16>
      %40 = vector.extract_strided_slice %35 {offsets = [0, 0], sizes = [8, 8], strides = [1, 1]} : vector<8x32xbf16> to vector<8x8xbf16>
      %41 = vector.extract_strided_slice %37 {offsets = [0, 0], sizes = [4, 8], strides = [1, 1]} : vector<4x32xbf16> to vector<4x8xbf16>
      %cst_36 = arith.constant dense<0.000000e+00> : vector<8x4xf32>
      %42 = tpu.matmul %40, %41, %cst_36 {dimension_numbers = #tpu.dot_dimension_numbers<[1], [1], [0], [0], [0, 0, 1, 0], [], []>} : vector<8x8xbf16>, vector<4x8xbf16>, vector<8x4xf32> -> vector<8x4xf32>
      %cst_37 = arith.constant dense<0xFF800000> : vector<8xf32>
      %43 = vector.multi_reduction <maximumf>, %42, %cst_37 [1] : vector<8x4xf32> to vector<8xf32>
      %44 = vector.shape_cast %43 : vector<8xf32> to vector<8x1xf32>
      %45 = vector.broadcast %44 : vector<8x1xf32> to vector<8x4xf32>
      %46 = arith.subf %42, %45 : vector<8x4xf32>
      %47 = math.exp %46 : vector<8x4xf32>
      %cst_38 = arith.constant dense<0.000000e+00> : vector<8xf32>
      %48 = vector.multi_reduction <add>, %47, %cst_38 [1] : vector<8x4xf32> to vector<8xf32>
      %49 = vector.shape_cast %48 : vector<8xf32> to vector<8x1xf32>
      %50 = tpu.reciprocal %49 {approx = true} : vector<8x1xf32> -> vector<8x1xf32>
      %51 = vector.broadcast %50 : vector<8x1xf32> to vector<8x4xf32>
      %52 = arith.mulf %47, %51 : vector<8x4xf32>
      %53 = arith.truncf %52 : vector<8x4xf32> to vector<8x4xbf16>
      %54 = vector.extract_strided_slice %39 {offsets = [0, 0], sizes = [4, 8], strides = [1, 1]} : vector<4x32xbf16> to vector<4x8xbf16>
      %cst_39 = arith.constant dense<0.000000e+00> : vector<8x8xf32>
      %55 = tpu.matmul %53, %54, %cst_39 {dimension_numbers = #tpu.dot_dimension_numbers<[1], [0], [0], [1], [0, 0, 1, 1], [], []>} : vector<8x4xbf16>, vector<4x8xbf16>, vector<8x8xf32> -> vector<8x8xf32>
      %56 = vector.extract_strided_slice %35 {offsets = [0, 8], sizes = [8, 8], strides = [1, 1]} : vector<8x32xbf16> to vector<8x8xbf16>
      %57 = vector.extract_strided_slice %37 {offsets = [0, 8], sizes = [4, 8], strides = [1, 1]} : vector<4x32xbf16> to vector<4x8xbf16>
      %cst_40 = arith.constant dense<0.000000e+00> : vector<8x4xf32>
      %58 = tpu.matmul %56, %57, %cst_40 {dimension_numbers = #tpu.dot_dimension_numbers<[1], [1], [0], [0], [0, 0, 1, 0], [], []>} : vector<8x8xbf16>, vector<4x8xbf16>, vector<8x4xf32> -> vector<8x4xf32>
      %cst_41 = arith.constant dense<0xFF800000> : vector<8xf32>
      %59 = vector.multi_reduction <maximumf>, %58, %cst_41 [1] : vector<8x4xf32> to vector<8xf32>
      %60 = vector.shape_cast %59 : vector<8xf32> to vector<8x1xf32>
      %61 = vector.broadcast %60 : vector<8x1xf32> to vector<8x4xf32>
      %62 = arith.subf %58, %61 : vector<8x4xf32>
      %63 = math.exp %62 : vector<8x4xf32>
      %cst_42 = arith.constant dense<0.000000e+00> : vector<8xf32>
      %64 = vector.multi_reduction <add>, %63, %cst_42 [1] : vector<8x4xf32> to vector<8xf32>
      %65 = vector.shape_cast %64 : vector<8xf32> to vector<8x1xf32>
      %66 = tpu.reciprocal %65 {approx = true} : vector<8x1xf32> -> vector<8x1xf32>
      %67 = vector.broadcast %66 : vector<8x1xf32> to vector<8x4xf32>
      %68 = arith.mulf %63, %67 : vector<8x4xf32>
      %69 = arith.truncf %68 : vector<8x4xf32> to vector<8x4xbf16>
      %70 = vector.extract_strided_slice %39 {offsets = [0, 8], sizes = [4, 8], strides = [1, 1]} : vector<4x32xbf16> to vector<4x8xbf16>
      %cst_43 = arith.constant dense<0.000000e+00> : vector<8x8xf32>
      %71 = tpu.matmul %69, %70, %cst_43 {dimension_numbers = #tpu.dot_dimension_numbers<[1], [0], [0], [1], [0, 0, 1, 1], [], []>} : vector<8x4xbf16>, vector<4x8xbf16>, vector<8x8xf32> -> vector<8x8xf32>
      %72 = vector.extract_strided_slice %35 {offsets = [0, 16], sizes = [8, 8], strides = [1, 1]} : vector<8x32xbf16> to vector<8x8xbf16>
      %73 = vector.extract_strided_slice %37 {offsets = [0, 16], sizes = [4, 8], strides = [1, 1]} : vector<4x32xbf16> to vector<4x8xbf16>
      %cst_44 = arith.constant dense<0.000000e+00> : vector<8x4xf32>
      %74 = tpu.matmul %72, %73, %cst_44 {dimension_numbers = #tpu.dot_dimension_numbers<[1], [1], [0], [0], [0, 0, 1, 0], [], []>} : vector<8x8xbf16>, vector<4x8xbf16>, vector<8x4xf32> -> vector<8x4xf32>
      %cst_45 = arith.constant dense<0xFF800000> : vector<8xf32>
      %75 = vector.multi_reduction <maximumf>, %74, %cst_45 [1] : vector<8x4xf32> to vector<8xf32>
      %76 = vector.shape_cast %75 : vector<8xf32> to vector<8x1xf32>
      %77 = vector.broadcast %76 : vector<8x1xf32> to vector<8x4xf32>
      %78 = arith.subf %74, %77 : vector<8x4xf32>
      %79 = math.exp %78 : vector<8x4xf32>
      %cst_46 = arith.constant dense<0.000000e+00> : vector<8xf32>
      %80 = vector.multi_reduction <add>, %79, %cst_46 [1] : vector<8x4xf32> to vector<8xf32>
      %81 = vector.shape_cast %80 : vector<8xf32> to vector<8x1xf32>
      %82 = tpu.reciprocal %81 {approx = true} : vector<8x1xf32> -> vector<8x1xf32>
      %83 = vector.broadcast %82 : vector<8x1xf32> to vector<8x4xf32>
      %84 = arith.mulf %79, %83 : vector<8x4xf32>
      %85 = arith.truncf %84 : vector<8x4xf32> to vector<8x4xbf16>
      %86 = vector.extract_strided_slice %39 {offsets = [0, 16], sizes = [4, 8], strides = [1, 1]} : vector<4x32xbf16> to vector<4x8xbf16>
      %cst_47 = arith.constant dense<0.000000e+00> : vector<8x8xf32>
      %87 = tpu.matmul %85, %86, %cst_47 {dimension_numbers = #tpu.dot_dimension_numbers<[1], [0], [0], [1], [0, 0, 1, 1], [], []>} : vector<8x4xbf16>, vector<4x8xbf16>, vector<8x8xf32> -> vector<8x8xf32>
      %88 = vector.extract_strided_slice %35 {offsets = [0, 24], sizes = [8, 8], strides = [1, 1]} : vector<8x32xbf16> to vector<8x8xbf16>
      %89 = vector.extract_strided_slice %37 {offsets = [0, 24], sizes = [4, 8], strides = [1, 1]} : vector<4x32xbf16> to vector<4x8xbf16>
      %cst_48 = arith.constant dense<0.000000e+00> : vector<8x4xf32>
      %90 = tpu.matmul %88, %89, %cst_48 {dimension_numbers = #tpu.dot_dimension_numbers<[1], [1], [0], [0], [0, 0, 1, 0], [], []>} : vector<8x8xbf16>, vector<4x8xbf16>, vector<8x4xf32> -> vector<8x4xf32>
      %cst_49 = arith.constant dense<0xFF800000> : vector<8xf32>
      %91 = vector.multi_reduction <maximumf>, %90, %cst_49 [1] : vector<8x4xf32> to vector<8xf32>
      %92 = vector.shape_cast %91 : vector<8xf32> to vector<8x1xf32>
      %93 = vector.broadcast %92 : vector<8x1xf32> to vector<8x4xf32>
      %94 = arith.subf %90, %93 : vector<8x4xf32>
      %95 = math.exp %94 : vector<8x4xf32>
      %cst_50 = arith.constant dense<0.000000e+00> : vector<8xf32>
      %96 = vector.multi_reduction <add>, %95, %cst_50 [1] : vector<8x4xf32> to vector<8xf32>
      %97 = vector.shape_cast %96 : vector<8xf32> to vector<8x1xf32>
      %98 = tpu.reciprocal %97 {approx = true} : vector<8x1xf32> -> vector<8x1xf32>
      %99 = vector.broadcast %98 : vector<8x1xf32> to vector<8x4xf32>
      %100 = arith.mulf %95, %99 : vector<8x4xf32>
      %101 = arith.truncf %100 : vector<8x4xf32> to vector<8x4xbf16>
      %102 = vector.extract_strided_slice %39 {offsets = [0, 24], sizes = [4, 8], strides = [1, 1]} : vector<4x32xbf16> to vector<4x8xbf16>
      %cst_51 = arith.constant dense<0.000000e+00> : vector<8x8xf32>
      %103 = tpu.matmul %101, %102, %cst_51 {dimension_numbers = #tpu.dot_dimension_numbers<[1], [0], [0], [1], [0, 0, 1, 1], [], []>} : vector<8x4xbf16>, vector<4x8xbf16>, vector<8x8xf32> -> vector<8x8xf32>
      %104 = tpu.concatenate %55, %71, %87, %103 in 1 : vector<8x8xf32>, vector<8x8xf32>, vector<8x8xf32>, vector<8x8xf32> -> vector<8x32xf32>
      %105 = arith.addf %31, %104 : vector<8x32xf32>
      %106 = arith.truncf %105 : vector<8x32xf32> to vector<8x32xbf16>
      %cst_52 = arith.constant dense<0.000000e+00> : vector<8x32xf32>
      %107 = tpu.matmul %106, %26, %cst_52 {dimension_numbers = #tpu.dot_dimension_numbers<[1], [0], [0], [1], [0, 0, 1, 1], [], []>} : vector<8x32xbf16>, vector<32x32xbf16>, vector<8x32xf32> -> vector<8x32xf32>
      %108 = vector.broadcast %28 : vector<1x32xf32> to vector<8x32xf32>
      %109 = arith.addf %107, %108 : vector<8x32xf32>
      %cst_53 = arith.constant 0.000000e+00 : f32
      %110 = vector.broadcast %cst_53 : f32 to vector<8x32xf32>
      %111 = arith.maximumf %109, %110 : vector<8x32xf32>
      %112 = arith.addf %105, %111 : vector<8x32xf32>
      %113 = arith.truncf %112 : vector<8x32xf32> to vector<8x32xbf16>
      %c1 = arith.constant 1 : index
      %c0_54 = arith.constant 0 : index
      %c0_55 = arith.constant 0 : index
      %114 = vector.load %arg5[%c1, %c0_54, %c0_55] : memref<4x32x32xbf16, #tpu.memory_space<vmem>>, vector<1x32x32xbf16>
      %115 = vector.shape_cast %114 : vector<1x32x32xbf16> to vector<32x32xbf16>
      %c1_56 = arith.constant 1 : index
      %c0_57 = arith.constant 0 : index
      %c0_58 = arith.constant 0 : index
      %116 = vector.load %arg6[%c1_56, %c0_57, %c0_58] : memref<4x1x32xf32, #tpu.memory_space<vmem>>, vector<1x1x32xf32>
      %117 = vector.shape_cast %116 : vector<1x1x32xf32> to vector<1x32xf32>
      %c1_59 = arith.constant 1 : index
      %c0_60 = arith.constant 0 : index
      %c0_61 = arith.constant 0 : index
      %118 = vector.load %arg7[%c1_59, %c0_60, %c0_61] : memref<4x32x64xbf16, #tpu.memory_space<vmem>>, vector<1x32x64xbf16>
      %119 = vector.shape_cast %118 : vector<1x32x64xbf16> to vector<32x64xbf16>
      %c1_62 = arith.constant 1 : index
      %c0_63 = arith.constant 0 : index
      %c0_64 = arith.constant 0 : index
      %120 = vector.load %arg8[%c1_62, %c0_63, %c0_64] : memref<4x1x64xf32, #tpu.memory_space<vmem>>, vector<1x1x64xf32>
      %121 = vector.shape_cast %120 : vector<1x1x64xf32> to vector<1x64xf32>
      %c1_65 = arith.constant 1 : index
      %c0_66 = arith.constant 0 : index
      %c0_67 = arith.constant 0 : index
      %122 = vector.load %arg9[%c1_65, %c0_66, %c0_67] : memref<4x32x32xbf16, #tpu.memory_space<vmem>>, vector<1x32x32xbf16>
      %123 = vector.shape_cast %122 : vector<1x32x32xbf16> to vector<32x32xbf16>
      %c1_68 = arith.constant 1 : index
      %c0_69 = arith.constant 0 : index
      %c0_70 = arith.constant 0 : index
      %124 = vector.load %arg10[%c1_68, %c0_69, %c0_70] : memref<4x1x32xf32, #tpu.memory_space<vmem>>, vector<1x1x32xf32>
      %125 = vector.shape_cast %124 : vector<1x1x32xf32> to vector<1x32xf32>
      %cst_71 = arith.constant dense<0.000000e+00> : vector<4x32xf32>
      %126 = tpu.matmul %14, %115, %cst_71 {dimension_numbers = #tpu.dot_dimension_numbers<[1], [0], [0], [1], [0, 0, 1, 1], [], []>} : vector<4x32xbf16>, vector<32x32xbf16>, vector<4x32xf32> -> vector<4x32xf32>
      %127 = vector.broadcast %117 : vector<1x32xf32> to vector<4x32xf32>
      %128 = arith.addf %126, %127 : vector<4x32xf32>
      %cst_72 = arith.constant dense<0.000000e+00> : vector<8x64xf32>
      %129 = tpu.matmul %113, %119, %cst_72 {dimension_numbers = #tpu.dot_dimension_numbers<[1], [0], [0], [1], [0, 0, 1, 1], [], []>} : vector<8x32xbf16>, vector<32x64xbf16>, vector<8x64xf32> -> vector<8x64xf32>
      %130 = vector.broadcast %121 : vector<1x64xf32> to vector<8x64xf32>
      %131 = arith.addf %129, %130 : vector<8x64xf32>
      %132 = arith.truncf %128 : vector<4x32xf32> to vector<4x32xbf16>
      %133 = vector.extract_strided_slice %131 {offsets = [0, 0], sizes = [8, 32], strides = [1, 1]} : vector<8x64xf32> to vector<8x32xf32>
      %134 = arith.truncf %133 : vector<8x32xf32> to vector<8x32xbf16>
      %135 = vector.extract_strided_slice %131 {offsets = [0, 32], sizes = [8, 32], strides = [1, 1]} : vector<8x64xf32> to vector<8x32xf32>
      %136 = arith.truncf %135 : vector<8x32xf32> to vector<8x32xbf16>
      %137 = vector.extract_strided_slice %132 {offsets = [0, 0], sizes = [4, 8], strides = [1, 1]} : vector<4x32xbf16> to vector<4x8xbf16>
      %138 = vector.extract_strided_slice %134 {offsets = [0, 0], sizes = [8, 8], strides = [1, 1]} : vector<8x32xbf16> to vector<8x8xbf16>
      %cst_73 = arith.constant dense<0.000000e+00> : vector<4x8xf32>
      %139 = tpu.matmul %137, %138, %cst_73 {dimension_numbers = #tpu.dot_dimension_numbers<[1], [1], [0], [0], [0, 0, 1, 0], [], []>} : vector<4x8xbf16>, vector<8x8xbf16>, vector<4x8xf32> -> vector<4x8xf32>
      %cst_74 = arith.constant dense<0xFF800000> : vector<4xf32>
      %140 = vector.multi_reduction <maximumf>, %139, %cst_74 [1] : vector<4x8xf32> to vector<4xf32>
      %141 = vector.shape_cast %140 : vector<4xf32> to vector<4x1xf32>
      %142 = vector.broadcast %141 : vector<4x1xf32> to vector<4x8xf32>
      %143 = arith.subf %139, %142 : vector<4x8xf32>
      %144 = math.exp %143 : vector<4x8xf32>
      %cst_75 = arith.constant dense<0.000000e+00> : vector<4xf32>
      %145 = vector.multi_reduction <add>, %144, %cst_75 [1] : vector<4x8xf32> to vector<4xf32>
      %146 = vector.shape_cast %145 : vector<4xf32> to vector<4x1xf32>
      %147 = tpu.reciprocal %146 {approx = true} : vector<4x1xf32> -> vector<4x1xf32>
      %148 = vector.broadcast %147 : vector<4x1xf32> to vector<4x8xf32>
      %149 = arith.mulf %144, %148 : vector<4x8xf32>
      %150 = arith.truncf %149 : vector<4x8xf32> to vector<4x8xbf16>
      %151 = vector.extract_strided_slice %136 {offsets = [0, 0], sizes = [8, 8], strides = [1, 1]} : vector<8x32xbf16> to vector<8x8xbf16>
      %cst_76 = arith.constant dense<0.000000e+00> : vector<4x8xf32>
      %152 = tpu.matmul %150, %151, %cst_76 {dimension_numbers = #tpu.dot_dimension_numbers<[1], [0], [0], [1], [0, 0, 1, 1], [], []>} : vector<4x8xbf16>, vector<8x8xbf16>, vector<4x8xf32> -> vector<4x8xf32>
      %153 = vector.extract_strided_slice %132 {offsets = [0, 8], sizes = [4, 8], strides = [1, 1]} : vector<4x32xbf16> to vector<4x8xbf16>
      %154 = vector.extract_strided_slice %134 {offsets = [0, 8], sizes = [8, 8], strides = [1, 1]} : vector<8x32xbf16> to vector<8x8xbf16>
      %cst_77 = arith.constant dense<0.000000e+00> : vector<4x8xf32>
      %155 = tpu.matmul %153, %154, %cst_77 {dimension_numbers = #tpu.dot_dimension_numbers<[1], [1], [0], [0], [0, 0, 1, 0], [], []>} : vector<4x8xbf16>, vector<8x8xbf16>, vector<4x8xf32> -> vector<4x8xf32>
      %cst_78 = arith.constant dense<0xFF800000> : vector<4xf32>
      %156 = vector.multi_reduction <maximumf>, %155, %cst_78 [1] : vector<4x8xf32> to vector<4xf32>
      %157 = vector.shape_cast %156 : vector<4xf32> to vector<4x1xf32>
      %158 = vector.broadcast %157 : vector<4x1xf32> to vector<4x8xf32>
      %159 = arith.subf %155, %158 : vector<4x8xf32>
      %160 = math.exp %159 : vector<4x8xf32>
      %cst_79 = arith.constant dense<0.000000e+00> : vector<4xf32>
      %161 = vector.multi_reduction <add>, %160, %cst_79 [1] : vector<4x8xf32> to vector<4xf32>
      %162 = vector.shape_cast %161 : vector<4xf32> to vector<4x1xf32>
      %163 = tpu.reciprocal %162 {approx = true} : vector<4x1xf32> -> vector<4x1xf32>
      %164 = vector.broadcast %163 : vector<4x1xf32> to vector<4x8xf32>
      %165 = arith.mulf %160, %164 : vector<4x8xf32>
      %166 = arith.truncf %165 : vector<4x8xf32> to vector<4x8xbf16>
      %167 = vector.extract_strided_slice %136 {offsets = [0, 8], sizes = [8, 8], strides = [1, 1]} : vector<8x32xbf16> to vector<8x8xbf16>
      %cst_80 = arith.constant dense<0.000000e+00> : vector<4x8xf32>
      %168 = tpu.matmul %166, %167, %cst_80 {dimension_numbers = #tpu.dot_dimension_numbers<[1], [0], [0], [1], [0, 0, 1, 1], [], []>} : vector<4x8xbf16>, vector<8x8xbf16>, vector<4x8xf32> -> vector<4x8xf32>
      %169 = vector.extract_strided_slice %132 {offsets = [0, 16], sizes = [4, 8], strides = [1, 1]} : vector<4x32xbf16> to vector<4x8xbf16>
      %170 = vector.extract_strided_slice %134 {offsets = [0, 16], sizes = [8, 8], strides = [1, 1]} : vector<8x32xbf16> to vector<8x8xbf16>
      %cst_81 = arith.constant dense<0.000000e+00> : vector<4x8xf32>
      %171 = tpu.matmul %169, %170, %cst_81 {dimension_numbers = #tpu.dot_dimension_numbers<[1], [1], [0], [0], [0, 0, 1, 0], [], []>} : vector<4x8xbf16>, vector<8x8xbf16>, vector<4x8xf32> -> vector<4x8xf32>
      %cst_82 = arith.constant dense<0xFF800000> : vector<4xf32>
      %172 = vector.multi_reduction <maximumf>, %171, %cst_82 [1] : vector<4x8xf32> to vector<4xf32>
      %173 = vector.shape_cast %172 : vector<4xf32> to vector<4x1xf32>
      %174 = vector.broadcast %173 : vector<4x1xf32> to vector<4x8xf32>
      %175 = arith.subf %171, %174 : vector<4x8xf32>
      %176 = math.exp %175 : vector<4x8xf32>
      %cst_83 = arith.constant dense<0.000000e+00> : vector<4xf32>
      %177 = vector.multi_reduction <add>, %176, %cst_83 [1] : vector<4x8xf32> to vector<4xf32>
      %178 = vector.shape_cast %177 : vector<4xf32> to vector<4x1xf32>
      %179 = tpu.reciprocal %178 {approx = true} : vector<4x1xf32> -> vector<4x1xf32>
      %180 = vector.broadcast %179 : vector<4x1xf32> to vector<4x8xf32>
      %181 = arith.mulf %176, %180 : vector<4x8xf32>
      %182 = arith.truncf %181 : vector<4x8xf32> to vector<4x8xbf16>
      %183 = vector.extract_strided_slice %136 {offsets = [0, 16], sizes = [8, 8], strides = [1, 1]} : vector<8x32xbf16> to vector<8x8xbf16>
      %cst_84 = arith.constant dense<0.000000e+00> : vector<4x8xf32>
      %184 = tpu.matmul %182, %183, %cst_84 {dimension_numbers = #tpu.dot_dimension_numbers<[1], [0], [0], [1], [0, 0, 1, 1], [], []>} : vector<4x8xbf16>, vector<8x8xbf16>, vector<4x8xf32> -> vector<4x8xf32>
      %185 = vector.extract_strided_slice %132 {offsets = [0, 24], sizes = [4, 8], strides = [1, 1]} : vector<4x32xbf16> to vector<4x8xbf16>
      %186 = vector.extract_strided_slice %134 {offsets = [0, 24], sizes = [8, 8], strides = [1, 1]} : vector<8x32xbf16> to vector<8x8xbf16>
      %cst_85 = arith.constant dense<0.000000e+00> : vector<4x8xf32>
      %187 = tpu.matmul %185, %186, %cst_85 {dimension_numbers = #tpu.dot_dimension_numbers<[1], [1], [0], [0], [0, 0, 1, 0], [], []>} : vector<4x8xbf16>, vector<8x8xbf16>, vector<4x8xf32> -> vector<4x8xf32>
      %cst_86 = arith.constant dense<0xFF800000> : vector<4xf32>
      %188 = vector.multi_reduction <maximumf>, %187, %cst_86 [1] : vector<4x8xf32> to vector<4xf32>
      %189 = vector.shape_cast %188 : vector<4xf32> to vector<4x1xf32>
      %190 = vector.broadcast %189 : vector<4x1xf32> to vector<4x8xf32>
      %191 = arith.subf %187, %190 : vector<4x8xf32>
      %192 = math.exp %191 : vector<4x8xf32>
      %cst_87 = arith.constant dense<0.000000e+00> : vector<4xf32>
      %193 = vector.multi_reduction <add>, %192, %cst_87 [1] : vector<4x8xf32> to vector<4xf32>
      %194 = vector.shape_cast %193 : vector<4xf32> to vector<4x1xf32>
      %195 = tpu.reciprocal %194 {approx = true} : vector<4x1xf32> -> vector<4x1xf32>
      %196 = vector.broadcast %195 : vector<4x1xf32> to vector<4x8xf32>
      %197 = arith.mulf %192, %196 : vector<4x8xf32>
      %198 = arith.truncf %197 : vector<4x8xf32> to vector<4x8xbf16>
      %199 = vector.extract_strided_slice %136 {offsets = [0, 24], sizes = [8, 8], strides = [1, 1]} : vector<8x32xbf16> to vector<8x8xbf16>
      %cst_88 = arith.constant dense<0.000000e+00> : vector<4x8xf32>
      %200 = tpu.matmul %198, %199, %cst_88 {dimension_numbers = #tpu.dot_dimension_numbers<[1], [0], [0], [1], [0, 0, 1, 1], [], []>} : vector<4x8xbf16>, vector<8x8xbf16>, vector<4x8xf32> -> vector<4x8xf32>
      %201 = tpu.concatenate %152, %168, %184, %200 in 1 : vector<4x8xf32>, vector<4x8xf32>, vector<4x8xf32>, vector<4x8xf32> -> vector<4x32xf32>
      %202 = arith.addf %128, %201 : vector<4x32xf32>
      %203 = arith.truncf %202 : vector<4x32xf32> to vector<4x32xbf16>
      %cst_89 = arith.constant dense<0.000000e+00> : vector<4x32xf32>
      %204 = tpu.matmul %203, %123, %cst_89 {dimension_numbers = #tpu.dot_dimension_numbers<[1], [0], [0], [1], [0, 0, 1, 1], [], []>} : vector<4x32xbf16>, vector<32x32xbf16>, vector<4x32xf32> -> vector<4x32xf32>
      %205 = vector.broadcast %125 : vector<1x32xf32> to vector<4x32xf32>
      %206 = arith.addf %204, %205 : vector<4x32xf32>
      %cst_90 = arith.constant 0.000000e+00 : f32
      %207 = vector.broadcast %cst_90 : f32 to vector<4x32xf32>
      %208 = arith.maximumf %206, %207 : vector<4x32xf32>
      %209 = arith.addf %202, %208 : vector<4x32xf32>
      %210 = arith.truncf %209 : vector<4x32xf32> to vector<4x32xbf16>
      %c2 = arith.constant 2 : index
      %c0_91 = arith.constant 0 : index
      %c0_92 = arith.constant 0 : index
      %211 = vector.load %arg5[%c2, %c0_91, %c0_92] : memref<4x32x32xbf16, #tpu.memory_space<vmem>>, vector<1x32x32xbf16>
      %212 = vector.shape_cast %211 : vector<1x32x32xbf16> to vector<32x32xbf16>
      %c2_93 = arith.constant 2 : index
      %c0_94 = arith.constant 0 : index
      %c0_95 = arith.constant 0 : index
      %213 = vector.load %arg6[%c2_93, %c0_94, %c0_95] : memref<4x1x32xf32, #tpu.memory_space<vmem>>, vector<1x1x32xf32>
      %214 = vector.shape_cast %213 : vector<1x1x32xf32> to vector<1x32xf32>
      %c2_96 = arith.constant 2 : index
      %c0_97 = arith.constant 0 : index
      %c0_98 = arith.constant 0 : index
      %215 = vector.load %arg7[%c2_96, %c0_97, %c0_98] : memref<4x32x64xbf16, #tpu.memory_space<vmem>>, vector<1x32x64xbf16>
      %216 = vector.shape_cast %215 : vector<1x32x64xbf16> to vector<32x64xbf16>
      %c2_99 = arith.constant 2 : index
      %c0_100 = arith.constant 0 : index
      %c0_101 = arith.constant 0 : index
      %217 = vector.load %arg8[%c2_99, %c0_100, %c0_101] : memref<4x1x64xf32, #tpu.memory_space<vmem>>, vector<1x1x64xf32>
      %218 = vector.shape_cast %217 : vector<1x1x64xf32> to vector<1x64xf32>
      %c2_102 = arith.constant 2 : index
      %c0_103 = arith.constant 0 : index
      %c0_104 = arith.constant 0 : index
      %219 = vector.load %arg9[%c2_102, %c0_103, %c0_104] : memref<4x32x32xbf16, #tpu.memory_space<vmem>>, vector<1x32x32xbf16>
      %220 = vector.shape_cast %219 : vector<1x32x32xbf16> to vector<32x32xbf16>
      %c2_105 = arith.constant 2 : index
      %c0_106 = arith.constant 0 : index
      %c0_107 = arith.constant 0 : index
      %221 = vector.load %arg10[%c2_105, %c0_106, %c0_107] : memref<4x1x32xf32, #tpu.memory_space<vmem>>, vector<1x1x32xf32>
      %222 = vector.shape_cast %221 : vector<1x1x32xf32> to vector<1x32xf32>
      %cst_108 = arith.constant dense<0.000000e+00> : vector<8x32xf32>
      %223 = tpu.matmul %16, %212, %cst_108 {dimension_numbers = #tpu.dot_dimension_numbers<[1], [0], [0], [1], [0, 0, 1, 1], [], []>} : vector<8x32xbf16>, vector<32x32xbf16>, vector<8x32xf32> -> vector<8x32xf32>
      %224 = vector.broadcast %214 : vector<1x32xf32> to vector<8x32xf32>
      %225 = arith.addf %223, %224 : vector<8x32xf32>
      %cst_109 = arith.constant dense<0.000000e+00> : vector<4x64xf32>
      %226 = tpu.matmul %210, %216, %cst_109 {dimension_numbers = #tpu.dot_dimension_numbers<[1], [0], [0], [1], [0, 0, 1, 1], [], []>} : vector<4x32xbf16>, vector<32x64xbf16>, vector<4x64xf32> -> vector<4x64xf32>
      %227 = vector.broadcast %218 : vector<1x64xf32> to vector<4x64xf32>
      %228 = arith.addf %226, %227 : vector<4x64xf32>
      %229 = arith.truncf %225 : vector<8x32xf32> to vector<8x32xbf16>
      %230 = vector.extract_strided_slice %228 {offsets = [0, 0], sizes = [4, 32], strides = [1, 1]} : vector<4x64xf32> to vector<4x32xf32>
      %231 = arith.truncf %230 : vector<4x32xf32> to vector<4x32xbf16>
      %232 = vector.extract_strided_slice %228 {offsets = [0, 32], sizes = [4, 32], strides = [1, 1]} : vector<4x64xf32> to vector<4x32xf32>
      %233 = arith.truncf %232 : vector<4x32xf32> to vector<4x32xbf16>
      %234 = vector.extract_strided_slice %229 {offsets = [0, 0], sizes = [8, 8], strides = [1, 1]} : vector<8x32xbf16> to vector<8x8xbf16>
      %235 = vector.extract_strided_slice %231 {offsets = [0, 0], sizes = [4, 8], strides = [1, 1]} : vector<4x32xbf16> to vector<4x8xbf16>
      %cst_110 = arith.constant dense<0.000000e+00> : vector<8x4xf32>
      %236 = tpu.matmul %234, %235, %cst_110 {dimension_numbers = #tpu.dot_dimension_numbers<[1], [1], [0], [0], [0, 0, 1, 0], [], []>} : vector<8x8xbf16>, vector<4x8xbf16>, vector<8x4xf32> -> vector<8x4xf32>
      %cst_111 = arith.constant dense<0xFF800000> : vector<8xf32>
      %237 = vector.multi_reduction <maximumf>, %236, %cst_111 [1] : vector<8x4xf32> to vector<8xf32>
      %238 = vector.shape_cast %237 : vector<8xf32> to vector<8x1xf32>
      %239 = vector.broadcast %238 : vector<8x1xf32> to vector<8x4xf32>
      %240 = arith.subf %236, %239 : vector<8x4xf32>
      %241 = math.exp %240 : vector<8x4xf32>
      %cst_112 = arith.constant dense<0.000000e+00> : vector<8xf32>
      %242 = vector.multi_reduction <add>, %241, %cst_112 [1] : vector<8x4xf32> to vector<8xf32>
      %243 = vector.shape_cast %242 : vector<8xf32> to vector<8x1xf32>
      %244 = tpu.reciprocal %243 {approx = true} : vector<8x1xf32> -> vector<8x1xf32>
      %245 = vector.broadcast %244 : vector<8x1xf32> to vector<8x4xf32>
      %246 = arith.mulf %241, %245 : vector<8x4xf32>
      %247 = arith.truncf %246 : vector<8x4xf32> to vector<8x4xbf16>
      %248 = vector.extract_strided_slice %233 {offsets = [0, 0], sizes = [4, 8], strides = [1, 1]} : vector<4x32xbf16> to vector<4x8xbf16>
      %cst_113 = arith.constant dense<0.000000e+00> : vector<8x8xf32>
      %249 = tpu.matmul %247, %248, %cst_113 {dimension_numbers = #tpu.dot_dimension_numbers<[1], [0], [0], [1], [0, 0, 1, 1], [], []>} : vector<8x4xbf16>, vector<4x8xbf16>, vector<8x8xf32> -> vector<8x8xf32>
      %250 = vector.extract_strided_slice %229 {offsets = [0, 8], sizes = [8, 8], strides = [1, 1]} : vector<8x32xbf16> to vector<8x8xbf16>
      %251 = vector.extract_strided_slice %231 {offsets = [0, 8], sizes = [4, 8], strides = [1, 1]} : vector<4x32xbf16> to vector<4x8xbf16>
      %cst_114 = arith.constant dense<0.000000e+00> : vector<8x4xf32>
      %252 = tpu.matmul %250, %251, %cst_114 {dimension_numbers = #tpu.dot_dimension_numbers<[1], [1], [0], [0], [0, 0, 1, 0], [], []>} : vector<8x8xbf16>, vector<4x8xbf16>, vector<8x4xf32> -> vector<8x4xf32>
      %cst_115 = arith.constant dense<0xFF800000> : vector<8xf32>
      %253 = vector.multi_reduction <maximumf>, %252, %cst_115 [1] : vector<8x4xf32> to vector<8xf32>
      %254 = vector.shape_cast %253 : vector<8xf32> to vector<8x1xf32>
      %255 = vector.broadcast %254 : vector<8x1xf32> to vector<8x4xf32>
      %256 = arith.subf %252, %255 : vector<8x4xf32>
      %257 = math.exp %256 : vector<8x4xf32>
      %cst_116 = arith.constant dense<0.000000e+00> : vector<8xf32>
      %258 = vector.multi_reduction <add>, %257, %cst_116 [1] : vector<8x4xf32> to vector<8xf32>
      %259 = vector.shape_cast %258 : vector<8xf32> to vector<8x1xf32>
      %260 = tpu.reciprocal %259 {approx = true} : vector<8x1xf32> -> vector<8x1xf32>
      %261 = vector.broadcast %260 : vector<8x1xf32> to vector<8x4xf32>
      %262 = arith.mulf %257, %261 : vector<8x4xf32>
      %263 = arith.truncf %262 : vector<8x4xf32> to vector<8x4xbf16>
      %264 = vector.extract_strided_slice %233 {offsets = [0, 8], sizes = [4, 8], strides = [1, 1]} : vector<4x32xbf16> to vector<4x8xbf16>
      %cst_117 = arith.constant dense<0.000000e+00> : vector<8x8xf32>
      %265 = tpu.matmul %263, %264, %cst_117 {dimension_numbers = #tpu.dot_dimension_numbers<[1], [0], [0], [1], [0, 0, 1, 1], [], []>} : vector<8x4xbf16>, vector<4x8xbf16>, vector<8x8xf32> -> vector<8x8xf32>
      %266 = vector.extract_strided_slice %229 {offsets = [0, 16], sizes = [8, 8], strides = [1, 1]} : vector<8x32xbf16> to vector<8x8xbf16>
      %267 = vector.extract_strided_slice %231 {offsets = [0, 16], sizes = [4, 8], strides = [1, 1]} : vector<4x32xbf16> to vector<4x8xbf16>
      %cst_118 = arith.constant dense<0.000000e+00> : vector<8x4xf32>
      %268 = tpu.matmul %266, %267, %cst_118 {dimension_numbers = #tpu.dot_dimension_numbers<[1], [1], [0], [0], [0, 0, 1, 0], [], []>} : vector<8x8xbf16>, vector<4x8xbf16>, vector<8x4xf32> -> vector<8x4xf32>
      %cst_119 = arith.constant dense<0xFF800000> : vector<8xf32>
      %269 = vector.multi_reduction <maximumf>, %268, %cst_119 [1] : vector<8x4xf32> to vector<8xf32>
      %270 = vector.shape_cast %269 : vector<8xf32> to vector<8x1xf32>
      %271 = vector.broadcast %270 : vector<8x1xf32> to vector<8x4xf32>
      %272 = arith.subf %268, %271 : vector<8x4xf32>
      %273 = math.exp %272 : vector<8x4xf32>
      %cst_120 = arith.constant dense<0.000000e+00> : vector<8xf32>
      %274 = vector.multi_reduction <add>, %273, %cst_120 [1] : vector<8x4xf32> to vector<8xf32>
      %275 = vector.shape_cast %274 : vector<8xf32> to vector<8x1xf32>
      %276 = tpu.reciprocal %275 {approx = true} : vector<8x1xf32> -> vector<8x1xf32>
      %277 = vector.broadcast %276 : vector<8x1xf32> to vector<8x4xf32>
      %278 = arith.mulf %273, %277 : vector<8x4xf32>
      %279 = arith.truncf %278 : vector<8x4xf32> to vector<8x4xbf16>
      %280 = vector.extract_strided_slice %233 {offsets = [0, 16], sizes = [4, 8], strides = [1, 1]} : vector<4x32xbf16> to vector<4x8xbf16>
      %cst_121 = arith.constant dense<0.000000e+00> : vector<8x8xf32>
      %281 = tpu.matmul %279, %280, %cst_121 {dimension_numbers = #tpu.dot_dimension_numbers<[1], [0], [0], [1], [0, 0, 1, 1], [], []>} : vector<8x4xbf16>, vector<4x8xbf16>, vector<8x8xf32> -> vector<8x8xf32>
      %282 = vector.extract_strided_slice %229 {offsets = [0, 24], sizes = [8, 8], strides = [1, 1]} : vector<8x32xbf16> to vector<8x8xbf16>
      %283 = vector.extract_strided_slice %231 {offsets = [0, 24], sizes = [4, 8], strides = [1, 1]} : vector<4x32xbf16> to vector<4x8xbf16>
      %cst_122 = arith.constant dense<0.000000e+00> : vector<8x4xf32>
      %284 = tpu.matmul %282, %283, %cst_122 {dimension_numbers = #tpu.dot_dimension_numbers<[1], [1], [0], [0], [0, 0, 1, 0], [], []>} : vector<8x8xbf16>, vector<4x8xbf16>, vector<8x4xf32> -> vector<8x4xf32>
      %cst_123 = arith.constant dense<0xFF800000> : vector<8xf32>
      %285 = vector.multi_reduction <maximumf>, %284, %cst_123 [1] : vector<8x4xf32> to vector<8xf32>
      %286 = vector.shape_cast %285 : vector<8xf32> to vector<8x1xf32>
      %287 = vector.broadcast %286 : vector<8x1xf32> to vector<8x4xf32>
      %288 = arith.subf %284, %287 : vector<8x4xf32>
      %289 = math.exp %288 : vector<8x4xf32>
      %cst_124 = arith.constant dense<0.000000e+00> : vector<8xf32>
      %290 = vector.multi_reduction <add>, %289, %cst_124 [1] : vector<8x4xf32> to vector<8xf32>
      %291 = vector.shape_cast %290 : vector<8xf32> to vector<8x1xf32>
      %292 = tpu.reciprocal %291 {approx = true} : vector<8x1xf32> -> vector<8x1xf32>
      %293 = vector.broadcast %292 : vector<8x1xf32> to vector<8x4xf32>
      %294 = arith.mulf %289, %293 : vector<8x4xf32>
      %295 = arith.truncf %294 : vector<8x4xf32> to vector<8x4xbf16>
      %296 = vector.extract_strided_slice %233 {offsets = [0, 24], sizes = [4, 8], strides = [1, 1]} : vector<4x32xbf16> to vector<4x8xbf16>
      %cst_125 = arith.constant dense<0.000000e+00> : vector<8x8xf32>
      %297 = tpu.matmul %295, %296, %cst_125 {dimension_numbers = #tpu.dot_dimension_numbers<[1], [0], [0], [1], [0, 0, 1, 1], [], []>} : vector<8x4xbf16>, vector<4x8xbf16>, vector<8x8xf32> -> vector<8x8xf32>
      %298 = tpu.concatenate %249, %265, %281, %297 in 1 : vector<8x8xf32>, vector<8x8xf32>, vector<8x8xf32>, vector<8x8xf32> -> vector<8x32xf32>
      %299 = arith.addf %225, %298 : vector<8x32xf32>
      %300 = arith.truncf %299 : vector<8x32xf32> to vector<8x32xbf16>
      %cst_126 = arith.constant dense<0.000000e+00> : vector<8x32xf32>
      %301 = tpu.matmul %300, %220, %cst_126 {dimension_numbers = #tpu.dot_dimension_numbers<[1], [0], [0], [1], [0, 0, 1, 1], [], []>} : vector<8x32xbf16>, vector<32x32xbf16>, vector<8x32xf32> -> vector<8x32xf32>
      %302 = vector.broadcast %222 : vector<1x32xf32> to vector<8x32xf32>
      %303 = arith.addf %301, %302 : vector<8x32xf32>
      %cst_127 = arith.constant 0.000000e+00 : f32
      %304 = vector.broadcast %cst_127 : f32 to vector<8x32xf32>
      %305 = arith.maximumf %303, %304 : vector<8x32xf32>
      %306 = arith.addf %299, %305 : vector<8x32xf32>
      %307 = arith.truncf %306 : vector<8x32xf32> to vector<8x32xbf16>
      %c3 = arith.constant 3 : index
      %c0_128 = arith.constant 0 : index
      %c0_129 = arith.constant 0 : index
      %308 = vector.load %arg5[%c3, %c0_128, %c0_129] : memref<4x32x32xbf16, #tpu.memory_space<vmem>>, vector<1x32x32xbf16>
      %309 = vector.shape_cast %308 : vector<1x32x32xbf16> to vector<32x32xbf16>
      %c3_130 = arith.constant 3 : index
      %c0_131 = arith.constant 0 : index
      %c0_132 = arith.constant 0 : index
      %310 = vector.load %arg6[%c3_130, %c0_131, %c0_132] : memref<4x1x32xf32, #tpu.memory_space<vmem>>, vector<1x1x32xf32>
      %311 = vector.shape_cast %310 : vector<1x1x32xf32> to vector<1x32xf32>
      %c3_133 = arith.constant 3 : index
      %c0_134 = arith.constant 0 : index
      %c0_135 = arith.constant 0 : index
      %312 = vector.load %arg7[%c3_133, %c0_134, %c0_135] : memref<4x32x64xbf16, #tpu.memory_space<vmem>>, vector<1x32x64xbf16>
      %313 = vector.shape_cast %312 : vector<1x32x64xbf16> to vector<32x64xbf16>
      %c3_136 = arith.constant 3 : index
      %c0_137 = arith.constant 0 : index
      %c0_138 = arith.constant 0 : index
      %314 = vector.load %arg8[%c3_136, %c0_137, %c0_138] : memref<4x1x64xf32, #tpu.memory_space<vmem>>, vector<1x1x64xf32>
      %315 = vector.shape_cast %314 : vector<1x1x64xf32> to vector<1x64xf32>
      %c3_139 = arith.constant 3 : index
      %c0_140 = arith.constant 0 : index
      %c0_141 = arith.constant 0 : index
      %316 = vector.load %arg9[%c3_139, %c0_140, %c0_141] : memref<4x32x32xbf16, #tpu.memory_space<vmem>>, vector<1x32x32xbf16>
      %317 = vector.shape_cast %316 : vector<1x32x32xbf16> to vector<32x32xbf16>
      %c3_142 = arith.constant 3 : index
      %c0_143 = arith.constant 0 : index
      %c0_144 = arith.constant 0 : index
      %318 = vector.load %arg10[%c3_142, %c0_143, %c0_144] : memref<4x1x32xf32, #tpu.memory_space<vmem>>, vector<1x1x32xf32>
      %319 = vector.shape_cast %318 : vector<1x1x32xf32> to vector<1x32xf32>
      %cst_145 = arith.constant dense<0.000000e+00> : vector<4x32xf32>
      %320 = tpu.matmul %210, %309, %cst_145 {dimension_numbers = #tpu.dot_dimension_numbers<[1], [0], [0], [1], [0, 0, 1, 1], [], []>} : vector<4x32xbf16>, vector<32x32xbf16>, vector<4x32xf32> -> vector<4x32xf32>
      %321 = vector.broadcast %311 : vector<1x32xf32> to vector<4x32xf32>
      %322 = arith.addf %320, %321 : vector<4x32xf32>
      %cst_146 = arith.constant dense<0.000000e+00> : vector<8x64xf32>
      %323 = tpu.matmul %307, %313, %cst_146 {dimension_numbers = #tpu.dot_dimension_numbers<[1], [0], [0], [1], [0, 0, 1, 1], [], []>} : vector<8x32xbf16>, vector<32x64xbf16>, vector<8x64xf32> -> vector<8x64xf32>
      %324 = vector.broadcast %315 : vector<1x64xf32> to vector<8x64xf32>
      %325 = arith.addf %323, %324 : vector<8x64xf32>
      %326 = arith.truncf %322 : vector<4x32xf32> to vector<4x32xbf16>
      %327 = vector.extract_strided_slice %325 {offsets = [0, 0], sizes = [8, 32], strides = [1, 1]} : vector<8x64xf32> to vector<8x32xf32>
      %328 = arith.truncf %327 : vector<8x32xf32> to vector<8x32xbf16>
      %329 = vector.extract_strided_slice %325 {offsets = [0, 32], sizes = [8, 32], strides = [1, 1]} : vector<8x64xf32> to vector<8x32xf32>
      %330 = arith.truncf %329 : vector<8x32xf32> to vector<8x32xbf16>
      %331 = vector.extract_strided_slice %326 {offsets = [0, 0], sizes = [4, 8], strides = [1, 1]} : vector<4x32xbf16> to vector<4x8xbf16>
      %332 = vector.extract_strided_slice %328 {offsets = [0, 0], sizes = [8, 8], strides = [1, 1]} : vector<8x32xbf16> to vector<8x8xbf16>
      %cst_147 = arith.constant dense<0.000000e+00> : vector<4x8xf32>
      %333 = tpu.matmul %331, %332, %cst_147 {dimension_numbers = #tpu.dot_dimension_numbers<[1], [1], [0], [0], [0, 0, 1, 0], [], []>} : vector<4x8xbf16>, vector<8x8xbf16>, vector<4x8xf32> -> vector<4x8xf32>
      %cst_148 = arith.constant dense<0xFF800000> : vector<4xf32>
      %334 = vector.multi_reduction <maximumf>, %333, %cst_148 [1] : vector<4x8xf32> to vector<4xf32>
      %335 = vector.shape_cast %334 : vector<4xf32> to vector<4x1xf32>
      %336 = vector.broadcast %335 : vector<4x1xf32> to vector<4x8xf32>
      %337 = arith.subf %333, %336 : vector<4x8xf32>
      %338 = math.exp %337 : vector<4x8xf32>
      %cst_149 = arith.constant dense<0.000000e+00> : vector<4xf32>
      %339 = vector.multi_reduction <add>, %338, %cst_149 [1] : vector<4x8xf32> to vector<4xf32>
      %340 = vector.shape_cast %339 : vector<4xf32> to vector<4x1xf32>
      %341 = tpu.reciprocal %340 {approx = true} : vector<4x1xf32> -> vector<4x1xf32>
      %342 = vector.broadcast %341 : vector<4x1xf32> to vector<4x8xf32>
      %343 = arith.mulf %338, %342 : vector<4x8xf32>
      %344 = arith.truncf %343 : vector<4x8xf32> to vector<4x8xbf16>
      %345 = vector.extract_strided_slice %330 {offsets = [0, 0], sizes = [8, 8], strides = [1, 1]} : vector<8x32xbf16> to vector<8x8xbf16>
      %cst_150 = arith.constant dense<0.000000e+00> : vector<4x8xf32>
      %346 = tpu.matmul %344, %345, %cst_150 {dimension_numbers = #tpu.dot_dimension_numbers<[1], [0], [0], [1], [0, 0, 1, 1], [], []>} : vector<4x8xbf16>, vector<8x8xbf16>, vector<4x8xf32> -> vector<4x8xf32>
      %347 = vector.extract_strided_slice %326 {offsets = [0, 8], sizes = [4, 8], strides = [1, 1]} : vector<4x32xbf16> to vector<4x8xbf16>
      %348 = vector.extract_strided_slice %328 {offsets = [0, 8], sizes = [8, 8], strides = [1, 1]} : vector<8x32xbf16> to vector<8x8xbf16>
      %cst_151 = arith.constant dense<0.000000e+00> : vector<4x8xf32>
      %349 = tpu.matmul %347, %348, %cst_151 {dimension_numbers = #tpu.dot_dimension_numbers<[1], [1], [0], [0], [0, 0, 1, 0], [], []>} : vector<4x8xbf16>, vector<8x8xbf16>, vector<4x8xf32> -> vector<4x8xf32>
      %cst_152 = arith.constant dense<0xFF800000> : vector<4xf32>
      %350 = vector.multi_reduction <maximumf>, %349, %cst_152 [1] : vector<4x8xf32> to vector<4xf32>
      %351 = vector.shape_cast %350 : vector<4xf32> to vector<4x1xf32>
      %352 = vector.broadcast %351 : vector<4x1xf32> to vector<4x8xf32>
      %353 = arith.subf %349, %352 : vector<4x8xf32>
      %354 = math.exp %353 : vector<4x8xf32>
      %cst_153 = arith.constant dense<0.000000e+00> : vector<4xf32>
      %355 = vector.multi_reduction <add>, %354, %cst_153 [1] : vector<4x8xf32> to vector<4xf32>
      %356 = vector.shape_cast %355 : vector<4xf32> to vector<4x1xf32>
      %357 = tpu.reciprocal %356 {approx = true} : vector<4x1xf32> -> vector<4x1xf32>
      %358 = vector.broadcast %357 : vector<4x1xf32> to vector<4x8xf32>
      %359 = arith.mulf %354, %358 : vector<4x8xf32>
      %360 = arith.truncf %359 : vector<4x8xf32> to vector<4x8xbf16>
      %361 = vector.extract_strided_slice %330 {offsets = [0, 8], sizes = [8, 8], strides = [1, 1]} : vector<8x32xbf16> to vector<8x8xbf16>
      %cst_154 = arith.constant dense<0.000000e+00> : vector<4x8xf32>
      %362 = tpu.matmul %360, %361, %cst_154 {dimension_numbers = #tpu.dot_dimension_numbers<[1], [0], [0], [1], [0, 0, 1, 1], [], []>} : vector<4x8xbf16>, vector<8x8xbf16>, vector<4x8xf32> -> vector<4x8xf32>
      %363 = vector.extract_strided_slice %326 {offsets = [0, 16], sizes = [4, 8], strides = [1, 1]} : vector<4x32xbf16> to vector<4x8xbf16>
      %364 = vector.extract_strided_slice %328 {offsets = [0, 16], sizes = [8, 8], strides = [1, 1]} : vector<8x32xbf16> to vector<8x8xbf16>
      %cst_155 = arith.constant dense<0.000000e+00> : vector<4x8xf32>
      %365 = tpu.matmul %363, %364, %cst_155 {dimension_numbers = #tpu.dot_dimension_numbers<[1], [1], [0], [0], [0, 0, 1, 0], [], []>} : vector<4x8xbf16>, vector<8x8xbf16>, vector<4x8xf32> -> vector<4x8xf32>
      %cst_156 = arith.constant dense<0xFF800000> : vector<4xf32>
      %366 = vector.multi_reduction <maximumf>, %365, %cst_156 [1] : vector<4x8xf32> to vector<4xf32>
      %367 = vector.shape_cast %366 : vector<4xf32> to vector<4x1xf32>
      %368 = vector.broadcast %367 : vector<4x1xf32> to vector<4x8xf32>
      %369 = arith.subf %365, %368 : vector<4x8xf32>
      %370 = math.exp %369 : vector<4x8xf32>
      %cst_157 = arith.constant dense<0.000000e+00> : vector<4xf32>
      %371 = vector.multi_reduction <add>, %370, %cst_157 [1] : vector<4x8xf32> to vector<4xf32>
      %372 = vector.shape_cast %371 : vector<4xf32> to vector<4x1xf32>
      %373 = tpu.reciprocal %372 {approx = true} : vector<4x1xf32> -> vector<4x1xf32>
      %374 = vector.broadcast %373 : vector<4x1xf32> to vector<4x8xf32>
      %375 = arith.mulf %370, %374 : vector<4x8xf32>
      %376 = arith.truncf %375 : vector<4x8xf32> to vector<4x8xbf16>
      %377 = vector.extract_strided_slice %330 {offsets = [0, 16], sizes = [8, 8], strides = [1, 1]} : vector<8x32xbf16> to vector<8x8xbf16>
      %cst_158 = arith.constant dense<0.000000e+00> : vector<4x8xf32>
      %378 = tpu.matmul %376, %377, %cst_158 {dimension_numbers = #tpu.dot_dimension_numbers<[1], [0], [0], [1], [0, 0, 1, 1], [], []>} : vector<4x8xbf16>, vector<8x8xbf16>, vector<4x8xf32> -> vector<4x8xf32>
      %379 = vector.extract_strided_slice %326 {offsets = [0, 24], sizes = [4, 8], strides = [1, 1]} : vector<4x32xbf16> to vector<4x8xbf16>
      %380 = vector.extract_strided_slice %328 {offsets = [0, 24], sizes = [8, 8], strides = [1, 1]} : vector<8x32xbf16> to vector<8x8xbf16>
      %cst_159 = arith.constant dense<0.000000e+00> : vector<4x8xf32>
      %381 = tpu.matmul %379, %380, %cst_159 {dimension_numbers = #tpu.dot_dimension_numbers<[1], [1], [0], [0], [0, 0, 1, 0], [], []>} : vector<4x8xbf16>, vector<8x8xbf16>, vector<4x8xf32> -> vector<4x8xf32>
      %cst_160 = arith.constant dense<0xFF800000> : vector<4xf32>
      %382 = vector.multi_reduction <maximumf>, %381, %cst_160 [1] : vector<4x8xf32> to vector<4xf32>
      %383 = vector.shape_cast %382 : vector<4xf32> to vector<4x1xf32>
      %384 = vector.broadcast %383 : vector<4x1xf32> to vector<4x8xf32>
      %385 = arith.subf %381, %384 : vector<4x8xf32>
      %386 = math.exp %385 : vector<4x8xf32>
      %cst_161 = arith.constant dense<0.000000e+00> : vector<4xf32>
      %387 = vector.multi_reduction <add>, %386, %cst_161 [1] : vector<4x8xf32> to vector<4xf32>
      %388 = vector.shape_cast %387 : vector<4xf32> to vector<4x1xf32>
      %389 = tpu.reciprocal %388 {approx = true} : vector<4x1xf32> -> vector<4x1xf32>
      %390 = vector.broadcast %389 : vector<4x1xf32> to vector<4x8xf32>
      %391 = arith.mulf %386, %390 : vector<4x8xf32>
      %392 = arith.truncf %391 : vector<4x8xf32> to vector<4x8xbf16>
      %393 = vector.extract_strided_slice %330 {offsets = [0, 24], sizes = [8, 8], strides = [1, 1]} : vector<8x32xbf16> to vector<8x8xbf16>
      %cst_162 = arith.constant dense<0.000000e+00> : vector<4x8xf32>
      %394 = tpu.matmul %392, %393, %cst_162 {dimension_numbers = #tpu.dot_dimension_numbers<[1], [0], [0], [1], [0, 0, 1, 1], [], []>} : vector<4x8xbf16>, vector<8x8xbf16>, vector<4x8xf32> -> vector<4x8xf32>
      %395 = tpu.concatenate %346, %362, %378, %394 in 1 : vector<4x8xf32>, vector<4x8xf32>, vector<4x8xf32>, vector<4x8xf32> -> vector<4x32xf32>
      %396 = arith.addf %322, %395 : vector<4x32xf32>
      %397 = arith.truncf %396 : vector<4x32xf32> to vector<4x32xbf16>
      %cst_163 = arith.constant dense<0.000000e+00> : vector<4x32xf32>
      %398 = tpu.matmul %397, %317, %cst_163 {dimension_numbers = #tpu.dot_dimension_numbers<[1], [0], [0], [1], [0, 0, 1, 1], [], []>} : vector<4x32xbf16>, vector<32x32xbf16>, vector<4x32xf32> -> vector<4x32xf32>
      %399 = vector.broadcast %319 : vector<1x32xf32> to vector<4x32xf32>
      %400 = arith.addf %398, %399 : vector<4x32xf32>
      %cst_164 = arith.constant 0.000000e+00 : f32
      %401 = vector.broadcast %cst_164 : f32 to vector<4x32xf32>
      %402 = arith.maximumf %400, %401 : vector<4x32xf32>
      %403 = arith.addf %396, %402 : vector<4x32xf32>
      %404 = arith.truncf %403 : vector<4x32xf32> to vector<4x32xbf16>
      %c0_165 = arith.constant 0 : index
      %c0_166 = arith.constant 0 : index
      %405 = vector.load %arg14[%c0_165, %c0_166] : memref<4x32xbf16, #tpu.memory_space<vmem>>, vector<4x32xbf16>
      tpu.vector_store %arg14[%c0_165, %c0_166], %404 {strides = array<i32>} : memref<4x32xbf16, #tpu.memory_space<vmem>>, vector<4x32xbf16>,
    } else {
    }
    %c0 = arith.constant 0 : index
    %c0_1 = arith.constant 0 : index
    %3 = vector.load %arg14[%c0, %c0_1] : memref<4x32xbf16, #tpu.memory_space<vmem>>, vector<4x32xbf16>
    %c0_2 = arith.constant 0 : index
    %c0_3 = arith.constant 0 : index
    %4 = vector.load %arg11[%c0_2, %c0_3] : memref<32x128xbf16, #tpu.memory_space<vmem>>, vector<32x128xbf16>
    %cst = arith.constant dense<0.000000e+00> : vector<4x128xf32>
    %5 = tpu.matmul %3, %4, %cst {dimension_numbers = #tpu.dot_dimension_numbers<[1], [0], [0], [1], [0, 0, 1, 1], [], []>} : vector<4x32xbf16>, vector<32x128xbf16>, vector<4x128xf32> -> vector<4x128xf32>
    %c0_4 = arith.constant 0 : index
    %c0_5 = arith.constant 0 : index
    %6 = vector.load %arg12[%c0_4, %c0_5] : memref<1x128xf32, #tpu.memory_space<vmem>>, vector<1x128xf32>
    %7 = vector.broadcast %6 : vector<1x128xf32> to vector<4x128xf32>
    %8 = arith.addf %5, %7 : vector<4x128xf32>
    %9 = arith.truncf %8 : vector<4x128xf32> to vector<4x128xbf16>
    %c0_6 = arith.constant 0 : index
    %c0_7 = arith.constant 0 : index
    %c0_8 = arith.constant 0 : index
    %10 = vector.load %arg13[%c0_6, %c0_7, %c0_8] : memref<1x4x128xbf16, #tpu.memory_space<vmem>>, vector<1x4x128xbf16>
    %11 = vector.shape_cast %10 : vector<1x4x128xbf16> to vector<4x128xbf16>
    %12 = vector.shape_cast %9 : vector<4x128xbf16> to vector<1x4x128xbf16>
    tpu.vector_store %arg13[%c0_6, %c0_7, %c0_8], %12 {strides = array<i32>} : memref<1x4x128xbf16, #tpu.memory_space<vmem>>, vector<1x4x128xbf16>,
    return
  }
  func.func @transform_0(%arg0: i32, %arg1: i32) -> (i32, i32, i32) {
    %c0_i32 = arith.constant 0 : i32
    %c0_i32_0 = arith.constant 0 : i32
    %c0_i32_1 = arith.constant 0 : i32
    return %arg0, %c0_i32, %c0_i32_0 : i32, i32, i32
  }
  func.func @transform_1(%arg0: i32, %arg1: i32) -> (i32, i32) {
    %c0_i32 = arith.constant 0 : i32
    %c0_i32_0 = arith.constant 0 : i32
    %c0_i32_1 = arith.constant 0 : i32
    return %c0_i32, %c0_i32_0 : i32, i32
  }
  func.func @transform_2(%arg0: i32, %arg1: i32) -> (i32, i32) {
    %c0_i32 = arith.constant 0 : i32
    %c0_i32_0 = arith.constant 0 : i32
    %c0_i32_1 = arith.constant 0 : i32
    return %c0_i32, %c0_i32_0 : i32, i32
  }
  func.func @transform_3(%arg0: i32, %arg1: i32) -> (i32, i32, i32) {
    %c0_i32 = arith.constant 0 : i32
    %c0_i32_0 = arith.constant 0 : i32
    %c0_i32_1 = arith.constant 0 : i32
    %c0_i32_2 = arith.constant 0 : i32
    return %c0_i32, %c0_i32_0, %c0_i32_1 : i32, i32, i32
  }
  func.func @transform_4(%arg0: i32, %arg1: i32) -> (i32, i32, i32) {
    %c0_i32 = arith.constant 0 : i32
    %c0_i32_0 = arith.constant 0 : i32
    %c0_i32_1 = arith.constant 0 : i32
    %c0_i32_2 = arith.constant 0 : i32
    return %c0_i32, %c0_i32_0, %c0_i32_1 : i32, i32, i32
  }
  func.func @transform_5(%arg0: i32, %arg1: i32) -> (i32, i32, i32) {
    %c0_i32 = arith.constant 0 : i32
    %c0_i32_0 = arith.constant 0 : i32
    %c0_i32_1 = arith.constant 0 : i32
    %c0_i32_2 = arith.constant 0 : i32
    return %c0_i32, %c0_i32_0, %c0_i32_1 : i32, i32, i32
  }
  func.func @transform_6(%arg0: i32, %arg1: i32) -> (i32, i32, i32) {
    %c0_i32 = arith.constant 0 : i32
    %c0_i32_0 = arith.constant 0 : i32
    %c0_i32_1 = arith.constant 0 : i32
    %c0_i32_2 = arith.constant 0 : i32
    return %c0_i32, %c0_i32_0, %c0_i32_1 : i32, i32, i32
  }
  func.func @transform_7(%arg0: i32, %arg1: i32) -> (i32, i32, i32) {
    %c0_i32 = arith.constant 0 : i32
    %c0_i32_0 = arith.constant 0 : i32
    %c0_i32_1 = arith.constant 0 : i32
    %c0_i32_2 = arith.constant 0 : i32
    return %c0_i32, %c0_i32_0, %c0_i32_1 : i32, i32, i32
  }
  func.func @transform_8(%arg0: i32, %arg1: i32) -> (i32, i32, i32) {
    %c0_i32 = arith.constant 0 : i32
    %c0_i32_0 = arith.constant 0 : i32
    %c0_i32_1 = arith.constant 0 : i32
    %c0_i32_2 = arith.constant 0 : i32
    return %c0_i32, %c0_i32_0, %c0_i32_1 : i32, i32, i32
  }
  func.func @transform_9(%arg0: i32, %arg1: i32) -> (i32, i32) {
    %c0_i32 = arith.constant 0 : i32
    %c0_i32_0 = arith.constant 0 : i32
    return %c0_i32, %arg1 : i32, i32
  }
  func.func @transform_10(%arg0: i32, %arg1: i32) -> (i32, i32) {
    %c0_i32 = arith.constant 0 : i32
    %c0_i32_0 = arith.constant 0 : i32
    return %c0_i32, %arg1 : i32, i32
  }
  func.func @transform_11(%arg0: i32, %arg1: i32) -> (i32, i32, i32) {
    %c0_i32 = arith.constant 0 : i32
    %c0_i32_0 = arith.constant 0 : i32
    return %arg0, %c0_i32, %arg1 : i32, i32, i32
  }
}

module attributes {stable_mosaic.version = 11 : i64} {
  func.func @gru_sum_kernel(%arg0: i32, %arg1: memref<8x8x32xbf16, #tpu.memory_space<vmem>>, %arg2: memref<32x96xbf16, #tpu.memory_space<vmem>>, %arg3: memref<1x96xf32, #tpu.memory_space<vmem>>, %arg4: memref<32x96xbf16, #tpu.memory_space<vmem>>, %arg5: memref<1x32xf32, #tpu.memory_space<vmem>>, %arg6: memref<8x32xbf16, #tpu.memory_space<vmem>>, %arg7: memref<8x8x96xbf16, #tpu.memory_space<vmem>>) attributes {dimension_semantics = [#tpu.dimension_semantics<parallel>], iteration_bounds = array<i64: 1>, scalar_prefetch = 0 : i64, scratch_operands = 1 : i64, tpu.core_type = #tpu.core_type<tc>, window_params = [{transform_indices = @transform_0, window_bounds = array<i64: 8, 8, 32>}, {pipeline_mode = #tpu.pipeline_mode<synchronous>, transform_indices = @transform_1, window_bounds = array<i64: 32, 96>}, {pipeline_mode = #tpu.pipeline_mode<synchronous>, transform_indices = @transform_2, window_bounds = array<i64: 1, 96>}, {pipeline_mode = #tpu.pipeline_mode<synchronous>, transform_indices = @transform_3, window_bounds = array<i64: 32, 96>}, {pipeline_mode = #tpu.pipeline_mode<synchronous>, transform_indices = @transform_4, window_bounds = array<i64: 1, 32>}, {transform_indices = @transform_5, window_bounds = array<i64: 8, 32>}]} {
    %c0 = arith.constant 0 : index
    %c0_0 = arith.constant 0 : index
    %c0_1 = arith.constant 0 : index
    %0 = vector.load %arg1[%c0, %c0_0, %c0_1] : memref<8x8x32xbf16, #tpu.memory_space<vmem>>, vector<8x8x32xbf16>
    %1 = vector.shape_cast %0 : vector<8x8x32xbf16> to vector<64x32xbf16>
    %c0_2 = arith.constant 0 : index
    %c0_3 = arith.constant 0 : index
    %2 = vector.load %arg2[%c0_2, %c0_3] : memref<32x96xbf16, #tpu.memory_space<vmem>>, vector<32x96xbf16>
    %cst = arith.constant dense<0.000000e+00> : vector<64x96xf32>
    %3 = tpu.matmul %1, %2, %cst {dimension_numbers = #tpu.dot_dimension_numbers<[1], [0], [0], [1], [0, 0, 1, 1], [], []>} : vector<64x32xbf16>, vector<32x96xbf16>, vector<64x96xf32> -> vector<64x96xf32>
    %c0_4 = arith.constant 0 : index
    %c0_5 = arith.constant 0 : index
    %4 = vector.load %arg3[%c0_4, %c0_5] : memref<1x96xf32, #tpu.memory_space<vmem>>, vector<1x96xf32>
    %5 = vector.broadcast %4 : vector<1x96xf32> to vector<64x96xf32>
    %6 = arith.addf %3, %5 : vector<64x96xf32>
    %7 = vector.shape_cast %6 : vector<64x96xf32> to vector<8x8x96xf32>
    %8 = arith.truncf %7 : vector<8x8x96xf32> to vector<8x8x96xbf16>
    %c0_6 = arith.constant 0 : index
    %c0_7 = arith.constant 0 : index
    %c0_8 = arith.constant 0 : index
    %9 = vector.load %arg7[%c0_6, %c0_7, %c0_8] : memref<8x8x96xbf16, #tpu.memory_space<vmem>>, vector<8x8x96xbf16>
    tpu.vector_store %arg7[%c0_6, %c0_7, %c0_8], %8 {strides = array<i32>} : memref<8x8x96xbf16, #tpu.memory_space<vmem>>, vector<8x8x96xbf16>,
    %c0_9 = arith.constant 0 : index
    %c0_10 = arith.constant 0 : index
    %10 = vector.load %arg5[%c0_9, %c0_10] : memref<1x32xf32, #tpu.memory_space<vmem>>, vector<1x32xf32>
    %cst_11 = arith.constant 0.000000e+00 : f32
    %11 = vector.broadcast %cst_11 : f32 to vector<8x32xf32>
    %cst_12 = arith.constant 0.000000e+00 : f32
    %12 = vector.broadcast %cst_12 : f32 to vector<8x32xf32>
    %c0_i32 = arith.constant 0 : i32
    %13 = arith.truncf %11 : vector<8x32xf32> to vector<8x32xbf16>
    %c0_13 = arith.constant 0 : index
    %c0_14 = arith.constant 0 : index
    %14 = vector.load %arg4[%c0_13, %c0_14] : memref<32x96xbf16, #tpu.memory_space<vmem>>, vector<32x96xbf16>
    %cst_15 = arith.constant dense<0.000000e+00> : vector<8x96xf32>
    %15 = tpu.matmul %13, %14, %cst_15 {dimension_numbers = #tpu.dot_dimension_numbers<[1], [0], [0], [1], [0, 0, 1, 1], [], []>} : vector<8x32xbf16>, vector<32x96xbf16>, vector<8x96xf32> -> vector<8x96xf32>
    %16 = arith.index_cast %c0_i32 : i32 to index
    %c0_16 = arith.constant 0 : index
    %c0_17 = arith.constant 0 : index
    %17 = vector.load %arg7[%16, %c0_16, %c0_17] : memref<8x8x96xbf16, #tpu.memory_space<vmem>>, vector<1x8x96xbf16>
    %18 = vector.shape_cast %17 : vector<1x8x96xbf16> to vector<8x96xbf16>
    %19 = arith.extf %18 : vector<8x96xbf16> to vector<8x96xf32>
    %20 = vector.extract_strided_slice %19 {offsets = [0, 0], sizes = [8, 32], strides = [1, 1]} : vector<8x96xf32> to vector<8x32xf32>
    %21 = vector.extract_strided_slice %15 {offsets = [0, 0], sizes = [8, 32], strides = [1, 1]} : vector<8x96xf32> to vector<8x32xf32>
    %22 = arith.addf %20, %21 : vector<8x32xf32>
    %23 = arith.negf %22 : vector<8x32xf32>
    %24 = math.exp %23 : vector<8x32xf32>
    %cst_18 = arith.constant 1.000000e+00 : f32
    %25 = vector.broadcast %cst_18 : f32 to vector<8x32xf32>
    %26 = arith.addf %25, %24 : vector<8x32xf32>
    %27 = arith.divf %25, %26 : vector<8x32xf32>
    %28 = vector.extract_strided_slice %19 {offsets = [0, 32], sizes = [8, 32], strides = [1, 1]} : vector<8x96xf32> to vector<8x32xf32>
    %29 = vector.extract_strided_slice %15 {offsets = [0, 32], sizes = [8, 32], strides = [1, 1]} : vector<8x96xf32> to vector<8x32xf32>
    %30 = arith.addf %28, %29 : vector<8x32xf32>
    %31 = arith.negf %30 : vector<8x32xf32>
    %32 = math.exp %31 : vector<8x32xf32>
    %cst_19 = arith.constant 1.000000e+00 : f32
    %33 = vector.broadcast %cst_19 : f32 to vector<8x32xf32>
    %34 = arith.addf %33, %32 : vector<8x32xf32>
    %35 = arith.divf %33, %34 : vector<8x32xf32>
    %36 = vector.extract_strided_slice %19 {offsets = [0, 64], sizes = [8, 32], strides = [1, 1]} : vector<8x96xf32> to vector<8x32xf32>
    %37 = vector.extract_strided_slice %15 {offsets = [0, 64], sizes = [8, 32], strides = [1, 1]} : vector<8x96xf32> to vector<8x32xf32>
    %38 = vector.broadcast %10 : vector<1x32xf32> to vector<8x32xf32>
    %39 = arith.addf %37, %38 : vector<8x32xf32>
    %40 = arith.mulf %27, %39 : vector<8x32xf32>
    %41 = arith.addf %36, %40 : vector<8x32xf32>
    %42 = math.tanh %41 : vector<8x32xf32>
    %cst_20 = arith.constant 1.000000e+00 : f32
    %43 = vector.broadcast %cst_20 : f32 to vector<8x32xf32>
    %44 = arith.subf %43, %35 : vector<8x32xf32>
    %45 = arith.mulf %44, %42 : vector<8x32xf32>
    %46 = arith.mulf %35, %11 : vector<8x32xf32>
    %47 = arith.addf %45, %46 : vector<8x32xf32>
    %48 = arith.addf %12, %47 : vector<8x32xf32>
    %c1_i32 = arith.constant 1 : i32
    %49 = arith.truncf %47 : vector<8x32xf32> to vector<8x32xbf16>
    %c0_21 = arith.constant 0 : index
    %c0_22 = arith.constant 0 : index
    %50 = vector.load %arg4[%c0_21, %c0_22] : memref<32x96xbf16, #tpu.memory_space<vmem>>, vector<32x96xbf16>
    %cst_23 = arith.constant dense<0.000000e+00> : vector<8x96xf32>
    %51 = tpu.matmul %49, %50, %cst_23 {dimension_numbers = #tpu.dot_dimension_numbers<[1], [0], [0], [1], [0, 0, 1, 1], [], []>} : vector<8x32xbf16>, vector<32x96xbf16>, vector<8x96xf32> -> vector<8x96xf32>
    %52 = arith.index_cast %c1_i32 : i32 to index
    %c0_24 = arith.constant 0 : index
    %c0_25 = arith.constant 0 : index
    %53 = vector.load %arg7[%52, %c0_24, %c0_25] : memref<8x8x96xbf16, #tpu.memory_space<vmem>>, vector<1x8x96xbf16>
    %54 = vector.shape_cast %53 : vector<1x8x96xbf16> to vector<8x96xbf16>
    %55 = arith.extf %54 : vector<8x96xbf16> to vector<8x96xf32>
    %56 = vector.extract_strided_slice %55 {offsets = [0, 0], sizes = [8, 32], strides = [1, 1]} : vector<8x96xf32> to vector<8x32xf32>
    %57 = vector.extract_strided_slice %51 {offsets = [0, 0], sizes = [8, 32], strides = [1, 1]} : vector<8x96xf32> to vector<8x32xf32>
    %58 = arith.addf %56, %57 : vector<8x32xf32>
    %59 = arith.negf %58 : vector<8x32xf32>
    %60 = math.exp %59 : vector<8x32xf32>
    %cst_26 = arith.constant 1.000000e+00 : f32
    %61 = vector.broadcast %cst_26 : f32 to vector<8x32xf32>
    %62 = arith.addf %61, %60 : vector<8x32xf32>
    %63 = arith.divf %61, %62 : vector<8x32xf32>
    %64 = vector.extract_strided_slice %55 {offsets = [0, 32], sizes = [8, 32], strides = [1, 1]} : vector<8x96xf32> to vector<8x32xf32>
    %65 = vector.extract_strided_slice %51 {offsets = [0, 32], sizes = [8, 32], strides = [1, 1]} : vector<8x96xf32> to vector<8x32xf32>
    %66 = arith.addf %64, %65 : vector<8x32xf32>
    %67 = arith.negf %66 : vector<8x32xf32>
    %68 = math.exp %67 : vector<8x32xf32>
    %cst_27 = arith.constant 1.000000e+00 : f32
    %69 = vector.broadcast %cst_27 : f32 to vector<8x32xf32>
    %70 = arith.addf %69, %68 : vector<8x32xf32>
    %71 = arith.divf %69, %70 : vector<8x32xf32>
    %72 = vector.extract_strided_slice %55 {offsets = [0, 64], sizes = [8, 32], strides = [1, 1]} : vector<8x96xf32> to vector<8x32xf32>
    %73 = vector.extract_strided_slice %51 {offsets = [0, 64], sizes = [8, 32], strides = [1, 1]} : vector<8x96xf32> to vector<8x32xf32>
    %74 = vector.broadcast %10 : vector<1x32xf32> to vector<8x32xf32>
    %75 = arith.addf %73, %74 : vector<8x32xf32>
    %76 = arith.mulf %63, %75 : vector<8x32xf32>
    %77 = arith.addf %72, %76 : vector<8x32xf32>
    %78 = math.tanh %77 : vector<8x32xf32>
    %cst_28 = arith.constant 1.000000e+00 : f32
    %79 = vector.broadcast %cst_28 : f32 to vector<8x32xf32>
    %80 = arith.subf %79, %71 : vector<8x32xf32>
    %81 = arith.mulf %80, %78 : vector<8x32xf32>
    %82 = arith.mulf %71, %47 : vector<8x32xf32>
    %83 = arith.addf %81, %82 : vector<8x32xf32>
    %84 = arith.addf %48, %83 : vector<8x32xf32>
    %c2_i32 = arith.constant 2 : i32
    %85 = arith.truncf %83 : vector<8x32xf32> to vector<8x32xbf16>
    %c0_29 = arith.constant 0 : index
    %c0_30 = arith.constant 0 : index
    %86 = vector.load %arg4[%c0_29, %c0_30] : memref<32x96xbf16, #tpu.memory_space<vmem>>, vector<32x96xbf16>
    %cst_31 = arith.constant dense<0.000000e+00> : vector<8x96xf32>
    %87 = tpu.matmul %85, %86, %cst_31 {dimension_numbers = #tpu.dot_dimension_numbers<[1], [0], [0], [1], [0, 0, 1, 1], [], []>} : vector<8x32xbf16>, vector<32x96xbf16>, vector<8x96xf32> -> vector<8x96xf32>
    %88 = arith.index_cast %c2_i32 : i32 to index
    %c0_32 = arith.constant 0 : index
    %c0_33 = arith.constant 0 : index
    %89 = vector.load %arg7[%88, %c0_32, %c0_33] : memref<8x8x96xbf16, #tpu.memory_space<vmem>>, vector<1x8x96xbf16>
    %90 = vector.shape_cast %89 : vector<1x8x96xbf16> to vector<8x96xbf16>
    %91 = arith.extf %90 : vector<8x96xbf16> to vector<8x96xf32>
    %92 = vector.extract_strided_slice %91 {offsets = [0, 0], sizes = [8, 32], strides = [1, 1]} : vector<8x96xf32> to vector<8x32xf32>
    %93 = vector.extract_strided_slice %87 {offsets = [0, 0], sizes = [8, 32], strides = [1, 1]} : vector<8x96xf32> to vector<8x32xf32>
    %94 = arith.addf %92, %93 : vector<8x32xf32>
    %95 = arith.negf %94 : vector<8x32xf32>
    %96 = math.exp %95 : vector<8x32xf32>
    %cst_34 = arith.constant 1.000000e+00 : f32
    %97 = vector.broadcast %cst_34 : f32 to vector<8x32xf32>
    %98 = arith.addf %97, %96 : vector<8x32xf32>
    %99 = arith.divf %97, %98 : vector<8x32xf32>
    %100 = vector.extract_strided_slice %91 {offsets = [0, 32], sizes = [8, 32], strides = [1, 1]} : vector<8x96xf32> to vector<8x32xf32>
    %101 = vector.extract_strided_slice %87 {offsets = [0, 32], sizes = [8, 32], strides = [1, 1]} : vector<8x96xf32> to vector<8x32xf32>
    %102 = arith.addf %100, %101 : vector<8x32xf32>
    %103 = arith.negf %102 : vector<8x32xf32>
    %104 = math.exp %103 : vector<8x32xf32>
    %cst_35 = arith.constant 1.000000e+00 : f32
    %105 = vector.broadcast %cst_35 : f32 to vector<8x32xf32>
    %106 = arith.addf %105, %104 : vector<8x32xf32>
    %107 = arith.divf %105, %106 : vector<8x32xf32>
    %108 = vector.extract_strided_slice %91 {offsets = [0, 64], sizes = [8, 32], strides = [1, 1]} : vector<8x96xf32> to vector<8x32xf32>
    %109 = vector.extract_strided_slice %87 {offsets = [0, 64], sizes = [8, 32], strides = [1, 1]} : vector<8x96xf32> to vector<8x32xf32>
    %110 = vector.broadcast %10 : vector<1x32xf32> to vector<8x32xf32>
    %111 = arith.addf %109, %110 : vector<8x32xf32>
    %112 = arith.mulf %99, %111 : vector<8x32xf32>
    %113 = arith.addf %108, %112 : vector<8x32xf32>
    %114 = math.tanh %113 : vector<8x32xf32>
    %cst_36 = arith.constant 1.000000e+00 : f32
    %115 = vector.broadcast %cst_36 : f32 to vector<8x32xf32>
    %116 = arith.subf %115, %107 : vector<8x32xf32>
    %117 = arith.mulf %116, %114 : vector<8x32xf32>
    %118 = arith.mulf %107, %83 : vector<8x32xf32>
    %119 = arith.addf %117, %118 : vector<8x32xf32>
    %120 = arith.addf %84, %119 : vector<8x32xf32>
    %c3_i32 = arith.constant 3 : i32
    %121 = arith.truncf %119 : vector<8x32xf32> to vector<8x32xbf16>
    %c0_37 = arith.constant 0 : index
    %c0_38 = arith.constant 0 : index
    %122 = vector.load %arg4[%c0_37, %c0_38] : memref<32x96xbf16, #tpu.memory_space<vmem>>, vector<32x96xbf16>
    %cst_39 = arith.constant dense<0.000000e+00> : vector<8x96xf32>
    %123 = tpu.matmul %121, %122, %cst_39 {dimension_numbers = #tpu.dot_dimension_numbers<[1], [0], [0], [1], [0, 0, 1, 1], [], []>} : vector<8x32xbf16>, vector<32x96xbf16>, vector<8x96xf32> -> vector<8x96xf32>
    %124 = arith.index_cast %c3_i32 : i32 to index
    %c0_40 = arith.constant 0 : index
    %c0_41 = arith.constant 0 : index
    %125 = vector.load %arg7[%124, %c0_40, %c0_41] : memref<8x8x96xbf16, #tpu.memory_space<vmem>>, vector<1x8x96xbf16>
    %126 = vector.shape_cast %125 : vector<1x8x96xbf16> to vector<8x96xbf16>
    %127 = arith.extf %126 : vector<8x96xbf16> to vector<8x96xf32>
    %128 = vector.extract_strided_slice %127 {offsets = [0, 0], sizes = [8, 32], strides = [1, 1]} : vector<8x96xf32> to vector<8x32xf32>
    %129 = vector.extract_strided_slice %123 {offsets = [0, 0], sizes = [8, 32], strides = [1, 1]} : vector<8x96xf32> to vector<8x32xf32>
    %130 = arith.addf %128, %129 : vector<8x32xf32>
    %131 = arith.negf %130 : vector<8x32xf32>
    %132 = math.exp %131 : vector<8x32xf32>
    %cst_42 = arith.constant 1.000000e+00 : f32
    %133 = vector.broadcast %cst_42 : f32 to vector<8x32xf32>
    %134 = arith.addf %133, %132 : vector<8x32xf32>
    %135 = arith.divf %133, %134 : vector<8x32xf32>
    %136 = vector.extract_strided_slice %127 {offsets = [0, 32], sizes = [8, 32], strides = [1, 1]} : vector<8x96xf32> to vector<8x32xf32>
    %137 = vector.extract_strided_slice %123 {offsets = [0, 32], sizes = [8, 32], strides = [1, 1]} : vector<8x96xf32> to vector<8x32xf32>
    %138 = arith.addf %136, %137 : vector<8x32xf32>
    %139 = arith.negf %138 : vector<8x32xf32>
    %140 = math.exp %139 : vector<8x32xf32>
    %cst_43 = arith.constant 1.000000e+00 : f32
    %141 = vector.broadcast %cst_43 : f32 to vector<8x32xf32>
    %142 = arith.addf %141, %140 : vector<8x32xf32>
    %143 = arith.divf %141, %142 : vector<8x32xf32>
    %144 = vector.extract_strided_slice %127 {offsets = [0, 64], sizes = [8, 32], strides = [1, 1]} : vector<8x96xf32> to vector<8x32xf32>
    %145 = vector.extract_strided_slice %123 {offsets = [0, 64], sizes = [8, 32], strides = [1, 1]} : vector<8x96xf32> to vector<8x32xf32>
    %146 = vector.broadcast %10 : vector<1x32xf32> to vector<8x32xf32>
    %147 = arith.addf %145, %146 : vector<8x32xf32>
    %148 = arith.mulf %135, %147 : vector<8x32xf32>
    %149 = arith.addf %144, %148 : vector<8x32xf32>
    %150 = math.tanh %149 : vector<8x32xf32>
    %cst_44 = arith.constant 1.000000e+00 : f32
    %151 = vector.broadcast %cst_44 : f32 to vector<8x32xf32>
    %152 = arith.subf %151, %143 : vector<8x32xf32>
    %153 = arith.mulf %152, %150 : vector<8x32xf32>
    %154 = arith.mulf %143, %119 : vector<8x32xf32>
    %155 = arith.addf %153, %154 : vector<8x32xf32>
    %156 = arith.addf %120, %155 : vector<8x32xf32>
    %c4_i32 = arith.constant 4 : i32
    %157 = arith.truncf %155 : vector<8x32xf32> to vector<8x32xbf16>
    %c0_45 = arith.constant 0 : index
    %c0_46 = arith.constant 0 : index
    %158 = vector.load %arg4[%c0_45, %c0_46] : memref<32x96xbf16, #tpu.memory_space<vmem>>, vector<32x96xbf16>
    %cst_47 = arith.constant dense<0.000000e+00> : vector<8x96xf32>
    %159 = tpu.matmul %157, %158, %cst_47 {dimension_numbers = #tpu.dot_dimension_numbers<[1], [0], [0], [1], [0, 0, 1, 1], [], []>} : vector<8x32xbf16>, vector<32x96xbf16>, vector<8x96xf32> -> vector<8x96xf32>
    %160 = arith.index_cast %c4_i32 : i32 to index
    %c0_48 = arith.constant 0 : index
    %c0_49 = arith.constant 0 : index
    %161 = vector.load %arg7[%160, %c0_48, %c0_49] : memref<8x8x96xbf16, #tpu.memory_space<vmem>>, vector<1x8x96xbf16>
    %162 = vector.shape_cast %161 : vector<1x8x96xbf16> to vector<8x96xbf16>
    %163 = arith.extf %162 : vector<8x96xbf16> to vector<8x96xf32>
    %164 = vector.extract_strided_slice %163 {offsets = [0, 0], sizes = [8, 32], strides = [1, 1]} : vector<8x96xf32> to vector<8x32xf32>
    %165 = vector.extract_strided_slice %159 {offsets = [0, 0], sizes = [8, 32], strides = [1, 1]} : vector<8x96xf32> to vector<8x32xf32>
    %166 = arith.addf %164, %165 : vector<8x32xf32>
    %167 = arith.negf %166 : vector<8x32xf32>
    %168 = math.exp %167 : vector<8x32xf32>
    %cst_50 = arith.constant 1.000000e+00 : f32
    %169 = vector.broadcast %cst_50 : f32 to vector<8x32xf32>
    %170 = arith.addf %169, %168 : vector<8x32xf32>
    %171 = arith.divf %169, %170 : vector<8x32xf32>
    %172 = vector.extract_strided_slice %163 {offsets = [0, 32], sizes = [8, 32], strides = [1, 1]} : vector<8x96xf32> to vector<8x32xf32>
    %173 = vector.extract_strided_slice %159 {offsets = [0, 32], sizes = [8, 32], strides = [1, 1]} : vector<8x96xf32> to vector<8x32xf32>
    %174 = arith.addf %172, %173 : vector<8x32xf32>
    %175 = arith.negf %174 : vector<8x32xf32>
    %176 = math.exp %175 : vector<8x32xf32>
    %cst_51 = arith.constant 1.000000e+00 : f32
    %177 = vector.broadcast %cst_51 : f32 to vector<8x32xf32>
    %178 = arith.addf %177, %176 : vector<8x32xf32>
    %179 = arith.divf %177, %178 : vector<8x32xf32>
    %180 = vector.extract_strided_slice %163 {offsets = [0, 64], sizes = [8, 32], strides = [1, 1]} : vector<8x96xf32> to vector<8x32xf32>
    %181 = vector.extract_strided_slice %159 {offsets = [0, 64], sizes = [8, 32], strides = [1, 1]} : vector<8x96xf32> to vector<8x32xf32>
    %182 = vector.broadcast %10 : vector<1x32xf32> to vector<8x32xf32>
    %183 = arith.addf %181, %182 : vector<8x32xf32>
    %184 = arith.mulf %171, %183 : vector<8x32xf32>
    %185 = arith.addf %180, %184 : vector<8x32xf32>
    %186 = math.tanh %185 : vector<8x32xf32>
    %cst_52 = arith.constant 1.000000e+00 : f32
    %187 = vector.broadcast %cst_52 : f32 to vector<8x32xf32>
    %188 = arith.subf %187, %179 : vector<8x32xf32>
    %189 = arith.mulf %188, %186 : vector<8x32xf32>
    %190 = arith.mulf %179, %155 : vector<8x32xf32>
    %191 = arith.addf %189, %190 : vector<8x32xf32>
    %192 = arith.addf %156, %191 : vector<8x32xf32>
    %c5_i32 = arith.constant 5 : i32
    %193 = arith.truncf %191 : vector<8x32xf32> to vector<8x32xbf16>
    %c0_53 = arith.constant 0 : index
    %c0_54 = arith.constant 0 : index
    %194 = vector.load %arg4[%c0_53, %c0_54] : memref<32x96xbf16, #tpu.memory_space<vmem>>, vector<32x96xbf16>
    %cst_55 = arith.constant dense<0.000000e+00> : vector<8x96xf32>
    %195 = tpu.matmul %193, %194, %cst_55 {dimension_numbers = #tpu.dot_dimension_numbers<[1], [0], [0], [1], [0, 0, 1, 1], [], []>} : vector<8x32xbf16>, vector<32x96xbf16>, vector<8x96xf32> -> vector<8x96xf32>
    %196 = arith.index_cast %c5_i32 : i32 to index
    %c0_56 = arith.constant 0 : index
    %c0_57 = arith.constant 0 : index
    %197 = vector.load %arg7[%196, %c0_56, %c0_57] : memref<8x8x96xbf16, #tpu.memory_space<vmem>>, vector<1x8x96xbf16>
    %198 = vector.shape_cast %197 : vector<1x8x96xbf16> to vector<8x96xbf16>
    %199 = arith.extf %198 : vector<8x96xbf16> to vector<8x96xf32>
    %200 = vector.extract_strided_slice %199 {offsets = [0, 0], sizes = [8, 32], strides = [1, 1]} : vector<8x96xf32> to vector<8x32xf32>
    %201 = vector.extract_strided_slice %195 {offsets = [0, 0], sizes = [8, 32], strides = [1, 1]} : vector<8x96xf32> to vector<8x32xf32>
    %202 = arith.addf %200, %201 : vector<8x32xf32>
    %203 = arith.negf %202 : vector<8x32xf32>
    %204 = math.exp %203 : vector<8x32xf32>
    %cst_58 = arith.constant 1.000000e+00 : f32
    %205 = vector.broadcast %cst_58 : f32 to vector<8x32xf32>
    %206 = arith.addf %205, %204 : vector<8x32xf32>
    %207 = arith.divf %205, %206 : vector<8x32xf32>
    %208 = vector.extract_strided_slice %199 {offsets = [0, 32], sizes = [8, 32], strides = [1, 1]} : vector<8x96xf32> to vector<8x32xf32>
    %209 = vector.extract_strided_slice %195 {offsets = [0, 32], sizes = [8, 32], strides = [1, 1]} : vector<8x96xf32> to vector<8x32xf32>
    %210 = arith.addf %208, %209 : vector<8x32xf32>
    %211 = arith.negf %210 : vector<8x32xf32>
    %212 = math.exp %211 : vector<8x32xf32>
    %cst_59 = arith.constant 1.000000e+00 : f32
    %213 = vector.broadcast %cst_59 : f32 to vector<8x32xf32>
    %214 = arith.addf %213, %212 : vector<8x32xf32>
    %215 = arith.divf %213, %214 : vector<8x32xf32>
    %216 = vector.extract_strided_slice %199 {offsets = [0, 64], sizes = [8, 32], strides = [1, 1]} : vector<8x96xf32> to vector<8x32xf32>
    %217 = vector.extract_strided_slice %195 {offsets = [0, 64], sizes = [8, 32], strides = [1, 1]} : vector<8x96xf32> to vector<8x32xf32>
    %218 = vector.broadcast %10 : vector<1x32xf32> to vector<8x32xf32>
    %219 = arith.addf %217, %218 : vector<8x32xf32>
    %220 = arith.mulf %207, %219 : vector<8x32xf32>
    %221 = arith.addf %216, %220 : vector<8x32xf32>
    %222 = math.tanh %221 : vector<8x32xf32>
    %cst_60 = arith.constant 1.000000e+00 : f32
    %223 = vector.broadcast %cst_60 : f32 to vector<8x32xf32>
    %224 = arith.subf %223, %215 : vector<8x32xf32>
    %225 = arith.mulf %224, %222 : vector<8x32xf32>
    %226 = arith.mulf %215, %191 : vector<8x32xf32>
    %227 = arith.addf %225, %226 : vector<8x32xf32>
    %228 = arith.addf %192, %227 : vector<8x32xf32>
    %c6_i32 = arith.constant 6 : i32
    %229 = arith.truncf %227 : vector<8x32xf32> to vector<8x32xbf16>
    %c0_61 = arith.constant 0 : index
    %c0_62 = arith.constant 0 : index
    %230 = vector.load %arg4[%c0_61, %c0_62] : memref<32x96xbf16, #tpu.memory_space<vmem>>, vector<32x96xbf16>
    %cst_63 = arith.constant dense<0.000000e+00> : vector<8x96xf32>
    %231 = tpu.matmul %229, %230, %cst_63 {dimension_numbers = #tpu.dot_dimension_numbers<[1], [0], [0], [1], [0, 0, 1, 1], [], []>} : vector<8x32xbf16>, vector<32x96xbf16>, vector<8x96xf32> -> vector<8x96xf32>
    %232 = arith.index_cast %c6_i32 : i32 to index
    %c0_64 = arith.constant 0 : index
    %c0_65 = arith.constant 0 : index
    %233 = vector.load %arg7[%232, %c0_64, %c0_65] : memref<8x8x96xbf16, #tpu.memory_space<vmem>>, vector<1x8x96xbf16>
    %234 = vector.shape_cast %233 : vector<1x8x96xbf16> to vector<8x96xbf16>
    %235 = arith.extf %234 : vector<8x96xbf16> to vector<8x96xf32>
    %236 = vector.extract_strided_slice %235 {offsets = [0, 0], sizes = [8, 32], strides = [1, 1]} : vector<8x96xf32> to vector<8x32xf32>
    %237 = vector.extract_strided_slice %231 {offsets = [0, 0], sizes = [8, 32], strides = [1, 1]} : vector<8x96xf32> to vector<8x32xf32>
    %238 = arith.addf %236, %237 : vector<8x32xf32>
    %239 = arith.negf %238 : vector<8x32xf32>
    %240 = math.exp %239 : vector<8x32xf32>
    %cst_66 = arith.constant 1.000000e+00 : f32
    %241 = vector.broadcast %cst_66 : f32 to vector<8x32xf32>
    %242 = arith.addf %241, %240 : vector<8x32xf32>
    %243 = arith.divf %241, %242 : vector<8x32xf32>
    %244 = vector.extract_strided_slice %235 {offsets = [0, 32], sizes = [8, 32], strides = [1, 1]} : vector<8x96xf32> to vector<8x32xf32>
    %245 = vector.extract_strided_slice %231 {offsets = [0, 32], sizes = [8, 32], strides = [1, 1]} : vector<8x96xf32> to vector<8x32xf32>
    %246 = arith.addf %244, %245 : vector<8x32xf32>
    %247 = arith.negf %246 : vector<8x32xf32>
    %248 = math.exp %247 : vector<8x32xf32>
    %cst_67 = arith.constant 1.000000e+00 : f32
    %249 = vector.broadcast %cst_67 : f32 to vector<8x32xf32>
    %250 = arith.addf %249, %248 : vector<8x32xf32>
    %251 = arith.divf %249, %250 : vector<8x32xf32>
    %252 = vector.extract_strided_slice %235 {offsets = [0, 64], sizes = [8, 32], strides = [1, 1]} : vector<8x96xf32> to vector<8x32xf32>
    %253 = vector.extract_strided_slice %231 {offsets = [0, 64], sizes = [8, 32], strides = [1, 1]} : vector<8x96xf32> to vector<8x32xf32>
    %254 = vector.broadcast %10 : vector<1x32xf32> to vector<8x32xf32>
    %255 = arith.addf %253, %254 : vector<8x32xf32>
    %256 = arith.mulf %243, %255 : vector<8x32xf32>
    %257 = arith.addf %252, %256 : vector<8x32xf32>
    %258 = math.tanh %257 : vector<8x32xf32>
    %cst_68 = arith.constant 1.000000e+00 : f32
    %259 = vector.broadcast %cst_68 : f32 to vector<8x32xf32>
    %260 = arith.subf %259, %251 : vector<8x32xf32>
    %261 = arith.mulf %260, %258 : vector<8x32xf32>
    %262 = arith.mulf %251, %227 : vector<8x32xf32>
    %263 = arith.addf %261, %262 : vector<8x32xf32>
    %264 = arith.addf %228, %263 : vector<8x32xf32>
    %c7_i32 = arith.constant 7 : i32
    %265 = arith.truncf %263 : vector<8x32xf32> to vector<8x32xbf16>
    %c0_69 = arith.constant 0 : index
    %c0_70 = arith.constant 0 : index
    %266 = vector.load %arg4[%c0_69, %c0_70] : memref<32x96xbf16, #tpu.memory_space<vmem>>, vector<32x96xbf16>
    %cst_71 = arith.constant dense<0.000000e+00> : vector<8x96xf32>
    %267 = tpu.matmul %265, %266, %cst_71 {dimension_numbers = #tpu.dot_dimension_numbers<[1], [0], [0], [1], [0, 0, 1, 1], [], []>} : vector<8x32xbf16>, vector<32x96xbf16>, vector<8x96xf32> -> vector<8x96xf32>
    %268 = arith.index_cast %c7_i32 : i32 to index
    %c0_72 = arith.constant 0 : index
    %c0_73 = arith.constant 0 : index
    %269 = vector.load %arg7[%268, %c0_72, %c0_73] : memref<8x8x96xbf16, #tpu.memory_space<vmem>>, vector<1x8x96xbf16>
    %270 = vector.shape_cast %269 : vector<1x8x96xbf16> to vector<8x96xbf16>
    %271 = arith.extf %270 : vector<8x96xbf16> to vector<8x96xf32>
    %272 = vector.extract_strided_slice %271 {offsets = [0, 0], sizes = [8, 32], strides = [1, 1]} : vector<8x96xf32> to vector<8x32xf32>
    %273 = vector.extract_strided_slice %267 {offsets = [0, 0], sizes = [8, 32], strides = [1, 1]} : vector<8x96xf32> to vector<8x32xf32>
    %274 = arith.addf %272, %273 : vector<8x32xf32>
    %275 = arith.negf %274 : vector<8x32xf32>
    %276 = math.exp %275 : vector<8x32xf32>
    %cst_74 = arith.constant 1.000000e+00 : f32
    %277 = vector.broadcast %cst_74 : f32 to vector<8x32xf32>
    %278 = arith.addf %277, %276 : vector<8x32xf32>
    %279 = arith.divf %277, %278 : vector<8x32xf32>
    %280 = vector.extract_strided_slice %271 {offsets = [0, 32], sizes = [8, 32], strides = [1, 1]} : vector<8x96xf32> to vector<8x32xf32>
    %281 = vector.extract_strided_slice %267 {offsets = [0, 32], sizes = [8, 32], strides = [1, 1]} : vector<8x96xf32> to vector<8x32xf32>
    %282 = arith.addf %280, %281 : vector<8x32xf32>
    %283 = arith.negf %282 : vector<8x32xf32>
    %284 = math.exp %283 : vector<8x32xf32>
    %cst_75 = arith.constant 1.000000e+00 : f32
    %285 = vector.broadcast %cst_75 : f32 to vector<8x32xf32>
    %286 = arith.addf %285, %284 : vector<8x32xf32>
    %287 = arith.divf %285, %286 : vector<8x32xf32>
    %288 = vector.extract_strided_slice %271 {offsets = [0, 64], sizes = [8, 32], strides = [1, 1]} : vector<8x96xf32> to vector<8x32xf32>
    %289 = vector.extract_strided_slice %267 {offsets = [0, 64], sizes = [8, 32], strides = [1, 1]} : vector<8x96xf32> to vector<8x32xf32>
    %290 = vector.broadcast %10 : vector<1x32xf32> to vector<8x32xf32>
    %291 = arith.addf %289, %290 : vector<8x32xf32>
    %292 = arith.mulf %279, %291 : vector<8x32xf32>
    %293 = arith.addf %288, %292 : vector<8x32xf32>
    %294 = math.tanh %293 : vector<8x32xf32>
    %cst_76 = arith.constant 1.000000e+00 : f32
    %295 = vector.broadcast %cst_76 : f32 to vector<8x32xf32>
    %296 = arith.subf %295, %287 : vector<8x32xf32>
    %297 = arith.mulf %296, %294 : vector<8x32xf32>
    %298 = arith.mulf %287, %263 : vector<8x32xf32>
    %299 = arith.addf %297, %298 : vector<8x32xf32>
    %300 = arith.addf %264, %299 : vector<8x32xf32>
    %c8_i32 = arith.constant 8 : i32
    %301 = arith.truncf %300 : vector<8x32xf32> to vector<8x32xbf16>
    %c0_77 = arith.constant 0 : index
    %c0_78 = arith.constant 0 : index
    %302 = vector.load %arg6[%c0_77, %c0_78] : memref<8x32xbf16, #tpu.memory_space<vmem>>, vector<8x32xbf16>
    tpu.vector_store %arg6[%c0_77, %c0_78], %301 {strides = array<i32>} : memref<8x32xbf16, #tpu.memory_space<vmem>>, vector<8x32xbf16>,
    return
  }
  func.func @transform_0(%arg0: i32) -> (i32, i32, i32) {
    %c0_i32 = arith.constant 0 : i32
    %c0_i32_0 = arith.constant 0 : i32
    %c0_i32_1 = arith.constant 0 : i32
    return %c0_i32, %arg0, %c0_i32_0 : i32, i32, i32
  }
  func.func @transform_1(%arg0: i32) -> (i32, i32) {
    %c0_i32 = arith.constant 0 : i32
    %c0_i32_0 = arith.constant 0 : i32
    %c0_i32_1 = arith.constant 0 : i32
    return %c0_i32, %c0_i32_0 : i32, i32
  }
  func.func @transform_2(%arg0: i32) -> (i32, i32) {
    %c0_i32 = arith.constant 0 : i32
    %c0_i32_0 = arith.constant 0 : i32
    %c0_i32_1 = arith.constant 0 : i32
    return %c0_i32, %c0_i32_0 : i32, i32
  }
  func.func @transform_3(%arg0: i32) -> (i32, i32) {
    %c0_i32 = arith.constant 0 : i32
    %c0_i32_0 = arith.constant 0 : i32
    %c0_i32_1 = arith.constant 0 : i32
    return %c0_i32, %c0_i32_0 : i32, i32
  }
  func.func @transform_4(%arg0: i32) -> (i32, i32) {
    %c0_i32 = arith.constant 0 : i32
    %c0_i32_0 = arith.constant 0 : i32
    %c0_i32_1 = arith.constant 0 : i32
    return %c0_i32, %c0_i32_0 : i32, i32
  }
  func.func @transform_5(%arg0: i32) -> (i32, i32) {
    %c0_i32 = arith.constant 0 : i32
    %c0_i32_0 = arith.constant 0 : i32
    return %arg0, %c0_i32 : i32, i32
  }
}

</mosaic_0001>

<bundles_post_ra>
// kernel: set_transformer_forward.2
= control target key start
LH: loop header
LB: loop body
LE: loop exit
PB: predicated region body
PF: predicated region fallthrough
CT: control target
= control target key end

     0   :  { %v1022_v0 = vmov 0.0   ;;  %vm1023_vm0 = vmmov 0   ;;  %vm72_vm1 = vcmask 261120   ;;  %v1025_v8 = vmov 0   ;;  %s1250_s1 = inlined_call_operand.vmem [shape: bf16[32,96], index: 1, kind: input, shape index: {}]   ;;  %s1251_s3 = inlined_call_operand.vmem [shape: bf16[32,96], index: 3, kind: input, shape index: {}]   ;;  %s1252_s0 = inlined_call_operand.vmem [shape: bf16[8,8,32], index: 0, kind: input, shape index: {}]   ;;  %s1253_s4 = inlined_call_operand.vmem [shape: f32[1,32], index: 4, kind: input, shape index: {}]   ;;  %s1254_s2 = inlined_call_operand.vmem [shape: f32[1,96], index: 2, kind: input, shape index: {}]   ;;  %s1255_s5 = inlined_call_operand.vmem [shape: bf16[8,32], index: 5, kind: output, shape index: {}]  }
   0x1   :  { %897 = vmatprep.subr.bf16.mxu1 %v1022_v0  ;;  %v966_v1 = vld [vmem:[%s1250_s1] sm:$0xff]   ;;  %901 = vmatprep.mubr.msk.bf16.mxu1 %vm1023_vm0, %v1022_v0  ;;  %v968_v3 = vld [vmem:[%s1250_s1 + $0x8] sm:$0xff]   ;;  %vm158_vm2 = vcmask 781312   ;;  %v972_v62 = vld [vmem:[%s1252_s0 + $0x10] sm:$0xff]   ;;  %vm818_vm3 = vcmask 257024  }
   0x2   :  { %v1066_v2 = vld [vmem:[%s1251_s3] sm:$0xff]   ;;  %885 = vmatprep.subr.bf16.mxu0 %v966_v1  ;;  %v1075_v4 = vld [vmem:[%s1251_s3 + $0x8] sm:$0xff]   ;;  %s1024_s3 = smov 64   ;;  %v973_v63 = vld [vmem:[%s1252_s0 + $0x18] sm:$0xff]  }
   0x3   :  { %898 = vmatpush3.bf16.msra.mxu1 %v1066_v2  ;;  %886 = vmatpush3.bf16.msra.mxu0 %v966_v1  ;;  %v970_v5 = vld [vmem:[%s1252_s0] sm:$0xff]   ;;  %v971_v6 = vld [vmem:[%s1252_s0 + $0x8] sm:$0xff]  }
   0x4   :  { %899 = vmatprep.subr.bf16.mxu1 %v1022_v0  ;;  %887 = vmatprep.subr.bf16.mxu0 %v968_v3  ;;  %v838_v7 = vld [vmem:[%s1253_s4] ss:$0 sm:$0xff] }
   0x5   :  { %889 = vmatprep.mubr.msk.bf16.mxu0 %vm72_vm1, %v970_v5  ;;  %241 = vrot.lane.b32.xlu0 %v838_v7, %s1024_s3  ;;  %v1108_v10 = vld [vmem:[%s1254_s2] ss:$0 sm:$0xff]  ;;  %s1026_s2 = smov 96  }
   0x7   :  { %900 = vmatpush3.bf16.msra.mxu1 %v1075_v4  ;;  %888 = vmatpush3.bf16.msra.mxu0 %v968_v3 }
   0x8   :  { %905 = vmatprep.subr.bf16.mxu1 %v1022_v0  ;;  %913 = vmatprep.subr.bf16.mxu0 %v1022_v0 }
   0xa   :  { %902 = vmatmul.mubr.bf16.vlgmr.msra.gmra.mrb[0].mxu1 %v1025_v8  ;;  %890 = vmatmul.mubr.msk.bf16.vlgmr.msra.gmra.mrb[0].mxu0 %vm72_vm1, %v971_v6 }
   0xb   :  { %906 = vmatpush3.bf16.msra.mxu1 %v1066_v2  ;;  %909 = vmatprep.mubr.msk.bf16.mxu1 %vm1023_vm0, %v1022_v0 }
   0xc   :  { %907 = vmatprep.subr.bf16.mxu1 %v1022_v0  ;;  %914 = vmatpush3.bf16.msra.mxu0 %v1066_v2 }
   0xd   :  { %915 = vmatprep.subr.bf16.mxu0 %v1022_v0  ;;  %893 = vmatprep.mubr.msk.bf16.mxu0 %vm72_vm1, %v972_v62 }
   0xf   :  { %908 = vmatpush3.bf16.msra.mxu1 %v1075_v4 }
  0x10   :  { %916 = vmatpush3.bf16.msra.mxu0 %v1075_v4  ;;  %921 = vmatprep.subr.bf16.mxu1 %v1022_v0 }
  0x11   :  { %929 = vmatprep.subr.bf16.mxu0 %v1022_v0 }
  0x12   :  { %894 = vmatmul.mubr.msk.bf16.gmra.mrb[4].mxu0 %vm72_vm1, %v973_v63 }
  0x13   :  { %917 = vmatprep.mubr.msk.bf16.mxu0 %vm1023_vm0, %v1022_v0 }
  0x77   :  { %v1103_v9 = vpop.permute.xlu0 %241 }
  0xdd   :  { %v221_v11 = vpop.f32.mrb[0].mxu1  ;;  %v891_v12 = vpop.f32.mrb[0].mxu0 }
  0xde   :  { %v244_v13 = vadd.f32 %v1103_v9, %v221_v11  ;;  %v128_v14 = vadd.f32 %v891_v12, %v1108_v10  ;;  %v903_v15 = vpop.f32.mrb[1].mxu1  ;;  %v119_v16 = vpop.f32.mrb[1].mxu0 }
  0xdf   :  { %v120_v17 = vadd.f32 %v1108_v10, %v119_v16  ;;  %v224_v18 = vpop.f32.mrb[2].mxu1  ;;  %v892_v19 = vpop.f32.mrb[2].mxu0 }
  0xe0   :  { %v152_v20 = vpack.c.bf16 %v128_v14, %v128_v14  ;;  %246 = vrot.lane.b32.xlu0 %v244_v13, %s1024_s3  ;;  %v904_v21 = vpop.f32.mrb[3].mxu1  ;;  %v131_v22 = vadd.f32 %v892_v19, %v1108_v10  ;;  %v122_v23 = vpop.f32.mrb[3].mxu0 }
  0xe1   :  { %v150_v24 = vpack.c.bf16 %v120_v17, %v120_v17  ;;  %v123_v25 = vadd.f32 %v1108_v10, %v122_v23 }
  0xe2   :  { %161 = vst.msk [vmem:[#allocation2 + $0x8] sm:$0xf] %vm158_vm2, %v152_v20  ;;  %v153_v26 = vpack.c.bf16 %v131_v22, %v131_v22 }
  0xe3   :  { %159 = vst.msk [vmem:[#allocation2] sm:$0xf] %vm158_vm2, %v150_v24  ;;  %v151_v27 = vpack.c.bf16 %v123_v25, %v123_v25 }
  0xe4   :  { %162 = vst.msk [vmem:[#allocation2 + $0xc] sm:$0xf] %vm158_vm2, %v153_v26 }
  0xe5   :  { %160 = vst.msk [vmem:[#allocation2 + $0x4] sm:$0xf] %vm158_vm2, %v151_v27  ;;  %v895_v12 = vpop.f32.mrb[4].mxu0 }
  0xe6   :  { %v144_v13 = vadd.f32 %v895_v12, %v1108_v10  ;;  %v135_v14 = vpop.f32.mrb[5].mxu0 }
  0xe7   :  { %v136_v15 = vadd.f32 %v1108_v10, %v135_v14  ;;  %v896_v16 = vpop.f32.mrb[6].mxu0 }
  0xe8   :  { %v156_v17 = vpack.c.bf16 %v144_v13, %v144_v13  ;;  %v147_v18 = vadd.f32 %v896_v16, %v1108_v10  ;;  %v138_v19 = vpop.f32.mrb[7].mxu0 }
  0xe9   :  { %v154_v20 = vpack.c.bf16 %v136_v15, %v136_v15  ;;  %v139_v21 = vadd.f32 %v1108_v10, %v138_v19 }
  0xea   :  { %165 = vst.msk [vmem:[#allocation2 + $0x18] sm:$0xf] %vm158_vm2, %v156_v17  ;;  %v157_v22 = vpack.c.bf16 %v147_v18, %v147_v18 }
  0xeb   :  { %163 = vst.msk [vmem:[#allocation2 + $0x10] sm:$0xf] %vm158_vm2, %v154_v20  ;;  %v155_v23 = vpack.c.bf16 %v139_v21, %v139_v21 }
  0xec   :  { %v227_v28 = vld [vmem:[#allocation2] sm:$0xff]   ;;  %166 = vst.msk [vmem:[#allocation2 + $0x1c] sm:$0xf] %vm158_vm2, %v157_v22 }
  0xed   :  { %v228_v29 = vunpack.c.l.bf16 %v227_v28  ;;  %v314_v52 = vunpack.c.h.bf16 %v227_v28  ;;  %164 = vst.msk [vmem:[#allocation2 + $0x14] sm:$0xf] %vm158_vm2, %v155_v23 }
  0xef   :  { %v229_v30 = vadd.f32 %v228_v29, %v221_v11 }
  0xf1   :  { %v837_v31 = vmul.f32 -1.442695, %v229_v30 }
  0xf3   :  { %974 = vpow2.f32 %v837_v31 }
  0xf4   :  { %v547_v19 = vld [vmem:[#allocation2 + $0x10] sm:$0xff]  }
  0xf5   :  { %v548_v20 = vunpack.c.l.bf16 %v547_v19 }
  0xfd   :  { %v975_v32 = vpop.eup %974 }
  0xfe   :  { %v233_v33 = vadd.f32 1.0, %v975_v32 }
 0x100   :  { %976 = vrcp.f32 %v233_v33 }
 0x10a   :  { %v977_v34 = vpop.eup %976 }
 0x10b   :  { %v256_v40 = vsub.f32 1.0, %v977_v34  ;;  %v262_v42 = vmul.f32 0.0, %v977_v34 }
 0x152   :  { %v247_v35 = vpop.permute.xlu0 %246 }
 0x153   :  { %v249_v36 = vmul.f32 %v977_v34, %v247_v35 }
 0x155   :  { %251 = vrot.lane.b32.xlu1 %v249_v36, %s1024_s3 }
 0x1c7   :  { %v252_v37 = vpop.permute.xlu1 %251 }
 0x1c8   :  { %v254_v38 = vadd.f32 %v252_v37, %v228_v29  ;;  %v391_v29 = vld [vmem:[#allocation2 + $0x8] sm:$0xff]  }
 0x1c9   :  { %v392_v30 = vunpack.c.l.bf16 %v391_v29 }
 0x1ca   :  { %978 = vtanh.f32 %v254_v38 }
 0x1d4   :  { %v979_v39 = vpop.eup %978 }
 0x1d5   :  { %258 = vrot.lane.b32.xlu1 %v979_v39, %s1026_s2 }
 0x247   :  { %v259_v41 = vpop.permute.xlu1 %258 }
 0x248   :  { %v261_v43 = vmul.f32 %v259_v41, %v256_v40 }
 0x24a   :  { %v1122_v44 = vadd.f32 %v262_v42, %v261_v43 }
 0x24c   :  { %v265_v45 = vpack.c.bf16 %v1122_v44, %v1122_v44 }
 0x24e   :  { %267 = vrot.lane.b32.xlu0 %v265_v45, %s1026_s2 }
 0x2c0   :  { %v268_v46 = vpop.permute.xlu0 %267 }
 0x2c1   :  { %910 = vmatmul.mubr.msk.bf16.vlgmr.msra.gmra.mrb[4].mxu1 %vm72_vm1, %v268_v46 }
 0x2c2   :  { %922 = vmatpush3.bf16.msra.mxu1 %v1066_v2  ;;  %925 = vmatprep.mubr.msk.bf16.mxu1 %vm1023_vm0, %v1022_v0 }
 0x2c3   :  { %923 = vmatprep.subr.bf16.mxu1 %v1022_v0 }
 0x2c6   :  { %924 = vmatpush3.bf16.msra.mxu1 %v1075_v4 }
 0x2c7   :  { %937 = vmatprep.subr.bf16.mxu1 %v1022_v0 }
 0x394   :  { %v306_v47 = vpop.f32.mrb[4].mxu1 }
 0x395   :  { %v322_v48 = vadd.f32 %v306_v47, %v1103_v9  ;;  %v911_v49 = vpop.f32.mrb[5].mxu1  ;;  %v315_v53 = vadd.f32 %v314_v52, %v306_v47 }
 0x396   :  { %v309_v50 = vpop.f32.mrb[6].mxu1 }
 0x397   :  { %324 = vrot.lane.b32.xlu1 %v322_v48, %s1024_s3  ;;  %v912_v51 = vpop.f32.mrb[7].mxu1  ;;  %v840_v54 = vmul.f32 -1.442695, %v315_v53 }
 0x399   :  { %980 = vpow2.f32 %v840_v54  ;;  %v470_v54 = vunpack.c.h.bf16 %v391_v29 }
 0x3a3   :  { %v981_v55 = vpop.eup %980 }
 0x3a4   :  { %v319_v56 = vadd.f32 1.0, %v981_v55 }
 0x3a6   :  { %982 = vrcp.f32 %v319_v56 }
 0x3b0   :  { %v983_v57 = vpop.eup %982 }
 0x3b1   :  { %v334_v3 = vsub.f32 1.0, %v983_v57  ;;  %v340_v6 = vmul.f32 %v983_v57, %v1122_v44 }
 0x409   :  { %v325_v58 = vpop.permute.xlu1 %324 }
 0x40a   :  { %v327_v59 = vmul.f32 %v983_v57, %v325_v58 }
 0x40c   :  { %329 = vrot.lane.b32.xlu0 %v327_v59, %s1024_s3 }
 0x47e   :  { %v330_v60 = vpop.permute.xlu0 %329 }
 0x47f   :  { %v332_v61 = vadd.f32 %v330_v60, %v314_v52 }
 0x481   :  { %984 = vtanh.f32 %v332_v61 }
 0x48b   :  { %v985_v1 = vpop.eup %984 }
 0x48c   :  { %336 = vrot.lane.b32.xlu1 %v985_v1, %s1026_s2 }
 0x4fe   :  { %v337_v5 = vpop.permute.xlu1 %336 }
 0x4ff   :  { %v339_v7 = vmul.f32 %v337_v5, %v334_v3 }
 0x501   :  { %v1149_v8 = vadd.f32 %v340_v6, %v339_v7 }
 0x503   :  { %v343_v11 = vpack.c.bf16 %v1149_v8, %v1149_v8 }
 0x505   :  { %345 = vrot.lane.b32.xlu0 %v343_v11, %s1026_s2 }
 0x577   :  { %v346_v24 = vpop.permute.xlu0 %345 }
 0x578   :  { %918 = vmatmul.mubr.msk.bf16.vlgmr.msra.gmra.mrb[8].mxu0 %vm72_vm1, %v346_v24 }
 0x579   :  { %930 = vmatpush3.bf16.msra.mxu0 %v1066_v2  ;;  %933 = vmatprep.mubr.msk.bf16.mxu0 %vm1023_vm0, %v1022_v0 }
 0x57a   :  { %931 = vmatprep.subr.bf16.mxu0 %v1022_v0 }
 0x57d   :  { %932 = vmatpush3.bf16.msra.mxu0 %v1075_v4 }
 0x57e   :  { %945 = vmatprep.subr.bf16.mxu0 %v1022_v0 }
 0x64b   :  { %v384_v10 = vpop.f32.mrb[8].mxu0 }
 0x64c   :  { %v400_v25 = vadd.f32 %v384_v10, %v1103_v9  ;;  %v919_v26 = vpop.f32.mrb[9].mxu0  ;;  %v393_v31 = vadd.f32 %v392_v30, %v384_v10 }
 0x64d   :  { %v387_v27 = vpop.f32.mrb[10].mxu0 }
 0x64e   :  { %402 = vrot.lane.b32.xlu1 %v400_v25, %s1024_s3  ;;  %v920_v28 = vpop.f32.mrb[11].mxu0  ;;  %v842_v32 = vmul.f32 -1.442695, %v393_v31 }
 0x650   :  { %986 = vpow2.f32 %v842_v32 }
 0x65a   :  { %v987_v33 = vpop.eup %986 }
 0x65b   :  { %v397_v34 = vadd.f32 1.0, %v987_v33 }
 0x65d   :  { %988 = vrcp.f32 %v397_v34 }
 0x667   :  { %v989_v35 = vpop.eup %988 }
 0x668   :  { %v412_v41 = vsub.f32 1.0, %v989_v35  ;;  %v418_v43 = vmul.f32 %v989_v35, %v1149_v8 }
 0x6c0   :  { %v403_v36 = vpop.permute.xlu1 %402 }
 0x6c1   :  { %v405_v37 = vmul.f32 %v989_v35, %v403_v36 }
 0x6c3   :  { %407 = vrot.lane.b32.xlu0 %v405_v37, %s1024_s3 }
 0x735   :  { %v408_v38 = vpop.permute.xlu0 %407 }
 0x736   :  { %v410_v39 = vadd.f32 %v408_v38, %v392_v30 }
 0x738   :  { %990 = vtanh.f32 %v410_v39 }
 0x742   :  { %v991_v40 = vpop.eup %990 }
 0x743   :  { %414 = vrot.lane.b32.xlu1 %v991_v40, %s1026_s2 }
 0x7b5   :  { %v415_v42 = vpop.permute.xlu1 %414 }
 0x7b6   :  { %v417_v45 = vmul.f32 %v415_v42, %v412_v41  ;;  %v626_v42 = vunpack.c.h.bf16 %v547_v19 }
 0x7b8   :  { %v1174_v46 = vadd.f32 %v418_v43, %v417_v45 }
 0x7ba   :  { %v421_v47 = vpack.c.bf16 %v1174_v46, %v1174_v46 }
 0x7bc   :  { %423 = vrot.lane.b32.xlu0 %v421_v47, %s1026_s2 }
 0x82e   :  { %v424_v48 = vpop.permute.xlu0 %423 }
 0x82f   :  { %926 = vmatmul.mubr.msk.bf16.vlgmr.msra.gmra.mrb[8].mxu1 %vm72_vm1, %v424_v48 }
 0x830   :  { %938 = vmatpush3.bf16.msra.mxu1 %v1066_v2  ;;  %941 = vmatprep.mubr.msk.bf16.mxu1 %vm1023_vm0, %v1022_v0 }
 0x831   :  { %939 = vmatprep.subr.bf16.mxu1 %v1022_v0 }
 0x834   :  { %940 = vmatpush3.bf16.msra.mxu1 %v1075_v4 }
 0x835   :  { %953 = vmatprep.subr.bf16.mxu1 %v1022_v0 }
 0x902   :  { %v462_v49 = vpop.f32.mrb[8].mxu1 }
 0x903   :  { %v478_v50 = vadd.f32 %v462_v49, %v1103_v9  ;;  %v927_v51 = vpop.f32.mrb[9].mxu1  ;;  %v471_v55 = vadd.f32 %v470_v54, %v462_v49 }
 0x904   :  { %v465_v52 = vpop.f32.mrb[10].mxu1 }
 0x905   :  { %480 = vrot.lane.b32.xlu1 %v478_v50, %s1024_s3  ;;  %v928_v53 = vpop.f32.mrb[11].mxu1  ;;  %v844_v56 = vmul.f32 -1.442695, %v471_v55 }
 0x907   :  { %992 = vpow2.f32 %v844_v56 }
 0x911   :  { %v993_v57 = vpop.eup %992 }
 0x912   :  { %v475_v58 = vadd.f32 1.0, %v993_v57 }
 0x914   :  { %994 = vrcp.f32 %v475_v58 }
 0x91e   :  { %v995_v59 = vpop.eup %994 }
 0x91f   :  { %v490_v3 = vsub.f32 1.0, %v995_v59  ;;  %v496_v6 = vmul.f32 %v995_v59, %v1174_v46 }
 0x977   :  { %v481_v60 = vpop.permute.xlu1 %480 }
 0x978   :  { %v483_v61 = vmul.f32 %v995_v59, %v481_v60 }
 0x97a   :  { %485 = vrot.lane.b32.xlu0 %v483_v61, %s1024_s3 }
 0x9ec   :  { %v486_v62 = vpop.permute.xlu0 %485 }
 0x9ed   :  { %v488_v63 = vadd.f32 %v486_v62, %v470_v54 }
 0x9ef   :  { %996 = vtanh.f32 %v488_v63 }
 0x9f9   :  { %v997_v1 = vpop.eup %996 }
 0x9fa   :  { %492 = vrot.lane.b32.xlu1 %v997_v1, %s1026_s2  ;;  %v703_v1 = vld [vmem:[#allocation2 + $0x18] sm:$0xff]  }
 0xa6c   :  { %v493_v5 = vpop.permute.xlu1 %492 }
 0xa6d   :  { %v495_v7 = vmul.f32 %v493_v5, %v490_v3  ;;  %v704_v3 = vunpack.c.l.bf16 %v703_v1 }
 0xa6f   :  { %v1191_v11 = vadd.f32 %v496_v6, %v495_v7 }
 0xa71   :  { %v499_v12 = vpack.c.bf16 %v1191_v11, %v1191_v11 }
 0xa73   :  { %501 = vrot.lane.b32.xlu0 %v499_v12, %s1026_s2 }
 0xae5   :  { %v502_v13 = vpop.permute.xlu0 %501 }
 0xae6   :  { %934 = vmatmul.mubr.msk.bf16.vlgmr.msra.gmra.mrb[12].mxu0 %vm72_vm1, %v502_v13 }
 0xae7   :  { %946 = vmatpush3.bf16.msra.mxu0 %v1066_v2  ;;  %949 = vmatprep.mubr.msk.bf16.mxu0 %vm1023_vm0, %v1022_v0 }
 0xae8   :  { %947 = vmatprep.subr.bf16.mxu0 %v1022_v0 }
 0xaeb   :  { %948 = vmatpush3.bf16.msra.mxu0 %v1075_v4 }
 0xbb9   :  { %v540_v14 = vpop.f32.mrb[12].mxu0 }
 0xbba   :  { %v556_v15 = vadd.f32 %v540_v14, %v1103_v9  ;;  %v935_v16 = vpop.f32.mrb[13].mxu0  ;;  %v549_v21 = vadd.f32 %v548_v20, %v540_v14 }
 0xbbb   :  { %v543_v17 = vpop.f32.mrb[14].mxu0 }
 0xbbc   :  { %558 = vrot.lane.b32.xlu1 %v556_v15, %s1024_s3  ;;  %v936_v18 = vpop.f32.mrb[15].mxu0  ;;  %v846_v22 = vmul.f32 -1.442695, %v549_v21 }
 0xbbe   :  { %998 = vpow2.f32 %v846_v22 }
 0xbc8   :  { %v999_v23 = vpop.eup %998 }
 0xbc9   :  { %v553_v24 = vadd.f32 1.0, %v999_v23 }
 0xbcb   :  { %1000 = vrcp.f32 %v553_v24 }
 0xbd5   :  { %v1001_v10 = vpop.eup %1000 }
 0xbd6   :  { %v568_v30 = vsub.f32 1.0, %v1001_v10  ;;  %v574_v32 = vmul.f32 %v1001_v10, %v1191_v11 }
 0xc2e   :  { %v559_v25 = vpop.permute.xlu1 %558 }
 0xc2f   :  { %v561_v26 = vmul.f32 %v1001_v10, %v559_v25 }
 0xc31   :  { %563 = vrot.lane.b32.xlu0 %v561_v26, %s1024_s3 }
 0xca3   :  { %v564_v27 = vpop.permute.xlu0 %563 }
 0xca4   :  { %v566_v28 = vadd.f32 %v564_v27, %v548_v20 }
 0xca6   :  { %1002 = vtanh.f32 %v566_v28 }
 0xcb0   :  { %v1003_v29 = vpop.eup %1002 }
 0xcb1   :  { %570 = vrot.lane.b32.xlu1 %v1003_v29, %s1026_s2 }
 0xd23   :  { %v571_v31 = vpop.permute.xlu1 %570 }
 0xd24   :  { %v573_v33 = vmul.f32 %v571_v31, %v568_v30  ;;  %v782_v30 = vunpack.c.h.bf16 %v703_v1 }
 0xd26   :  { %v1207_v34 = vadd.f32 %v574_v32, %v573_v33 }
 0xd28   :  { %v577_v35 = vpack.c.bf16 %v1207_v34, %v1207_v34 }
 0xd2a   :  { %579 = vrot.lane.b32.xlu0 %v577_v35, %s1026_s2 }
 0xd9c   :  { %v580_v36 = vpop.permute.xlu0 %579 }
 0xd9d   :  { %942 = vmatmul.mubr.msk.bf16.vlgmr.msra.gmra.mrb[12].mxu1 %vm72_vm1, %v580_v36 }
 0xd9e   :  { %954 = vmatpush3.bf16.msra.mxu1 %v1066_v2  ;;  %957 = vmatprep.mubr.msk.bf16.mxu1 %vm1023_vm0, %v1022_v0 }
 0xd9f   :  { %955 = vmatprep.subr.bf16.mxu1 %v1022_v0 }
 0xda2   :  { %956 = vmatpush3.bf16.msra.mxu1 %v1075_v4 }
 0xe70   :  { %v618_v37 = vpop.f32.mrb[12].mxu1 }
 0xe71   :  { %v634_v38 = vadd.f32 %v618_v37, %v1103_v9  ;;  %v943_v39 = vpop.f32.mrb[13].mxu1  ;;  %v627_v43 = vadd.f32 %v626_v42, %v618_v37 }
 0xe72   :  { %v621_v40 = vpop.f32.mrb[14].mxu1 }
 0xe73   :  { %636 = vrot.lane.b32.xlu1 %v634_v38, %s1024_s3  ;;  %v944_v41 = vpop.f32.mrb[15].mxu1  ;;  %v848_v45 = vmul.f32 -1.442695, %v627_v43 }
 0xe74   :  { %v342_v41 = vadd.f32 %v1149_v8, %v1122_v44 }
 0xe75   :  { %1004 = vpow2.f32 %v848_v45 }
 0xe7f   :  { %v1005_v2 = vpop.eup %1004 }
 0xe80   :  { %v631_v47 = vadd.f32 1.0, %v1005_v2 }
 0xe82   :  { %1006 = vrcp.f32 %v631_v47 }
 0xe8c   :  { %v1007_v48 = vpop.eup %1006 }
 0xe8d   :  { %v646_v52 = vsub.f32 1.0, %v1007_v48  ;;  %v652_v54 = vmul.f32 %v1007_v48, %v1207_v34 }
 0xee5   :  { %v637_v49 = vpop.permute.xlu1 %636 }
 0xee6   :  { %v639_v0 = vmul.f32 %v1007_v48, %v637_v49 }
 0xee8   :  { %641 = vrot.lane.b32.xlu0 %v639_v0, %s1024_s3 }
 0xf5a   :  { %v642_v4 = vpop.permute.xlu0 %641 }
 0xf5b   :  { %v644_v50 = vadd.f32 %v642_v4, %v626_v42  ;;  %v420_v42 = vadd.f32 %v1174_v46, %v342_v41 }
 0xf5d   :  { %1008 = vtanh.f32 %v644_v50  ;;  %v498_v43 = vadd.f32 %v1191_v11, %v420_v42 }
 0xf5f   :  { %v576_v45 = vadd.f32 %v1207_v34, %v498_v43 }
 0xf67   :  { %v1009_v51 = vpop.eup %1008 }
 0xf68   :  { %648 = vrot.lane.b32.xlu1 %v1009_v51, %s1026_s2 }
 0xfda   :  { %v649_v53 = vpop.permute.xlu1 %648 }
 0xfdb   :  { %v651_v55 = vmul.f32 %v649_v53, %v646_v52 }
 0xfdd   :  { %v1223_v56 = vadd.f32 %v652_v54, %v651_v55 }
 0xfdf   :  { %v655_v57 = vpack.c.bf16 %v1223_v56, %v1223_v56  ;;  %v654_v48 = vadd.f32 %v1223_v56, %v576_v45 }
 0xfe1   :  { %657 = vrot.lane.b32.xlu0 %v655_v57, %s1026_s2 }
0x1053   :  { %v658_v58 = vpop.permute.xlu0 %657 }
0x1054   :  { %950 = vmatmul.mubr.msk.bf16.vlgmr.msra.gmra.mrb[16].mxu0 %vm72_vm1, %v658_v58 }
0x1127   :  { %v696_v59 = vpop.f32.mrb[16].mxu0 }
0x1128   :  { %v712_v60 = vadd.f32 %v696_v59, %v1103_v9  ;;  %v951_v61 = vpop.f32.mrb[17].mxu0  ;;  %v705_v5 = vadd.f32 %v704_v3, %v696_v59 }
0x1129   :  { %v699_v62 = vpop.f32.mrb[18].mxu0 }
0x112a   :  { %714 = vrot.lane.b32.xlu1 %v712_v60, %s1024_s3  ;;  %v952_v63 = vpop.f32.mrb[19].mxu0  ;;  %v850_v6 = vmul.f32 -1.442695, %v705_v5 }
0x112c   :  { %1010 = vpow2.f32 %v850_v6 }
0x1136   :  { %v1011_v7 = vpop.eup %1010 }
0x1137   :  { %v709_v12 = vadd.f32 1.0, %v1011_v7 }
0x1139   :  { %1012 = vrcp.f32 %v709_v12 }
0x1143   :  { %v1013_v13 = vpop.eup %1012 }
0x1144   :  { %v724_v19 = vsub.f32 1.0, %v1013_v13  ;;  %v730_v21 = vmul.f32 %v1013_v13, %v1223_v56 }
0x119c   :  { %v715_v14 = vpop.permute.xlu1 %714 }
0x119d   :  { %v717_v15 = vmul.f32 %v1013_v13, %v715_v14 }
0x119f   :  { %719 = vrot.lane.b32.xlu0 %v717_v15, %s1024_s3 }
0x1211   :  { %v720_v16 = vpop.permute.xlu0 %719 }
0x1212   :  { %v722_v17 = vadd.f32 %v720_v16, %v704_v3 }
0x1214   :  { %1014 = vtanh.f32 %v722_v17 }
0x121e   :  { %v1015_v18 = vpop.eup %1014 }
0x121f   :  { %726 = vrot.lane.b32.xlu1 %v1015_v18, %s1026_s2 }
0x1291   :  { %v727_v20 = vpop.permute.xlu1 %726 }
0x1292   :  { %v729_v22 = vmul.f32 %v727_v20, %v724_v19 }
0x1294   :  { %v731_v23 = vadd.f32 %v730_v21, %v729_v22 }
0x1296   :  { %v733_v24 = vpack.c.bf16 %v731_v23, %v731_v23  ;;  %v732_v50 = vadd.f32 %v731_v23, %v654_v48 }
0x1298   :  { %735 = vrot.lane.b32.xlu0 %v733_v24, %s1026_s2 }
0x130a   :  { %v736_v10 = vpop.permute.xlu0 %735 }
0x130b   :  { %958 = vmatmul.mubr.msk.bf16.vlgmr.msra.gmra.mrb[16].mxu1 %vm72_vm1, %v736_v10 }
0x13de   :  { %v774_v25 = vpop.f32.mrb[16].mxu1 }
0x13df   :  { %v790_v26 = vadd.f32 %v774_v25, %v1103_v9  ;;  %v959_v27 = vpop.f32.mrb[17].mxu1  ;;  %v783_v31 = vadd.f32 %v782_v30, %v774_v25 }
0x13e0   :  { %v777_v28 = vpop.f32.mrb[18].mxu1 }
0x13e1   :  { %792 = vrot.lane.b32.xlu1 %v790_v26, %s1024_s3  ;;  %v960_v29 = vpop.f32.mrb[19].mxu1  ;;  %v852_v32 = vmul.f32 -1.442695, %v783_v31 }
0x13e3   :  { %1016 = vpow2.f32 %v852_v32 }
0x13ed   :  { %v1017_v33 = vpop.eup %1016 }
0x13ee   :  { %v787_v35 = vadd.f32 1.0, %v1017_v33 }
0x13f0   :  { %1018 = vrcp.f32 %v787_v35 }
0x13fa   :  { %v1019_v36 = vpop.eup %1018 }
0x13fb   :  { %v802_v2 = vsub.f32 1.0, %v1019_v36  ;;  %v808_v49 = vmul.f32 %v1019_v36, %v731_v23 }
0x1453   :  { %v793_v37 = vpop.permute.xlu1 %792 }
0x1454   :  { %v795_v38 = vmul.f32 %v1019_v36, %v793_v37 }
0x1456   :  { %797 = vrot.lane.b32.xlu0 %v795_v38, %s1024_s3 }
0x14c8   :  { %v798_v39 = vpop.permute.xlu0 %797 }
0x14c9   :  { %v800_v40 = vadd.f32 %v798_v39, %v782_v30 }
0x14cb   :  { %1020 = vtanh.f32 %v800_v40 }
0x14d5   :  { %v1021_v9 = vpop.eup %1020 }
0x14d6   :  { %804 = vrot.lane.b32.xlu1 %v1021_v9, %s1026_s2 }
0x1548   :  { %v805_v47 = vpop.permute.xlu1 %804 }
0x1549   :  { %v807_v0 = vmul.f32 %v805_v47, %v802_v2 }
0x154b   :  { %v809_v4 = vadd.f32 %v808_v49, %v807_v0 }
0x154d   :  { %v810_v51 = vadd.f32 %v809_v4, %v732_v50 }
0x154f   :  { %v854_v52 = vpack.c.bf16 %v810_v51, %v810_v51 }
0x1551   :  { %815 = vrot.lane.b32.xlu0 %v854_v52, %s1026_s2 }
0x15c3   :  { %v816_v44 = vpop.permute.xlu0 %815 }
0x15c4   :  { %819 = vst.msk [vmem:[%s1255_s5] sm:$0xf] %vm818_vm3, %v816_v44 }

// kernel: set_transformer_forward.3
= control target key start
LH: loop header
LB: loop body
LE: loop exit
PB: predicated region body
PF: predicated region fallthrough
CT: control target
= control target key end

     0   :  { %s4025_s17 = smov 0   ;;  %s4027_s18 = smov 0   ;;  %s4577_s0 = inlined_call_operand.vmem [shape: bf16[2,4,32], index: 0, kind: input, shape index: {}]   ;;  %s4578_s1 = inlined_call_operand.vmem [shape: bf16[8,32], index: 1, kind: input, shape index: {}]   ;;  %s4579_s2 = inlined_call_operand.vmem [shape: bf16[8,32], index: 2, kind: input, shape index: {}]   ;;  %s4580_s3 = inlined_call_operand.vmem [shape: bf16[4,32,32], index: 3, kind: input, shape index: {}]   ;;  %s4581_s4 = inlined_call_operand.vmem [shape: f32[4,1,32], index: 4, kind: input, shape index: {}]   ;;  %s4582_s5 = inlined_call_operand.vmem [shape: bf16[4,32,64], index: 5, kind: input, shape index: {}]   ;;  %s4583_s6 = inlined_call_operand.vmem [shape: f32[4,1,64], index: 6, kind: input, shape index: {}]   ;;  %s4584_s7 = inlined_call_operand.vmem [shape: bf16[4,32,32], index: 7, kind: input, shape index: {}]   ;;  %s4585_s8 = inlined_call_operand.vmem [shape: f32[4,1,32], index: 8, kind: input, shape index: {}]   ;;  %s4586_s9 = inlined_call_operand.vmem [shape: bf16[32,128], index: 9, kind: input, shape index: {}]   ;;  %s4587_s10 = inlined_call_operand.vmem [shape: f32[1,128], index: 10, kind: input, shape index: {}]   ;;  %s4588_s11 = inlined_call_operand.vmem [shape: bf16[2,4,128], index: 11, kind: output, shape index: {}]  }
   0x1   :  { %s4029_s19 = smov 0  }
   0x2 LB: > { %s33_s20 = sadd.s32 1, %s3947_s18  ;;  %p3270_p0 = scmp.ge.s32.totalorder %s3951_s19, 1  ;;  %s3951_s19 = sphi %s4029_s19, %s21_s19   ;;  %s3947_s18 = sphi %s4027_s18, %s4612_s18   ;;  %s3943_s17 = sphi %s4025_s17, %s4611_s17  }
   0x3   : > { %p35_p1 = scmp.ge.s32.totalorder %s33_s20, 2  ;;  %p367_p2 = scmp.lt.s32.totalorder %s3951_s19, 3 }
   0x5   : > { %s4614_s20 = smov (%p35_p1, %s33_s20), 0  ;;  %p368_p3 = pnand %p3270_p0, %p367_p2 }
   0x6   : > { %v3839_v0 = vld [vmem:[%s4582_s5] sm:$0xff] (!%p368_p3)   ;;  %v3953_v1 = vmov (!%p368_p3), 0.0   ;;  %v3841_v3 = vld [vmem:[%s4582_s5 + $0x8] sm:$0xff] (!%p368_p3)   ;;  %vm3954_vm0 = vmmov (!%p368_p3), 0   ;;  %p415_p4 = scmp.lt.s32.totalorder (!%p368_p3), %s3943_s17, 1  ;;  %vm474_vm1 = vcmask (!%p368_p3), 261120  }
   0x7   : > { %371 = sbr.rel (%p368_p3) target bundleno = 6077 (0x17bd), region = 64  ;;  %3515 = vmatprep.subr.bf16.mxu1 (!%p368_p3), %v3953_v1  ;;  %3507 = vmatprep.subr.bf16.mxu0 (!%p368_p3), %v3953_v1  ;;  %v3840_v2 = vld [vmem:[%s4580_s3] sm:$0xff] (!%p368_p3)   ;;  %v3842_v4 = vld [vmem:[%s4580_s3 + $0x8] sm:$0xff] (!%p368_p3)   ;;  %vm581_vm2 = vcmask (!%p368_p3), 64512   ;;  %s3955_s24 = smov (!%p368_p3), 112   ;;  %vm628_vm3 = vcmask (!%p368_p3), 31744  }
   0x8   : > { %3516 = vmatpush3.bf16.msra.mxu1 (!%p368_p3), %v3839_v0  ;;  %3519 = vmatprep.mubr.msk.bf16.mxu1 (!%p368_p3), %vm3954_vm0, %v3953_v1  ;;  %v439_v5 = vld [vmem:[%s4578_s1] sm:$0xf] (!%p368_p3)  ;;  %s3956_s25 = smov (!%p368_p3), 120   ;;  %s3957_s26 = smov (!%p368_p3), 104   ;;  %vm647_vm4 = vcmask (!%p368_p3), 1041408   ;;  %vm1035_vm5 = vcmask (!%p368_p3), 130048  }
   0x9   : > { %3517 = vmatprep.subr.bf16.mxu1 (!%p368_p3), %v3953_v1  ;;  %3508 = vmatpush3.bf16.msra.mxu0 (!%p368_p3), %v3840_v2  ;;  %v3277_v7 = vld [vmem:[%s4583_s6] ss:$0 sm:$0xff] (!%p368_p3)  ;;  %s4602_s27 = smov (!%p368_p3), 96   ;;  %s4600_s28 = smov (!%p368_p3), 80   ;;  %vm1037_vm6 = vcmask (!%p368_p3), 195584   ;;  %vm1293_vm7 = vcmask (!%p368_p3), 60416  }
   0xa   : > { %3509 = vmatprep.subr.bf16.mxu0 (!%p368_p3), %v3953_v1  ;;  %3511 = vmatprep.mubr.msk.bf16.mxu0 (!%p368_p3), %vm3954_vm0, %v3953_v1  ;;  %v3273_v8 = vld [vmem:[%s4581_s4] ss:$0 sm:$0xff] (!%p368_p3)  ;;  %s4598_s29 = smov (!%p368_p3), 72   ;;  %s4596_s30 = smov (!%p368_p3), 88   ;;  %vm1312_vm8 = vcmask (!%p368_p3), 1043456   ;;  %vm3093_vm9 = vcmask (!%p368_p3), 254976  }
   0xb   : > { %s4592_s22 = smov (!%p368_p3), 16   ;;  %s4590_s23 = smov (!%p368_p3), 24  }
   0xc   : > { %3518 = vmatpush3.bf16.msra.mxu1 (!%p368_p3), %v3841_v3  ;;  %s4603_s16 = smov (!%p368_p3), 8   ;;  %s4607_s21 = smov (!%p368_p3), 72  }
   0xd   : > { %3510 = vmatpush3.bf16.msra.mxu0 (!%p368_p3), %v3842_v4  ;;  %3529 = vmatprep.subr.bf16.mxu1 (!%p368_p3), %v3953_v1 }
   0xe   : > { %s4616_s17 = smov (!%p415_p4, %s3943_s17), 1  ;;  %3523 = vmatprep.subr.bf16.mxu0 %v3953_v1 }
   0xf   : > { %s4589_s12 = sshll.u32 %s4616_s17, 1  ;;  %s4610_s13 = sshll.u32 %s4616_s17, 1 }
  0x10   : > { %s418_s15 = scalar_lea.vmem %s4577_s0, %s4589_s12  ;;  %3512 = vmatmul.mubr.msk.bf16.vlgmr.msra.gmra.mrb[0].mxu0 %vm474_vm1, %v439_v5 }
  0x11   : > { %v4075_v6 = vld [vmem:[%s418_s15] sm:$0x3]  ;;  %3525 = vmatprep.mubr.msk.bf16.mxu0 %vm3954_vm0, %v3953_v1  ;;  %s4594_s15 = smov 8  }
  0x12   : > { %3520 = vmatmul.mubr.msk.bf16.vlgmr.msra.gmra.mrb[0].mxu1 %vm474_vm1, %v4075_v6 }
  0x13   : > { %3531 = vmatprep.mubr.msk.bf16.mxu1 %vm3954_vm0, %v3953_v1 }
  0xe3   : > { %v512_v12 = vpop.f32.mrb[0].mxu0 }
  0xe4   : > { %v4091_v14 = vadd.f32 %v3273_v8, %v512_v12  ;;  %v3513_v15 = vpop.f32.mrb[1].mxu0 }
  0xe5   : > { %v573_v9 = vpop.f32.mrb[0].mxu1  ;;  %v515_v18 = vpop.f32.mrb[2].mxu0 }
  0xe6   : > { %v574_v10 = vadd.f32 %v3277_v7, %v573_v9  ;;  %v3521_v11 = vpop.f32.mrb[1].mxu1  ;;  %v3514_v19 = vpop.f32.mrb[3].mxu0  ;;  %v579_v20 = vpack.c.bf16 %v4091_v14, %v4091_v14 }
  0xe7   : > { %v576_v13 = vpop.f32.mrb[2].mxu1 }
  0xe8   : > { %v4093_v16 = vpack.c.bf16 %v574_v10, %v574_v10  ;;  %v3522_v17 = vpop.f32.mrb[3].mxu1 }
  0xea   : > { %804 = vrot.lane.b32.xlu1 %v4093_v16, %s3955_s24  ;;  %694 = vrot.lane.b32.xlu0 %v4093_v16, %s3956_s25  ;;  %v586_v21 = vsel %vm581_vm2, %v4093_v16, 0 }
  0xeb   : > { %3524 = vmatpush3.bf16.xpose.msra.mxu0 %v586_v21 }
  0xec   : > { %3535 = vmatprep.subr.bf16.mxu0 %v3953_v1 }
  0xee   : > { %802 = vrot.lane.b32.xlu1 %v579_v20, %s3955_s24  ;;  %692 = vrot.lane.b32.xlu0 %v579_v20, %s3956_s25 }
  0xf2   : > { %912 = vrot.lane.b32.xlu1 %v579_v20, %s3957_s26  ;;  %914 = vrot.lane.b32.xlu0 %v4093_v16, %s3957_s26 }
  0xf3   : > { %3526 = vmatmul.mubr.msk.bf16.vlgmr.msra.gmra.mrb[4].mxu0 %vm581_vm2, %v579_v20 }
  0xf4   : > { %3537 = vmatprep.mubr.msk.bf16.mxu0 %vm3954_vm0, %v3953_v1 }
 0x15c   : > { %v695_v22 = vpop.permute.xlu0 %694  ;;  %v805_v24 = vpop.permute.xlu1 %804 }
 0x15d   : > { %v700_v23 = vsel %vm581_vm2, %v695_v22, 0  ;;  %v810_v26 = vsel %vm581_vm2, %v805_v24, 0 }
 0x15e   : > { %3536 = vmatpush3.bf16.xpose.msra.mxu0 %v700_v23 }
 0x15f   : > { %3547 = vmatprep.subr.bf16.mxu0 %v3953_v1 }
 0x160   : > { %v693_v25 = vpop.permute.xlu0 %692  ;;  %v803_v28 = vpop.permute.xlu1 %802 }
 0x164   : > { %v915_v27 = vpop.permute.xlu0 %914  ;;  %v913_v30 = vpop.permute.xlu1 %912 }
 0x165   : > { %3538 = vmatmul.mubr.msk.bf16.vlgmr.msra.gmra.mrb[8].mxu0 %vm581_vm2, %v693_v25  ;;  %v920_v29 = vsel %vm581_vm2, %v915_v27, 0 }
 0x166   : > { %3548 = vmatpush3.bf16.xpose.msra.mxu0 %v810_v26  ;;  %3549 = vmatprep.mubr.msk.bf16.mxu0 %vm3954_vm0, %v3953_v1 }
 0x167   : > { %3559 = vmatprep.subr.bf16.mxu0 %v3953_v1 }
 0x16d   : > { %3550 = vmatmul.mubr.msk.bf16.vlgmr.msra.gmra.mrb[12].mxu0 %vm581_vm2, %v803_v28 }
 0x16e   : > { %3560 = vmatpush3.bf16.xpose.msra.mxu0 %v920_v29  ;;  %3561 = vmatprep.mubr.msk.bf16.mxu0 %vm3954_vm0, %v3953_v1 }
 0x16f   : > { %3571 = vmatprep.subr.bf16.mxu0 %v3953_v1 }
 0x175   : > { %3562 = vmatmul.mubr.msk.bf16.vlgmr.msra.gmra.mrb[16].mxu0 %vm581_vm2, %v913_v30 }
 0x176   : > { %3575 = vmatprep.mubr.msk.bf16.mxu0 %vm3954_vm0, %v3953_v1 }
 0x1c6   : > { %v622_v31 = vpop.f32.mrb[4].mxu0 }
 0x1c7   : > { %v3527_v32 = vpop.f32.mrb[5].mxu0  ;;  %v629_v33 = vsel %vm628_vm3, %v622_v31, -inf }
 0x1c8   : > { %630 = vmax.xlane.f32.xlu0 %v629_v33  ;;  %v625_v34 = vpop.f32.mrb[6].mxu0 }
 0x1c9   : > { %v3528_v35 = vpop.f32.mrb[7].mxu0 }
 0x238   : > { %v736_v36 = vpop.f32.mrb[8].mxu0 }
 0x239   : > { %v3539_v37 = vpop.f32.mrb[9].mxu0  ;;  %v742_v38 = vsel %vm628_vm3, %v736_v36, -inf }
 0x23a   : > { %743 = vmax.xlane.f32.xlu1 %v742_v38  ;;  %v739_v39 = vpop.f32.mrb[10].mxu0  ;;  %v3843_v38 = vld [vmem:[%s4584_s7] sm:$0xff]  }
 0x23b   : > { %v3540_v40 = vpop.f32.mrb[11].mxu0  ;;  %3572 = vmatpush3.bf16.msra.mxu0 %v3843_v38 }
 0x23c   : > { %3573 = vmatprep.subr.bf16.mxu0 %v3953_v1 }
 0x240   : > { %v846_v41 = vpop.f32.mrb[12].mxu0 }
 0x241   : > { %v3551_v42 = vpop.f32.mrb[13].mxu0  ;;  %v852_v43 = vsel %vm628_vm3, %v846_v41, -inf }
 0x242   : > { %853 = vmax.xlane.f32.xlu0 %v852_v43  ;;  %v849_v44 = vpop.f32.mrb[14].mxu0  ;;  %v3844_v43 = vld [vmem:[%s4584_s7 + $0x8] sm:$0xff]  }
 0x243   : > { %v3552_v45 = vpop.f32.mrb[15].mxu0  ;;  %3574 = vmatpush3.bf16.msra.mxu0 %v3844_v43 }
 0x244   : > { %3587 = vmatprep.subr.bf16.mxu0 %v3953_v1 }
 0x248   : > { %v956_v46 = vpop.f32.mrb[16].mxu0 }
 0x249   : > { %v3563_v47 = vpop.f32.mrb[17].mxu0  ;;  %v962_v48 = vsel %vm628_vm3, %v956_v46, -inf }
 0x24a   : > { %963 = vmax.xlane.f32.xlu0 %v962_v48  ;;  %v959_v49 = vpop.f32.mrb[18].mxu0 }
 0x24b   : > { %v3564_v50 = vpop.f32.mrb[19].mxu0 }
 0x255   : > { %v631_v51 = vpop.xlane.xlu0 %630 }
 0x256   : > { %v632_v52 = vsub.f32 %v622_v31, %v631_v51 }
 0x258   : > { %v633_v53 = vmul.f32 1.442695, %v632_v52 }
 0x25a   : > { %3865 = vpow2.f32 %v633_v53 }
 0x264   : > { %v3866_v54 = vpop.eup %3865 }
 0x265   : > { %v635_v55 = vsel %vm628_vm3, %v3866_v54, 0.0 }
 0x266   : > { %636 = vadd.xlane.f32.xlu1 %v635_v55 }
 0x277   : > { %642 = vrot.lane.b32.xlu1 %v4093_v16, %s4602_s27 }
 0x2c7   : > { %v744_v56 = vpop.xlane.xlu1 %743 }
 0x2c8   : > { %v745_v57 = vsub.f32 %v736_v36, %v744_v56 }
 0x2ca   : > { %v746_v58 = vmul.f32 1.442695, %v745_v57 }
 0x2cc   : > { %3867 = vpow2.f32 %v746_v58 }
 0x2cf   : > { %v854_v59 = vpop.xlane.xlu0 %853 }
 0x2d0   : > { %v855_v60 = vsub.f32 %v846_v41, %v854_v59 }
 0x2d2   : > { %v856_v61 = vmul.f32 1.442695, %v855_v60  ;;  %v3845_v60 = vld [vmem:[%s4580_s3 + $0x10] sm:$0xff]  }
 0x2d4   : > { %3869 = vpow2.f32 %v856_v61  ;;  %v3846_v61 = vld [vmem:[%s4582_s5 + $0x10] sm:$0xff]  }
 0x2d6   : > { %v3868_v62 = vpop.eup %3867 }
 0x2d7   : > { %v964_v63 = vpop.xlane.xlu0 %963  ;;  %v748_v0 = vsel %vm628_vm3, %v3868_v62, 0.0 }
 0x2d8   : > { %v965_v2 = vsub.f32 %v956_v46, %v964_v63  ;;  %749 = vadd.xlane.f32.xlu0 %v748_v0  ;;  %v3289_v63 = vld [vmem:[%s4585_s8] ss:$0 sm:$0xff] }
 0x2da   : > { %v966_v3 = vmul.f32 1.442695, %v965_v2 }
 0x2dc   : > { %3871 = vpow2.f32 %v966_v3 }
 0x2de   : > { %v3870_v4 = vpop.eup %3869 }
 0x2df   : > { %v858_v5 = vsel %vm628_vm3, %v3870_v4, 0.0 }
 0x2e0   : > { %859 = vadd.xlane.f32.xlu1 %v858_v5 }
 0x2e6   : > { %v3872_v7 = vpop.eup %3871 }
 0x2e7   : > { %v968_v8 = vsel %vm628_vm3, %v3872_v7, 0.0 }
 0x2e8   : > { %969 = vadd.xlane.f32.xlu0 %v968_v8 }
 0x2f1   : > { %864 = vrot.lane.b32.xlu1 %v4093_v16, %s4600_s28 }
 0x2f3   : > { %v637_v9 = vpop.xlane.xlu1 %636 }
 0x2f4   : > { %3873 = vrcp.f32 %v637_v9 }
 0x2f5   : > { %974 = vrot.lane.b32.xlu1 %v4093_v16, %s4598_s29 }
 0x2f7   : > { %v643_v10 = vpop.permute.xlu1 %642 }
 0x2f8   : > { %v649_v11 = vsel %vm647_vm4, %v643_v10, 0 }
 0x2f9   : > { %3530 = vmatpush3.bf16.msra.mxu1 %v649_v11 }
 0x2fa   : > { %3541 = vmatprep.subr.bf16.mxu1 %v3953_v1 }
 0x2fe   : > { %v3874_v12 = vpop.eup %3873  ;;  %754 = vrot.lane.b32.xlu0 %v4093_v16, %s4596_s30 }
 0x2ff   : > { %v639_v13 = vmul.f32 %v3874_v12, %v3866_v54 }
 0x301   : > { %v640_v15 = vpack.c.bf16 %v639_v13, %v639_v13 }
 0x303   : > { %3532 = vmatmul.mubr.msk.bf16.vlgmr.msra.gmra.mrb[4].mxu1 %vm628_vm3, %v640_v15 }
 0x304   : > { %3543 = vmatprep.mubr.msk.bf16.mxu1 %vm3954_vm0, %v3953_v1 }
 0x365   : > { %v750_v17 = vpop.xlane.xlu0 %749 }
 0x366   : > { %3875 = vrcp.f32 %v750_v17 }
 0x36d   : > { %v860_v18 = vpop.xlane.xlu1 %859 }
 0x36e   : > { %3877 = vrcp.f32 %v860_v18  ;;  %v3312_v18 = vld [vmem:[%s4583_s6 + $0x1] ss:$0 sm:$0xff] }
 0x370   : > { %v3876_v19 = vpop.eup %3875 }
 0x371   : > { %v752_v21 = vmul.f32 %v3876_v19, %v3868_v62  ;;  %v865_v24 = vpop.permute.xlu1 %864  ;;  %v3848_v62 = vld [vmem:[%s4582_s5 + $0x18] sm:$0xff]  }
 0x372   : > { %v870_v26 = vsel %vm647_vm4, %v865_v24, 0 }
 0x373   : > { %v753_v16 = vpack.c.bf16 %v752_v21, %v752_v21 }
 0x375   : > { %v970_v20 = vpop.xlane.xlu0 %969  ;;  %v975_v28 = vpop.permute.xlu1 %974 }
 0x376   : > { %3879 = vrcp.f32 %v970_v20  ;;  %v980_v31 = vsel %vm647_vm4, %v975_v28, 0 }
 0x378   : > { %v3878_v25 = vpop.eup %3877 }
 0x379   : > { %v755_v22 = vpop.permute.xlu0 %754  ;;  %v862_v27 = vmul.f32 %v3878_v25, %v3870_v4 }
 0x37a   : > { %v760_v23 = vsel %vm647_vm4, %v755_v22, 0 }
 0x37b   : > { %3542 = vmatpush3.bf16.msra.mxu1 %v760_v23  ;;  %v863_v29 = vpack.c.bf16 %v862_v27, %v862_v27 }
 0x37c   : > { %3553 = vmatprep.subr.bf16.mxu1 %v3953_v1 }
 0x37e   : > { %3544 = vmatmul.mubr.msk.bf16.vlgmr.msra.gmra.mrb[8].mxu1 %vm628_vm3, %v753_v16 }
 0x37f   : > { %3554 = vmatpush3.bf16.msra.mxu1 %v870_v26  ;;  %3555 = vmatprep.mubr.msk.bf16.mxu1 %vm3954_vm0, %v3953_v1 }
 0x380   : > { %3565 = vmatprep.subr.bf16.mxu1 %v3953_v1  ;;  %v3880_v30 = vpop.eup %3879 }
 0x381   : > { %v972_v32 = vmul.f32 %v3880_v30, %v3872_v7 }
 0x383   : > { %v973_v33 = vpack.c.bf16 %v972_v32, %v972_v32 }
 0x386   : > { %3556 = vmatmul.mubr.msk.bf16.vlgmr.msra.gmra.mrb[12].mxu1 %vm628_vm3, %v863_v29 }
 0x387   : > { %3566 = vmatpush3.bf16.msra.mxu1 %v980_v31  ;;  %3567 = vmatprep.mubr.msk.bf16.mxu1 %vm3954_vm0, %v3953_v1 }
 0x388   : > { %3579 = vmatprep.subr.bf16.mxu1 %v3953_v1 }
 0x38e   : > { %3568 = vmatmul.mubr.msk.bf16.vlgmr.msra.gmra.mrb[16].mxu1 %vm628_vm3, %v973_v33 }
 0x38f   : > { %3583 = vmatprep.mubr.msk.bf16.mxu1 %vm3954_vm0, %v3953_v1  ;;  %3580 = vmatpush3.bf16.msra.mxu1 %v3845_v60 }
 0x390   : > { %3581 = vmatprep.subr.bf16.mxu1 %v3953_v1 }
 0x3d6   : > { %v685_v34 = vpop.f32.mrb[4].mxu1 }
 0x3d7   : > { %v3533_v35 = vpop.f32.mrb[5].mxu1 }
 0x3d8   : > { %v688_v36 = vpop.f32.mrb[6].mxu1 }
 0x3d9   : > { %v3534_v37 = vpop.f32.mrb[7].mxu1 }
 0x451   : > { %v796_v39 = vpop.f32.mrb[8].mxu1 }
 0x452   : > { %1023 = vrot.lane.b32.xlu0 %v796_v39, %s4594_s15  ;;  %v3545_v40 = vpop.f32.mrb[9].mxu1  ;;  %s4604_s15 = smov 16  }
 0x453   : > { %v799_v41 = vpop.f32.mrb[10].mxu1 }
 0x454   : > { %v3546_v42 = vpop.f32.mrb[11].mxu1 }
 0x459   : > { %v906_v44 = vpop.f32.mrb[12].mxu1 }
 0x45a   : > { %1027 = vrot.lane.b32.xlu1 %v906_v44, %s4592_s22  ;;  %v3557_v45 = vpop.f32.mrb[13].mxu1  ;;  %s4605_s22 = smov 24  }
 0x45b   : > { %v909_v46 = vpop.f32.mrb[14].mxu1 }
 0x45c   : > { %v3558_v47 = vpop.f32.mrb[15].mxu1 }
 0x461   : > { %v1016_v48 = vpop.f32.mrb[16].mxu1 }
 0x462   : > { %1031 = vrot.lane.b32.xlu0 %v1016_v48, %s4590_s23  ;;  %v3569_v49 = vpop.f32.mrb[17].mxu1  ;;  %s4606_s23 = smov 80  }
 0x463   : > { %v1019_v50 = vpop.f32.mrb[18].mxu1 }
 0x464   : > { %v3570_v51 = vpop.f32.mrb[19].mxu1 }
 0x4c4   : > { %v1024_v52 = vpop.permute.xlu0 %1023 }
 0x4c5   : > { %v1034_v54 = vsel %vm581_vm2, %v685_v34, %v1024_v52 }
 0x4cc   : > { %v1028_v53 = vpop.permute.xlu1 %1027 }
 0x4cd   : > { %v1036_v55 = vsel %vm1035_vm5, %v1034_v54, %v1028_v53 }
 0x4d4   : > { %v1032_v56 = vpop.permute.xlu0 %1031 }
 0x4d5   : > { %v1038_v57 = vsel %vm1037_vm6, %v1036_v55, %v1032_v56 }
 0x4d6   : > { %v1039_v58 = vadd.f32 %v1038_v57, %v4091_v14  ;;  %v3847_v14 = vld [vmem:[%s4580_s3 + $0x18] sm:$0xff]  }
 0x4d7   : > { %3582 = vmatpush3.bf16.msra.mxu1 %v3847_v14 }
 0x4d8   : > { %v1040_v59 = vpack.c.bf16 %v1039_v58, %v1039_v58  ;;  %3595 = vmatprep.subr.bf16.mxu1 %v3953_v1 }
 0x4da   : > { %3576 = vmatmul.mubr.msk.bf16.vlgmr.msra.gmra.mrb[20].mxu0 %vm474_vm1, %v1040_v59  ;;  %3584 = vmatmul.mubr.msk.bf16.vlgmr.msra.gmra.mrb[20].mxu1 %vm474_vm1, %v4075_v6  ;;  %v3308_v6 = vld [vmem:[%s4581_s4 + $0x1] ss:$0 sm:$0xff] }
 0x4db   : > { %3591 = vmatprep.mubr.msk.bf16.mxu0 %vm3954_vm0, %v3953_v1  ;;  %3588 = vmatpush3.bf16.msra.mxu0 %v3846_v61 }
 0x4dc   : > { %3589 = vmatprep.subr.bf16.mxu0 %v3953_v1  ;;  %3597 = vmatprep.mubr.msk.bf16.mxu1 %vm3954_vm0, %v3953_v1 }
 0x4df   : > { %3590 = vmatpush3.bf16.msra.mxu0 %v3848_v62 }
 0x4e0   : > { %3601 = vmatprep.subr.bf16.mxu0 %v3953_v1 }
 0x5ad   : > { %v1096_v0 = vpop.f32.mrb[20].mxu0  ;;  %v1178_v10 = vpop.f32.mrb[20].mxu1 }
 0x5ae   : > { %v1097_v2 = vadd.f32 %v3289_v63, %v1096_v0  ;;  %v3577_v3 = vpop.f32.mrb[21].mxu0  ;;  %v4210_v11 = vadd.f32 %v3308_v6, %v1178_v10  ;;  %v3585_v12 = vpop.f32.mrb[21].mxu1 }
 0x5af   : > { %v1099_v4 = vpop.f32.mrb[22].mxu0  ;;  %v1181_v13 = vpop.f32.mrb[22].mxu1 }
 0x5b0   : > { %v1102_v5 = vmax.f32 %v1097_v2, 0.0  ;;  %v3578_v7 = vpop.f32.mrb[23].mxu0  ;;  %v1245_v15 = vpack.c.bf16 %v4210_v11, %v4210_v11  ;;  %v3586_v17 = vpop.f32.mrb[23].mxu1 }
 0x5b2   : > { %v1103_v8 = vadd.f32 %v1102_v5, %v1039_v58  ;;  %1357 = vrot.lane.b32.xlu0 %v1245_v15, %s3956_s25 }
 0x5b4   : > { %v1104_v9 = vpack.c.bf16 %v1103_v8, %v1103_v8 }
 0x5b6   : > { %3592 = vmatmul.mubr.msk.bf16.vlgmr.msra.gmra.mrb[24].mxu0 %vm474_vm1, %v1104_v9  ;;  %1467 = vrot.lane.b32.xlu0 %v1245_v15, %s3955_s24 }
 0x5b7   : > { %3603 = vmatprep.mubr.msk.bf16.mxu0 %vm3954_vm0, %v3953_v1 }
 0x5ba   : > { %1577 = vrot.lane.b32.xlu0 %v1245_v15, %s3957_s26 }
 0x624   : > { %v1358_v28 = vpop.permute.xlu0 %1357 }
 0x628   : > { %v1468_v31 = vpop.permute.xlu0 %1467 }
 0x62c   : > { %v1578_v33 = vpop.permute.xlu0 %1577 }
 0x689   : > { %v1239_v19 = vpop.f32.mrb[24].mxu0 }
 0x68a   : > { %v1240_v20 = vadd.f32 %v3312_v18, %v1239_v19  ;;  %v3593_v21 = vpop.f32.mrb[25].mxu0 }
 0x68b   : > { %v1242_v22 = vpop.f32.mrb[26].mxu0 }
 0x68c   : > { %v4220_v23 = vpack.c.bf16 %v1240_v20, %v1240_v20  ;;  %v3594_v24 = vpop.f32.mrb[27].mxu0 }
 0x68e   : > { %1359 = vrot.lane.b32.xlu1 %v4220_v23, %s3956_s25  ;;  %v1251_v16 = vsel %vm581_vm2, %v4220_v23, 0 }
 0x68f   : > { %3596 = vmatpush3.bf16.xpose.msra.mxu1 %v1251_v16 }
 0x690   : > { %3607 = vmatprep.subr.bf16.mxu1 %v3953_v1 }
 0x692   : > { %1469 = vrot.lane.b32.xlu1 %v4220_v23, %s3955_s24 }
 0x696   : > { %1579 = vrot.lane.b32.xlu1 %v4220_v23, %s3957_s26  ;;  %3598 = vmatmul.mubr.msk.bf16.vlgmr.msra.gmra.mrb[24].mxu1 %vm581_vm2, %v1245_v15 }
 0x697   : > { %3609 = vmatprep.mubr.msk.bf16.mxu1 %vm3954_vm0, %v3953_v1 }
 0x700   : > { %v1360_v25 = vpop.permute.xlu1 %1359 }
 0x701   : > { %v1365_v26 = vsel %vm581_vm2, %v1360_v25, 0 }
 0x702   : > { %3608 = vmatpush3.bf16.xpose.msra.mxu1 %v1365_v26 }
 0x703   : > { %3619 = vmatprep.subr.bf16.mxu1 %v3953_v1 }
 0x704   : > { %v1470_v27 = vpop.permute.xlu1 %1469 }
 0x705   : > { %v1475_v29 = vsel %vm581_vm2, %v1470_v27, 0 }
 0x708   : > { %v1580_v30 = vpop.permute.xlu1 %1579 }
 0x709   : > { %3610 = vmatmul.mubr.msk.bf16.vlgmr.msra.gmra.mrb[28].mxu1 %vm581_vm2, %v1358_v28  ;;  %v1585_v32 = vsel %vm581_vm2, %v1580_v30, 0 }
 0x70a   : > { %3620 = vmatpush3.bf16.xpose.msra.mxu1 %v1475_v29  ;;  %3621 = vmatprep.mubr.msk.bf16.mxu1 %vm3954_vm0, %v3953_v1 }
 0x70b   : > { %3631 = vmatprep.subr.bf16.mxu1 %v3953_v1 }
 0x711   : > { %3622 = vmatmul.mubr.msk.bf16.vlgmr.msra.gmra.mrb[32].mxu1 %vm581_vm2, %v1468_v31 }
 0x712   : > { %3632 = vmatpush3.bf16.xpose.msra.mxu1 %v1585_v32  ;;  %3633 = vmatprep.mubr.msk.bf16.mxu1 %vm3954_vm0, %v3953_v1 }
 0x713   : > { %3643 = vmatprep.subr.bf16.mxu1 %v3953_v1 }
 0x719   : > { %3634 = vmatmul.mubr.msk.bf16.vlgmr.msra.gmra.mrb[36].mxu1 %vm581_vm2, %v1578_v33 }
 0x71a   : > { %3647 = vmatprep.mubr.msk.bf16.mxu1 %vm3954_vm0, %v3953_v1 }
 0x769   : > { %v1287_v34 = vpop.f32.mrb[24].mxu1 }
 0x76a   : > { %v3599_v35 = vpop.f32.mrb[25].mxu1  ;;  %v1294_v36 = vsel %vm1293_vm7, %v1287_v34, -inf }
 0x76b   : > { %1295 = vmax.xlane.f32.xlu1 %v1294_v36  ;;  %v1290_v37 = vpop.f32.mrb[26].mxu1 }
 0x76c   : > { %v3600_v38 = vpop.f32.mrb[27].mxu1 }
 0x7dc   : > { %v1401_v39 = vpop.f32.mrb[28].mxu1 }
 0x7dd   : > { %v3611_v40 = vpop.f32.mrb[29].mxu1  ;;  %v1407_v41 = vsel %vm1293_vm7, %v1401_v39, -inf }
 0x7de   : > { %1408 = vmax.xlane.f32.xlu0 %v1407_v41  ;;  %v1404_v42 = vpop.f32.mrb[30].mxu1 }
 0x7df   : > { %v3612_v43 = vpop.f32.mrb[31].mxu1 }
 0x7e4   : > { %v1511_v44 = vpop.f32.mrb[32].mxu1 }
 0x7e5   : > { %v3623_v45 = vpop.f32.mrb[33].mxu1  ;;  %v1517_v46 = vsel %vm1293_vm7, %v1511_v44, -inf }
 0x7e6   : > { %1518 = vmax.xlane.f32.xlu0 %v1517_v46  ;;  %v1514_v47 = vpop.f32.mrb[34].mxu1  ;;  %v3850_v45 = vld [vmem:[%s4584_s7 + $0x18] sm:$0xff]  }
 0x7e7   : > { %v3624_v48 = vpop.f32.mrb[35].mxu1 }
 0x7ec   : > { %v1621_v49 = vpop.f32.mrb[36].mxu1 }
 0x7ed   : > { %v3635_v50 = vpop.f32.mrb[37].mxu1  ;;  %v1627_v51 = vsel %vm1293_vm7, %v1621_v49, -inf }
 0x7ee   : > { %1628 = vmax.xlane.f32.xlu1 %v1627_v51  ;;  %v1624_v52 = vpop.f32.mrb[38].mxu1 }
 0x7ef   : > { %v3636_v53 = vpop.f32.mrb[39].mxu1 }
 0x7f8   : > { %v1296_v54 = vpop.xlane.xlu1 %1295 }
 0x7f9   : > { %v1297_v55 = vsub.f32 %v1287_v34, %v1296_v54 }
 0x7fb   : > { %v1298_v56 = vmul.f32 1.442695, %v1297_v55 }
 0x7fd   : > { %3881 = vpow2.f32 %v1298_v56 }
 0x807   : > { %v3882_v57 = vpop.eup %3881 }
 0x808   : > { %v1300_v58 = vsel %vm1293_vm7, %v3882_v57, 0.0 }
 0x809   : > { %1301 = vadd.xlane.f32.xlu0 %v1300_v58 }
 0x86b   : > { %v1409_v59 = vpop.xlane.xlu0 %1408 }
 0x86c   : > { %v1410_v60 = vsub.f32 %v1401_v39, %v1409_v59 }
 0x86e   : > { %v1411_v61 = vmul.f32 1.442695, %v1410_v60 }
 0x870   : > { %3883 = vpow2.f32 %v1411_v61 }
 0x873   : > { %v1519_v14 = vpop.xlane.xlu0 %1518 }
 0x874   : > { %v1520_v62 = vsub.f32 %v1511_v44, %v1519_v14  ;;  %v3849_v44 = vld [vmem:[%s4584_s7 + $0x10] sm:$0xff]   ;;  %v3851_v14 = vld [vmem:[%s4580_s3 + $0x20] sm:$0xff]  }
 0x875   : > { %3644 = vmatpush3.bf16.msra.mxu1 %v3849_v44 }
 0x876   : > { %v1521_v63 = vmul.f32 1.442695, %v1520_v62  ;;  %3645 = vmatprep.subr.bf16.mxu1 %v3953_v1  ;;  %v3852_v62 = vld [vmem:[%s4582_s5 + $0x20] sm:$0xff]  }
 0x878   : > { %3885 = vpow2.f32 %v1521_v63  ;;  %v3854_v63 = vld [vmem:[%s4582_s5 + $0x28] sm:$0xff]  }
 0x879   : > { %3646 = vmatpush3.bf16.msra.mxu1 %v3850_v45 }
 0x87a   : > { %v3884_v0 = vpop.eup %3883  ;;  %3659 = vmatprep.subr.bf16.mxu1 %v3953_v1 }
 0x87b   : > { %v1413_v2 = vsel %vm1293_vm7, %v3884_v0, 0.0  ;;  %v1629_v5 = vpop.xlane.xlu1 %1628 }
 0x87c   : > { %1414 = vadd.xlane.f32.xlu1 %v1413_v2  ;;  %v1630_v7 = vsub.f32 %v1621_v49, %v1629_v5  ;;  %v3324_v2 = vld [vmem:[%s4585_s8 + $0x1] ss:$0 sm:$0xff] }
 0x87e   : > { %v1631_v8 = vmul.f32 1.442695, %v1630_v7 }
 0x880   : > { %3887 = vpow2.f32 %v1631_v8 }
 0x882   : > { %v3886_v3 = vpop.eup %3885 }
 0x883   : > { %v1523_v4 = vsel %vm1293_vm7, %v3886_v3, 0.0 }
 0x884   : > { %1524 = vadd.xlane.f32.xlu0 %v1523_v4 }
 0x88a   : > { %v3888_v9 = vpop.eup %3887 }
 0x88b   : > { %v1633_v6 = vsel %vm1293_vm7, %v3888_v9, 0.0 }
 0x88d   : > { %1419 = vrot.lane.b32.xlu1 %v4220_v23, %s4596_s30  ;;  %s4608_s30 = smov 88  }
 0x896   : > { %v1302_v10 = vpop.xlane.xlu0 %1301 }
 0x897   : > { %3889 = vrcp.f32 %v1302_v10 }
 0x89a   : > { %1307 = vrot.lane.b32.xlu0 %v4220_v23, %s4602_s27 }
 0x89e   : > { %1639 = vrot.lane.b32.xlu0 %v4220_v23, %s4598_s29 }
 0x8a1   : > { %v3890_v13 = vpop.eup %3889 }
 0x8a2   : > { %v1304_v17 = vmul.f32 %v3890_v13, %v3882_v57 }
 0x8a4   : > { %v1305_v21 = vpack.c.bf16 %v1304_v17, %v1304_v17 }
 0x8b1   : > { %1634 = vadd.xlane.f32.xlu1 %v1633_v6 }
 0x8c2   : > { %1529 = vrot.lane.b32.xlu1 %v4220_v23, %s4600_s28 }
 0x909   : > { %v1415_v12 = vpop.xlane.xlu1 %1414 }
 0x90a   : > { %3891 = vrcp.f32 %v1415_v12  ;;  %v3343_v12 = vld [vmem:[%s4581_s4 + $0x2] ss:$0 sm:$0xff] }
 0x90d   : > { %v1420_v20 = vpop.permute.xlu1 %1419 }
 0x90e   : > { %v1425_v24 = vsel %vm1312_vm8, %v1420_v20, 0 }
 0x911   : > { %v1525_v15 = vpop.xlane.xlu0 %1524 }
 0x912   : > { %3893 = vrcp.f32 %v1525_v15 }
 0x914   : > { %v3892_v22 = vpop.eup %3891 }
 0x915   : > { %v1308_v18 = vpop.permute.xlu0 %1307  ;;  %v1417_v23 = vmul.f32 %v3892_v22, %v3884_v0  ;;  %v440_v0 = vld [vmem:[%s4579_s2] sm:$0xf] }
 0x916   : > { %v1314_v19 = vsel %vm1312_vm8, %v1308_v18, 0 }
 0x917   : > { %3602 = vmatpush3.bf16.msra.mxu0 %v1314_v19  ;;  %v1418_v16 = vpack.c.bf16 %v1417_v23, %v1417_v23 }
 0x918   : > { %3613 = vmatprep.subr.bf16.mxu0 %v3953_v1 }
 0x919   : > { %v1640_v30 = vpop.permute.xlu0 %1639 }
 0x91a   : > { %3604 = vmatmul.mubr.msk.bf16.vlgmr.msra.gmra.mrb[28].mxu0 %vm581_vm2, %v1305_v21  ;;  %v1645_v32 = vsel %vm1312_vm8, %v1640_v30, 0  ;;  %v3347_v21 = vld [vmem:[%s4583_s6 + $0x2] ss:$0 sm:$0xff] }
 0x91b   : > { %3614 = vmatpush3.bf16.msra.mxu0 %v1425_v24  ;;  %3615 = vmatprep.mubr.msk.bf16.mxu0 %vm3954_vm0, %v3953_v1 }
 0x91c   : > { %3625 = vmatprep.subr.bf16.mxu0 %v3953_v1  ;;  %v3894_v25 = vpop.eup %3893 }
 0x91d   : > { %v1527_v27 = vmul.f32 %v3894_v25, %v3886_v3 }
 0x91f   : > { %v1528_v31 = vpack.c.bf16 %v1527_v27, %v1527_v27 }
 0x922   : > { %3616 = vmatmul.mubr.msk.bf16.vlgmr.msra.gmra.mrb[32].mxu0 %vm581_vm2, %v1418_v16 }
 0x923   : > { %3627 = vmatprep.mubr.msk.bf16.mxu0 %vm3954_vm0, %v3953_v1 }
 0x93e   : > { %v1635_v26 = vpop.xlane.xlu1 %1634 }
 0x93f   : > { %3895 = vrcp.f32 %v1635_v26 }
 0x942   : > { %v1530_v28 = vpop.permute.xlu1 %1529 }
 0x943   : > { %v1535_v29 = vsel %vm1312_vm8, %v1530_v28, 0 }
 0x944   : > { %3626 = vmatpush3.bf16.msra.mxu0 %v1535_v29 }
 0x945   : > { %3637 = vmatprep.subr.bf16.mxu0 %v3953_v1 }
 0x947   : > { %3628 = vmatmul.mubr.msk.bf16.vlgmr.msra.gmra.mrb[36].mxu0 %vm581_vm2, %v1528_v31 }
 0x948   : > { %3638 = vmatpush3.bf16.msra.mxu0 %v1645_v32  ;;  %3639 = vmatprep.mubr.msk.bf16.mxu0 %vm3954_vm0, %v3953_v1 }
 0x949   : > { %v3896_v33 = vpop.eup %3895  ;;  %3651 = vmatprep.subr.bf16.mxu0 %v3953_v1 }
 0x94a   : > { %v1637_v34 = vmul.f32 %v3896_v33, %v3888_v9 }
 0x94c   : > { %v1638_v35 = vpack.c.bf16 %v1637_v34, %v1637_v34 }
 0x94f   : > { %3640 = vmatmul.mubr.msk.bf16.vlgmr.msra.gmra.mrb[40].mxu0 %vm581_vm2, %v1638_v35 }
 0x950   : > { %3655 = vmatprep.mubr.msk.bf16.mxu0 %vm3954_vm0, %v3953_v1  ;;  %3652 = vmatpush3.bf16.msra.mxu0 %v3851_v14 }
 0x951   : > { %3653 = vmatprep.subr.bf16.mxu0 %v3953_v1 }
 0x9ed   : > { %v1350_v36 = vpop.f32.mrb[28].mxu0 }
 0x9ee   : > { %v3605_v37 = vpop.f32.mrb[29].mxu0 }
 0x9ef   : > { %v1353_v38 = vpop.f32.mrb[30].mxu0 }
 0x9f0   : > { %v3606_v39 = vpop.f32.mrb[31].mxu0 }
 0x9f5   : > { %v1461_v40 = vpop.f32.mrb[32].mxu0 }
 0x9f6   : > { %1688 = vrot.lane.b32.xlu1 %v1461_v40, %s4603_s16  ;;  %v3617_v41 = vpop.f32.mrb[33].mxu0 }
 0x9f7   : > { %v1464_v42 = vpop.f32.mrb[34].mxu0 }
 0x9f8   : > { %v3618_v43 = vpop.f32.mrb[35].mxu0 }
 0xa1a   : > { %v1571_v46 = vpop.f32.mrb[36].mxu0 }
 0xa1b   : > { %1692 = vrot.lane.b32.xlu0 %v1571_v46, %s4604_s15  ;;  %v3629_v47 = vpop.f32.mrb[37].mxu0 }
 0xa1c   : > { %v1574_v48 = vpop.f32.mrb[38].mxu0 }
 0xa1d   : > { %v3630_v49 = vpop.f32.mrb[39].mxu0 }
 0xa22   : > { %v1681_v50 = vpop.f32.mrb[40].mxu0 }
 0xa23   : > { %1696 = vrot.lane.b32.xlu1 %v1681_v50, %s4605_s22  ;;  %v3641_v51 = vpop.f32.mrb[41].mxu0 }
 0xa24   : > { %v1684_v52 = vpop.f32.mrb[42].mxu0 }
 0xa25   : > { %v3642_v53 = vpop.f32.mrb[43].mxu0 }
 0xa68   : > { %v1689_v54 = vpop.permute.xlu1 %1688 }
 0xa69   : > { %v1699_v56 = vsel %vm581_vm2, %v1350_v36, %v1689_v54 }
 0xa8d   : > { %v1693_v55 = vpop.permute.xlu0 %1692 }
 0xa8e   : > { %v1700_v57 = vsel %vm1035_vm5, %v1699_v56, %v1693_v55 }
 0xa95   : > { %v1697_v58 = vpop.permute.xlu1 %1696 }
 0xa96   : > { %v1701_v59 = vsel %vm1037_vm6, %v1700_v57, %v1697_v58 }
 0xa97   : > { %v1702_v60 = vadd.f32 %v1701_v59, %v4210_v11  ;;  %v3853_v11 = vld [vmem:[%s4580_s3 + $0x28] sm:$0xff]  }
 0xa98   : > { %3654 = vmatpush3.bf16.msra.mxu0 %v3853_v11 }
 0xa99   : > { %v1703_v61 = vpack.c.bf16 %v1702_v60, %v1702_v60  ;;  %3667 = vmatprep.subr.bf16.mxu0 %v3953_v1 }
 0xa9b   : > { %3648 = vmatmul.mubr.msk.bf16.vlgmr.msra.gmra.mrb[40].mxu1 %vm474_vm1, %v1703_v61  ;;  %3656 = vmatmul.mubr.msk.bf16.vlgmr.msra.gmra.mrb[44].mxu0 %vm474_vm1, %v440_v0 }
 0xa9c   : > { %3663 = vmatprep.mubr.msk.bf16.mxu1 %vm3954_vm0, %v3953_v1  ;;  %3660 = vmatpush3.bf16.msra.mxu1 %v3852_v62 }
 0xa9d   : > { %3661 = vmatprep.subr.bf16.mxu1 %v3953_v1  ;;  %3669 = vmatprep.mubr.msk.bf16.mxu0 %vm3954_vm0, %v3953_v1 }
 0xaa0   : > { %3662 = vmatpush3.bf16.msra.mxu1 %v3854_v63 }
 0xaa1   : > { %3673 = vmatprep.subr.bf16.mxu1 %v3953_v1 }
 0xb6e   : > { %v1759_v3 = vpop.f32.mrb[40].mxu1  ;;  %v1844_v13 = vpop.f32.mrb[44].mxu0 }
 0xb6f   : > { %v1760_v4 = vadd.f32 %v3324_v2, %v1759_v3  ;;  %v3649_v5 = vpop.f32.mrb[41].mxu1  ;;  %v4337_v15 = vadd.f32 %v3343_v12, %v1844_v13  ;;  %v3657_v17 = vpop.f32.mrb[45].mxu0 }
 0xb70   : > { %v1762_v7 = vpop.f32.mrb[42].mxu1  ;;  %v1847_v18 = vpop.f32.mrb[46].mxu0 }
 0xb71   : > { %v1765_v8 = vmax.f32 %v1760_v4, 0.0  ;;  %v3650_v9 = vpop.f32.mrb[43].mxu1  ;;  %v1911_v19 = vpack.c.bf16 %v4337_v15, %v4337_v15  ;;  %v3658_v20 = vpop.f32.mrb[47].mxu0 }
 0xb73   : > { %v1766_v6 = vadd.f32 %v1765_v8, %v1702_v60  ;;  %2021 = vrot.lane.b32.xlu1 %v1911_v19, %s3956_s25 }
 0xb75   : > { %v4328_v10 = vpack.c.bf16 %v1766_v6, %v1766_v6 }
 0xb77   : > { %3664 = vmatmul.mubr.msk.bf16.vlgmr.msra.gmra.mrb[44].mxu1 %vm474_vm1, %v4328_v10  ;;  %2131 = vrot.lane.b32.xlu1 %v1911_v19, %s3955_s24 }
 0xb78   : > { %3675 = vmatprep.mubr.msk.bf16.mxu1 %vm3954_vm0, %v3953_v1 }
 0xb7b   : > { %2241 = vrot.lane.b32.xlu1 %v1911_v19, %s3957_s26 }
 0xbe5   : > { %v2022_v31 = vpop.permute.xlu1 %2021 }
 0xbe9   : > { %v2132_v34 = vpop.permute.xlu1 %2131 }
 0xbed   : > { %v2242_v36 = vpop.permute.xlu1 %2241 }
 0xc4a   : > { %v1905_v22 = vpop.f32.mrb[44].mxu1 }
 0xc4b   : > { %v1906_v24 = vadd.f32 %v3347_v21, %v1905_v22  ;;  %v3665_v23 = vpop.f32.mrb[45].mxu1 }
 0xc4c   : > { %v1908_v16 = vpop.f32.mrb[46].mxu1 }
 0xc4d   : > { %v4347_v25 = vpack.c.bf16 %v1906_v24, %v1906_v24  ;;  %v3666_v26 = vpop.f32.mrb[47].mxu1 }
 0xc4f   : > { %2023 = vrot.lane.b32.xlu0 %v4347_v25, %s3956_s25  ;;  %v1917_v27 = vsel %vm581_vm2, %v4347_v25, 0 }
 0xc50   : > { %3668 = vmatpush3.bf16.xpose.msra.mxu0 %v1917_v27 }
 0xc51   : > { %3679 = vmatprep.subr.bf16.mxu0 %v3953_v1 }
 0xc53   : > { %2133 = vrot.lane.b32.xlu0 %v4347_v25, %s3955_s24 }
 0xc57   : > { %2243 = vrot.lane.b32.xlu0 %v4347_v25, %s3957_s26  ;;  %3670 = vmatmul.mubr.msk.bf16.vlgmr.msra.gmra.mrb[48].mxu0 %vm581_vm2, %v1911_v19 }
 0xc58   : > { %3681 = vmatprep.mubr.msk.bf16.mxu0 %vm3954_vm0, %v3953_v1 }
 0xcc1   : > { %v2024_v28 = vpop.permute.xlu0 %2023 }
 0xcc2   : > { %v2029_v29 = vsel %vm581_vm2, %v2024_v28, 0 }
 0xcc3   : > { %3680 = vmatpush3.bf16.xpose.msra.mxu0 %v2029_v29 }
 0xcc4   : > { %3691 = vmatprep.subr.bf16.mxu0 %v3953_v1 }
 0xcc5   : > { %v2134_v30 = vpop.permute.xlu0 %2133 }
 0xcc6   : > { %v2139_v32 = vsel %vm581_vm2, %v2134_v30, 0 }
 0xcc9   : > { %v2244_v33 = vpop.permute.xlu0 %2243 }
 0xcca   : > { %3682 = vmatmul.mubr.msk.bf16.vlgmr.msra.gmra.mrb[52].mxu0 %vm581_vm2, %v2022_v31  ;;  %v2249_v35 = vsel %vm581_vm2, %v2244_v33, 0 }
 0xccb   : > { %3692 = vmatpush3.bf16.xpose.msra.mxu0 %v2139_v32  ;;  %3693 = vmatprep.mubr.msk.bf16.mxu0 %vm3954_vm0, %v3953_v1 }
 0xccc   : > { %3703 = vmatprep.subr.bf16.mxu0 %v3953_v1 }
 0xcd2   : > { %3694 = vmatmul.mubr.msk.bf16.vlgmr.msra.gmra.mrb[56].mxu0 %vm581_vm2, %v2132_v34 }
 0xcd3   : > { %3704 = vmatpush3.bf16.xpose.msra.mxu0 %v2249_v35  ;;  %3705 = vmatprep.mubr.msk.bf16.mxu0 %vm3954_vm0, %v3953_v1 }
 0xcd4   : > { %3715 = vmatprep.subr.bf16.mxu0 %v3953_v1 }
 0xcda   : > { %3706 = vmatmul.mubr.msk.bf16.vlgmr.msra.gmra.mrb[60].mxu0 %vm581_vm2, %v2242_v36 }
 0xcdb   : > { %3719 = vmatprep.mubr.msk.bf16.mxu0 %vm3954_vm0, %v3953_v1 }
 0xd2a   : > { %v1953_v37 = vpop.f32.mrb[48].mxu0 }
 0xd2b   : > { %v3671_v38 = vpop.f32.mrb[49].mxu0  ;;  %v1959_v39 = vsel %vm628_vm3, %v1953_v37, -inf }
 0xd2c   : > { %1960 = vmax.xlane.f32.xlu0 %v1959_v39  ;;  %v1956_v40 = vpop.f32.mrb[50].mxu0  ;;  %v3855_v39 = vld [vmem:[%s4580_s3 + $0x30] sm:$0xff]  }
 0xd2d   : > { %v3672_v41 = vpop.f32.mrb[51].mxu0 }
 0xd2e   : > { %v3856_v41 = vld [vmem:[%s4580_s3 + $0x38] sm:$0xff]  }
 0xd9d   : > { %v2065_v42 = vpop.f32.mrb[52].mxu0 }
 0xd9e   : > { %v3683_v43 = vpop.f32.mrb[53].mxu0  ;;  %v2071_v44 = vsel %vm628_vm3, %v2065_v42, -inf }
 0xd9f   : > { %2072 = vmax.xlane.f32.xlu1 %v2071_v44  ;;  %v2068_v45 = vpop.f32.mrb[54].mxu0 }
 0xda0   : > { %v3684_v46 = vpop.f32.mrb[55].mxu0 }
 0xda1   : > { %v3857_v46 = vld [vmem:[%s4584_s7 + $0x20] sm:$0xff]  }
 0xda2   : > { %3716 = vmatpush3.bf16.msra.mxu0 %v3857_v46 }
 0xda3   : > { %3717 = vmatprep.subr.bf16.mxu0 %v3953_v1 }
 0xda5   : > { %v2175_v47 = vpop.f32.mrb[56].mxu0 }
 0xda6   : > { %v3695_v48 = vpop.f32.mrb[57].mxu0  ;;  %v2181_v49 = vsel %vm628_vm3, %v2175_v47, -inf }
 0xda7   : > { %2182 = vmax.xlane.f32.xlu0 %v2181_v49  ;;  %v2178_v50 = vpop.f32.mrb[58].mxu0 }
 0xda8   : > { %v3696_v51 = vpop.f32.mrb[59].mxu0  ;;  %v3858_v50 = vld [vmem:[%s4584_s7 + $0x28] sm:$0xff]  }
 0xda9   : > { %3718 = vmatpush3.bf16.msra.mxu0 %v3858_v50 }
 0xdaa   : > { %3731 = vmatprep.subr.bf16.mxu0 %v3953_v1 }
 0xdad   : > { %v2285_v52 = vpop.f32.mrb[60].mxu0 }
 0xdae   : > { %v3707_v53 = vpop.f32.mrb[61].mxu0  ;;  %v2291_v54 = vsel %vm628_vm3, %v2285_v52, -inf }
 0xdaf   : > { %2292 = vmax.xlane.f32.xlu0 %v2291_v54  ;;  %v2288_v55 = vpop.f32.mrb[62].mxu0 }
 0xdb0   : > { %v3708_v56 = vpop.f32.mrb[63].mxu0 }
 0xdb9   : > { %v1961_v57 = vpop.xlane.xlu0 %1960 }
 0xdba   : > { %v1962_v58 = vsub.f32 %v1953_v37, %v1961_v57 }
 0xdbc   : > { %v1963_v59 = vmul.f32 1.442695, %v1962_v58 }
 0xdbe   : > { %3897 = vpow2.f32 %v1963_v59  ;;  %v3378_v59 = vld [vmem:[%s4581_s4 + $0x3] ss:$0 sm:$0xff] }
 0xdc8   : > { %v3898_v60 = vpop.eup %3897 }
 0xdc9   : > { %v1965_v61 = vsel %vm628_vm3, %v3898_v60, 0.0 }
 0xdca   : > { %1966 = vadd.xlane.f32.xlu1 %v1965_v61 }
 0xddb   : > { %1972 = vrot.lane.b32.xlu1 %v4347_v25, %s4602_s27 }
 0xe2c   : > { %v2073_v14 = vpop.xlane.xlu1 %2072 }
 0xe2d   : > { %v2074_v62 = vsub.f32 %v2065_v42, %v2073_v14 }
 0xe2f   : > { %v2075_v11 = vmul.f32 1.442695, %v2074_v62 }
 0xe31   : > { %3899 = vpow2.f32 %v2075_v11 }
 0xe34   : > { %v2183_v63 = vpop.xlane.xlu0 %2182 }
 0xe35   : > { %v2184_v0 = vsub.f32 %v2175_v47, %v2183_v63 }
 0xe37   : > { %v2185_v2 = vmul.f32 1.442695, %v2184_v0 }
 0xe39   : > { %3901 = vpow2.f32 %v2185_v2 }
 0xe3b   : > { %v3900_v3 = vpop.eup %3899 }
 0xe3c   : > { %v2293_v4 = vpop.xlane.xlu0 %2292  ;;  %v2077_v5 = vsel %vm628_vm3, %v3900_v3, 0.0 }
 0xe3d   : > { %v2294_v7 = vsub.f32 %v2285_v52, %v2293_v4  ;;  %2078 = vadd.xlane.f32.xlu0 %v2077_v5 }
 0xe3f   : > { %v2295_v8 = vmul.f32 1.442695, %v2294_v7 }
 0xe41   : > { %3903 = vpow2.f32 %v2295_v8 }
 0xe43   : > { %v3902_v9 = vpop.eup %3901 }
 0xe44   : > { %v2187_v6 = vsel %vm628_vm3, %v3902_v9, 0.0 }
 0xe45   : > { %2188 = vadd.xlane.f32.xlu1 %v2187_v6  ;;  %v3859_v6 = vld [vmem:[%s4582_s5 + $0x30] sm:$0xff]  }
 0xe4b   : > { %v3904_v12 = vpop.eup %3903 }
 0xe4c   : > { %v2297_v13 = vsel %vm628_vm3, %v3904_v12, 0.0 }
 0xe4d   : > { %2298 = vadd.xlane.f32.xlu0 %v2297_v13 }
 0xe56   : > { %2193 = vrot.lane.b32.xlu1 %v4347_v25, %s4606_s23 }
 0xe57   : > { %v1967_v17 = vpop.xlane.xlu1 %1966 }
 0xe58   : > { %3905 = vrcp.f32 %v1967_v17 }
 0xe5a   : > { %2303 = vrot.lane.b32.xlu1 %v4347_v25, %s4607_s21 }
 0xe5b   : > { %v1973_v18 = vpop.permute.xlu1 %1972 }
 0xe5c   : > { %v1978_v19 = vsel %vm647_vm4, %v1973_v18, 0 }
 0xe5d   : > { %3674 = vmatpush3.bf16.msra.mxu1 %v1978_v19 }
 0xe5e   : > { %3685 = vmatprep.subr.bf16.mxu1 %v3953_v1 }
 0xe62   : > { %v3906_v20 = vpop.eup %3905 }
 0xe63   : > { %v1969_v21 = vmul.f32 %v3906_v20, %v3898_v60  ;;  %2083 = vrot.lane.b32.xlu0 %v4347_v25, %s4608_s30 }
 0xe65   : > { %v1970_v22 = vpack.c.bf16 %v1969_v21, %v1969_v21 }
 0xe67   : > { %3676 = vmatmul.mubr.msk.bf16.vlgmr.msra.gmra.mrb[48].mxu1 %vm628_vm3, %v1970_v22 }
 0xe68   : > { %3687 = vmatprep.mubr.msk.bf16.mxu1 %vm3954_vm0, %v3953_v1 }
 0xeca   : > { %v2079_v24 = vpop.xlane.xlu0 %2078 }
 0xecb   : > { %3907 = vrcp.f32 %v2079_v24 }
 0xed2   : > { %v2189_v23 = vpop.xlane.xlu1 %2188 }
 0xed3   : > { %3909 = vrcp.f32 %v2189_v23  ;;  %v3382_v23 = vld [vmem:[%s4583_s6 + $0x3] ss:$0 sm:$0xff] }
 0xed5   : > { %v3908_v16 = vpop.eup %3907 }
 0xed6   : > { %v2081_v27 = vmul.f32 %v3908_v16, %v3900_v3  ;;  %v2194_v30 = vpop.permute.xlu1 %2193 }
 0xed7   : > { %v2199_v32 = vsel %vm647_vm4, %v2194_v30, 0 }
 0xed8   : > { %v2082_v25 = vpack.c.bf16 %v2081_v27, %v2081_v27 }
 0xeda   : > { %v2299_v26 = vpop.xlane.xlu0 %2298  ;;  %v2304_v34 = vpop.permute.xlu1 %2303 }
 0xedb   : > { %3911 = vrcp.f32 %v2299_v26  ;;  %v2309_v37 = vsel %vm647_vm4, %v2304_v34, 0 }
 0xedd   : > { %v3910_v31 = vpop.eup %3909 }
 0xede   : > { %v2084_v28 = vpop.permute.xlu0 %2083  ;;  %v2191_v33 = vmul.f32 %v3910_v31, %v3902_v9 }
 0xedf   : > { %v2089_v29 = vsel %vm647_vm4, %v2084_v28, 0 }
 0xee0   : > { %3686 = vmatpush3.bf16.msra.mxu1 %v2089_v29  ;;  %v2192_v35 = vpack.c.bf16 %v2191_v33, %v2191_v33 }
 0xee1   : > { %3697 = vmatprep.subr.bf16.mxu1 %v3953_v1 }
 0xee3   : > { %3688 = vmatmul.mubr.msk.bf16.vlgmr.msra.gmra.mrb[52].mxu1 %vm628_vm3, %v2082_v25 }
 0xee4   : > { %3698 = vmatpush3.bf16.msra.mxu1 %v2199_v32  ;;  %3699 = vmatprep.mubr.msk.bf16.mxu1 %vm3954_vm0, %v3953_v1 }
 0xee5   : > { %3709 = vmatprep.subr.bf16.mxu1 %v3953_v1  ;;  %v3912_v36 = vpop.eup %3911 }
 0xee6   : > { %v2301_v38 = vmul.f32 %v3912_v36, %v3904_v12  ;;  %v3860_v12 = vld [vmem:[%s4582_s5 + $0x38] sm:$0xff]  }
 0xee8   : > { %v2302_v40 = vpack.c.bf16 %v2301_v38, %v2301_v38 }
 0xeeb   : > { %3700 = vmatmul.mubr.msk.bf16.vlgmr.msra.gmra.mrb[56].mxu1 %vm628_vm3, %v2192_v35 }
 0xeec   : > { %3710 = vmatpush3.bf16.msra.mxu1 %v2309_v37  ;;  %3711 = vmatprep.mubr.msk.bf16.mxu1 %vm3954_vm0, %v3953_v1 }
 0xeed   : > { %3723 = vmatprep.subr.bf16.mxu1 %v3953_v1 }
 0xef3   : > { %3712 = vmatmul.mubr.msk.bf16.vlgmr.msra.gmra.mrb[60].mxu1 %vm628_vm3, %v2302_v40 }
 0xef4   : > { %3724 = vmatpush3.bf16.msra.mxu1 %v3855_v39  ;;  %3727 = vmatprep.mubr.msk.bf16.mxu1 %vm3954_vm0, %v3953_v1 }
 0xef5   : > { %3725 = vmatprep.subr.bf16.mxu1 %v3953_v1 }
 0xef8   : > { %3726 = vmatpush3.bf16.msra.mxu1 %v3856_v41 }
 0xef9   : > { %3739 = vmatprep.subr.bf16.mxu1 %v3953_v1 }
 0xefb   : > { %3728 = vmatmul.mubr.msk.bf16.vlgmr.msra.gmra.mrb[64].mxu1 %vm474_vm1, %v4328_v10 }
 0xefc   : > { %3741 = vmatprep.mubr.msk.bf16.mxu1 %vm3954_vm0, %v3953_v1 }
 0xf3a   : > { %v2014_v42 = vpop.f32.mrb[48].mxu1 }
 0xf3b   : > { %v3677_v43 = vpop.f32.mrb[49].mxu1 }
 0xf3c   : > { %v2017_v44 = vpop.f32.mrb[50].mxu1 }
 0xf3d   : > { %v3678_v45 = vpop.f32.mrb[51].mxu1 }
 0xfb6   : > { %v2125_v47 = vpop.f32.mrb[52].mxu1 }
 0xfb7   : > { %2352 = vrot.lane.b32.xlu0 %v2125_v47, %s4603_s16  ;;  %v3689_v48 = vpop.f32.mrb[53].mxu1 }
 0xfb8   : > { %v2128_v49 = vpop.f32.mrb[54].mxu1 }
 0xfb9   : > { %v3690_v10 = vpop.f32.mrb[55].mxu1 }
 0xfbe   : > { %v2235_v51 = vpop.f32.mrb[56].mxu1 }
 0xfbf   : > { %2356 = vrot.lane.b32.xlu1 %v2235_v51, %s4604_s15  ;;  %v3701_v52 = vpop.f32.mrb[57].mxu1 }
 0xfc0   : > { %v2238_v53 = vpop.f32.mrb[58].mxu1 }
 0xfc1   : > { %v3702_v54 = vpop.f32.mrb[59].mxu1 }
 0xfc6   : > { %v2345_v55 = vpop.f32.mrb[60].mxu1 }
 0xfc7   : > { %2360 = vrot.lane.b32.xlu0 %v2345_v55, %s4605_s22  ;;  %v3713_v56 = vpop.f32.mrb[61].mxu1 }
 0xfc8   : > { %v2348_v57 = vpop.f32.mrb[62].mxu1 }
 0xfc9   : > { %v3714_v58 = vpop.f32.mrb[63].mxu1 }
 0xfce   : > { %v2505_v60 = vpop.f32.mrb[64].mxu1 }
 0xfcf   : > { %v4438_v61 = vadd.f32 %v3378_v59, %v2505_v60  ;;  %v3729_v14 = vpop.f32.mrb[65].mxu1 }
 0xfd0   : > { %v2508_v62 = vpop.f32.mrb[66].mxu1 }
 0xfd1   : > { %v2572_v11 = vpack.c.bf16 %v4438_v61, %v4438_v61  ;;  %v3730_v63 = vpop.f32.mrb[67].mxu1 }
 0xfd3   : > { %2682 = vrot.lane.b32.xlu0 %v2572_v11, %s3956_s25 }
 0xfd7   : > { %2792 = vrot.lane.b32.xlu0 %v2572_v11, %s3955_s24 }
 0xfdb   : > { %2902 = vrot.lane.b32.xlu0 %v2572_v11, %s3957_s26 }
0x1029   : > { %v2353_v0 = vpop.permute.xlu0 %2352 }
0x102a   : > { %v2363_v3 = vsel %vm581_vm2, %v2014_v42, %v2353_v0 }
0x1031   : > { %v2357_v2 = vpop.permute.xlu1 %2356 }
0x1032   : > { %v2364_v4 = vsel %vm1035_vm5, %v2363_v3, %v2357_v2 }
0x1039   : > { %v2361_v5 = vpop.permute.xlu0 %2360 }
0x103a   : > { %v2365_v7 = vsel %vm1037_vm6, %v2364_v4, %v2361_v5 }
0x103b   : > { %v2366_v8 = vadd.f32 %v2365_v7, %v4337_v15  ;;  %v3359_v15 = vld [vmem:[%s4585_s8 + $0x2] ss:$0 sm:$0xff] }
0x103d   : > { %v2367_v9 = vpack.c.bf16 %v2366_v8, %v2366_v8 }
0x103f   : > { %3720 = vmatmul.mubr.msk.bf16.vlgmr.msra.gmra.mrb[64].mxu0 %vm474_vm1, %v2367_v9 }
0x1040   : > { %3735 = vmatprep.mubr.msk.bf16.mxu0 %vm3954_vm0, %v3953_v1  ;;  %3732 = vmatpush3.bf16.msra.mxu0 %v3859_v6 }
0x1041   : > { %3733 = vmatprep.subr.bf16.mxu0 %v3953_v1 }
0x1044   : > { %3734 = vmatpush3.bf16.msra.mxu0 %v3860_v12 }
0x1045   : > { %3745 = vmatprep.subr.bf16.mxu0 %v3953_v1  ;;  %v2683_v34 = vpop.permute.xlu0 %2682 }
0x1049   : > { %v2793_v37 = vpop.permute.xlu0 %2792 }
0x104d   : > { %v2903_v39 = vpop.permute.xlu0 %2902 }
0x1112   : > { %v2423_v13 = vpop.f32.mrb[64].mxu0 }
0x1113   : > { %v2424_v17 = vadd.f32 %v3359_v15, %v2423_v13  ;;  %v3721_v18 = vpop.f32.mrb[65].mxu0 }
0x1114   : > { %v2426_v19 = vpop.f32.mrb[66].mxu0 }
0x1115   : > { %v2429_v20 = vmax.f32 %v2424_v17, 0.0  ;;  %v3722_v21 = vpop.f32.mrb[67].mxu0 }
0x1117   : > { %v2430_v22 = vadd.f32 %v2429_v20, %v2366_v8 }
0x1119   : > { %v2431_v24 = vpack.c.bf16 %v2430_v22, %v2430_v22 }
0x111b   : > { %3736 = vmatmul.mubr.msk.bf16.vlgmr.msra.gmra.mrb[68].mxu0 %vm474_vm1, %v2431_v24 }
0x111c   : > { %3747 = vmatprep.mubr.msk.bf16.mxu0 %vm3954_vm0, %v3953_v1 }
0x11ee   : > { %v2566_v16 = vpop.f32.mrb[68].mxu0 }
0x11ef   : > { %v2567_v26 = vadd.f32 %v3382_v23, %v2566_v16  ;;  %v3737_v27 = vpop.f32.mrb[69].mxu0 }
0x11f0   : > { %v2569_v28 = vpop.f32.mrb[70].mxu0 }
0x11f1   : > { %v4469_v29 = vpack.c.bf16 %v2567_v26, %v2567_v26  ;;  %v3738_v30 = vpop.f32.mrb[71].mxu0 }
0x11f3   : > { %2684 = vrot.lane.b32.xlu1 %v4469_v29, %s3956_s25  ;;  %v2578_v25 = vsel %vm581_vm2, %v4469_v29, 0  ;;  %s432_s25 = scalar_lea.vmem %s4588_s11, %s4610_s13 }
0x11f4   : > { %3740 = vmatpush3.bf16.xpose.msra.mxu1 %v2578_v25 }
0x11f5   : > { %3751 = vmatprep.subr.bf16.mxu1 %v3953_v1 }
0x11f7   : > { %2794 = vrot.lane.b32.xlu1 %v4469_v29, %s3955_s24  ;;  %s4609_s24 = smov 96  }
0x11fb   : > { %2904 = vrot.lane.b32.xlu1 %v4469_v29, %s3957_s26  ;;  %3742 = vmatmul.mubr.msk.bf16.vlgmr.msra.gmra.mrb[68].mxu1 %vm581_vm2, %v2572_v11 }
0x11fc   : > { %3753 = vmatprep.mubr.msk.bf16.mxu1 %vm3954_vm0, %v3953_v1 }
0x1265   : > { %v2685_v31 = vpop.permute.xlu1 %2684 }
0x1266   : > { %v2690_v32 = vsel %vm581_vm2, %v2685_v31, 0 }
0x1267   : > { %3752 = vmatpush3.bf16.xpose.msra.mxu1 %v2690_v32 }
0x1268   : > { %3763 = vmatprep.subr.bf16.mxu1 %v3953_v1 }
0x1269   : > { %v2795_v33 = vpop.permute.xlu1 %2794 }
0x126a   : > { %v2800_v35 = vsel %vm581_vm2, %v2795_v33, 0 }
0x126d   : > { %v2905_v36 = vpop.permute.xlu1 %2904 }
0x126e   : > { %3754 = vmatmul.mubr.msk.bf16.vlgmr.msra.gmra.mrb[72].mxu1 %vm581_vm2, %v2683_v34  ;;  %v2910_v38 = vsel %vm581_vm2, %v2905_v36, 0 }
0x126f   : > { %3764 = vmatpush3.bf16.xpose.msra.mxu1 %v2800_v35  ;;  %3765 = vmatprep.mubr.msk.bf16.mxu1 %vm3954_vm0, %v3953_v1 }
0x1270   : > { %3775 = vmatprep.subr.bf16.mxu1 %v3953_v1 }
0x1276   : > { %3766 = vmatmul.mubr.msk.bf16.vlgmr.msra.gmra.mrb[76].mxu1 %vm581_vm2, %v2793_v37 }
0x1277   : > { %3776 = vmatpush3.bf16.xpose.msra.mxu1 %v2910_v38  ;;  %3777 = vmatprep.mubr.msk.bf16.mxu1 %vm3954_vm0, %v3953_v1 }
0x1278   : > { %3787 = vmatprep.subr.bf16.mxu1 %v3953_v1 }
0x127e   : > { %3778 = vmatmul.mubr.msk.bf16.vlgmr.msra.gmra.mrb[80].mxu1 %vm581_vm2, %v2903_v39 }
0x127f   : > { %3791 = vmatprep.mubr.msk.bf16.mxu1 %vm3954_vm0, %v3953_v1 }
0x12ce   : > { %v2614_v40 = vpop.f32.mrb[68].mxu1 }
0x12cf   : > { %v3743_v41 = vpop.f32.mrb[69].mxu1  ;;  %v2620_v42 = vsel %vm1293_vm7, %v2614_v40, -inf }
0x12d0   : > { %2621 = vmax.xlane.f32.xlu1 %v2620_v42  ;;  %v2617_v43 = vpop.f32.mrb[70].mxu1 }
0x12d1   : > { %v3744_v44 = vpop.f32.mrb[71].mxu1 }
0x1341   : > { %v2726_v45 = vpop.f32.mrb[72].mxu1 }
0x1342   : > { %v3755_v46 = vpop.f32.mrb[73].mxu1  ;;  %v2732_v47 = vsel %vm1293_vm7, %v2726_v45, -inf }
0x1343   : > { %2733 = vmax.xlane.f32.xlu0 %v2732_v47  ;;  %v2729_v48 = vpop.f32.mrb[74].mxu1 }
0x1344   : > { %v3756_v49 = vpop.f32.mrb[75].mxu1 }
0x1349   : > { %v2836_v10 = vpop.f32.mrb[76].mxu1 }
0x134a   : > { %v3767_v50 = vpop.f32.mrb[77].mxu1  ;;  %v2842_v51 = vsel %vm1293_vm7, %v2836_v10, -inf }
0x134b   : > { %2843 = vmax.xlane.f32.xlu0 %v2842_v51  ;;  %v2839_v52 = vpop.f32.mrb[78].mxu1  ;;  %v3862_v50 = vld [vmem:[%s4584_s7 + $0x38] sm:$0xff]  }
0x134c   : > { %v3768_v53 = vpop.f32.mrb[79].mxu1 }
0x1351   : > { %v2946_v54 = vpop.f32.mrb[80].mxu1 }
0x1352   : > { %v3779_v55 = vpop.f32.mrb[81].mxu1  ;;  %v2952_v56 = vsel %vm1293_vm7, %v2946_v54, -inf }
0x1353   : > { %2953 = vmax.xlane.f32.xlu1 %v2952_v56  ;;  %v2949_v57 = vpop.f32.mrb[82].mxu1 }
0x1354   : > { %v3780_v58 = vpop.f32.mrb[83].mxu1 }
0x135d   : > { %v2622_v59 = vpop.xlane.xlu1 %2621 }
0x135e   : > { %v2623_v60 = vsub.f32 %v2614_v40, %v2622_v59 }
0x1360   : > { %v2624_v14 = vmul.f32 1.442695, %v2623_v60 }
0x1362   : > { %3913 = vpow2.f32 %v2624_v14 }
0x136c   : > { %v3914_v62 = vpop.eup %3913 }
0x136d   : > { %v2626_v11 = vsel %vm1293_vm7, %v3914_v62, 0.0 }
0x136e   : > { %2627 = vadd.xlane.f32.xlu0 %v2626_v11 }
0x13d0   : > { %v2734_v63 = vpop.xlane.xlu0 %2733 }
0x13d1   : > { %v2735_v0 = vsub.f32 %v2726_v45, %v2734_v63 }
0x13d3   : > { %v2736_v2 = vmul.f32 1.442695, %v2735_v0 }
0x13d5   : > { %3915 = vpow2.f32 %v2736_v2 }
0x13d8   : > { %v2844_v3 = vpop.xlane.xlu0 %2843 }
0x13d9   : > { %v2845_v4 = vsub.f32 %v2836_v10, %v2844_v3  ;;  %v3861_v10 = vld [vmem:[%s4584_s7 + $0x30] sm:$0xff]   ;;  %v3863_v3 = vld [vmem:[%s4586_s9] sm:$0xff]  }
0x13da   : > { %3788 = vmatpush3.bf16.msra.mxu1 %v3861_v10 }
0x13db   : > { %v2846_v5 = vmul.f32 1.442695, %v2845_v4  ;;  %3789 = vmatprep.subr.bf16.mxu1 %v3953_v1  ;;  %v3864_v4 = vld [vmem:[%s4586_s9 + $0x8] sm:$0xff]  }
0x13dd   : > { %3917 = vpow2.f32 %v2846_v5  ;;  %v3394_v5 = vld [vmem:[%s4585_s8 + $0x3] ss:$0 sm:$0xff] }
0x13de   : > { %3790 = vmatpush3.bf16.msra.mxu1 %v3862_v50 }
0x13df   : > { %v3916_v7 = vpop.eup %3915 }
0x13e0   : > { %v2738_v8 = vsel %vm1293_vm7, %v3916_v7, 0.0  ;;  %v2954_v12 = vpop.xlane.xlu1 %2953 }
0x13e1   : > { %2739 = vadd.xlane.f32.xlu1 %v2738_v8  ;;  %v2955_v15 = vsub.f32 %v2946_v54, %v2954_v12 }
0x13e3   : > { %v2956_v13 = vmul.f32 1.442695, %v2955_v15 }
0x13e5   : > { %3919 = vpow2.f32 %v2956_v13 }
0x13e7   : > { %v3918_v9 = vpop.eup %3917 }
0x13e8   : > { %v2848_v6 = vsel %vm1293_vm7, %v3918_v9, 0.0 }
0x13e9   : > { %2849 = vadd.xlane.f32.xlu0 %v2848_v6 }
0x13ef   : > { %v3920_v17 = vpop.eup %3919 }
0x13f0   : > { %v2958_v18 = vsel %vm1293_vm7, %v3920_v17, 0.0 }
0x13f2   : > { %2744 = vrot.lane.b32.xlu1 %v4469_v29, %s4608_s30 }
0x13fb   : > { %v2628_v19 = vpop.xlane.xlu0 %2627 }
0x13fc   : > { %3921 = vrcp.f32 %v2628_v19 }
0x13ff   : > { %2633 = vrot.lane.b32.xlu0 %v4469_v29, %s4609_s24 }
0x1403   : > { %2964 = vrot.lane.b32.xlu0 %v4469_v29, %s4607_s21 }
0x1406   : > { %v3922_v21 = vpop.eup %3921 }
0x1407   : > { %v2630_v24 = vmul.f32 %v3922_v21, %v3914_v62 }
0x1409   : > { %v2631_v27 = vpack.c.bf16 %v2630_v24, %v2630_v24 }
0x1416   : > { %2959 = vadd.xlane.f32.xlu1 %v2958_v18 }
0x1427   : > { %2854 = vrot.lane.b32.xlu1 %v4469_v29, %s4606_s23 }
0x146e   : > { %v2740_v20 = vpop.xlane.xlu1 %2739 }
0x146f   : > { %3923 = vrcp.f32 %v2740_v20 }
0x1472   : > { %v2745_v26 = vpop.permute.xlu1 %2744 }
0x1473   : > { %v2750_v30 = vsel %vm1312_vm8, %v2745_v26, 0 }
0x1476   : > { %v2850_v22 = vpop.xlane.xlu0 %2849 }
0x1477   : > { %3925 = vrcp.f32 %v2850_v22 }
0x1479   : > { %v3924_v28 = vpop.eup %3923 }
0x147a   : > { %v2634_v23 = vpop.permute.xlu0 %2633  ;;  %v2742_v29 = vmul.f32 %v3924_v28, %v3916_v7 }
0x147b   : > { %v2639_v16 = vsel %vm1312_vm8, %v2634_v23, 0 }
0x147c   : > { %3746 = vmatpush3.bf16.msra.mxu0 %v2639_v16  ;;  %v2743_v25 = vpack.c.bf16 %v2742_v29, %v2742_v29 }
0x147d   : > { %3757 = vmatprep.subr.bf16.mxu0 %v3953_v1 }
0x147e   : > { %v2965_v36 = vpop.permute.xlu0 %2964 }
0x147f   : > { %3748 = vmatmul.mubr.msk.bf16.vlgmr.msra.gmra.mrb[72].mxu0 %vm581_vm2, %v2631_v27  ;;  %v2970_v38 = vsel %vm1312_vm8, %v2965_v36, 0 }
0x1480   : > { %3758 = vmatpush3.bf16.msra.mxu0 %v2750_v30  ;;  %3759 = vmatprep.mubr.msk.bf16.mxu0 %vm3954_vm0, %v3953_v1 }
0x1481   : > { %3769 = vmatprep.subr.bf16.mxu0 %v3953_v1  ;;  %v3926_v31 = vpop.eup %3925 }
0x1482   : > { %v2852_v33 = vmul.f32 %v3926_v31, %v3918_v9 }
0x1484   : > { %v2853_v37 = vpack.c.bf16 %v2852_v33, %v2852_v33 }
0x1487   : > { %3760 = vmatmul.mubr.msk.bf16.vlgmr.msra.gmra.mrb[76].mxu0 %vm581_vm2, %v2743_v25 }
0x1488   : > { %3771 = vmatprep.mubr.msk.bf16.mxu0 %vm3954_vm0, %v3953_v1 }
0x14a3   : > { %v2960_v32 = vpop.xlane.xlu1 %2959 }
0x14a4   : > { %3927 = vrcp.f32 %v2960_v32 }
0x14a7   : > { %v2855_v34 = vpop.permute.xlu1 %2854 }
0x14a8   : > { %v2860_v35 = vsel %vm1312_vm8, %v2855_v34, 0 }
0x14a9   : > { %3770 = vmatpush3.bf16.msra.mxu0 %v2860_v35 }
0x14aa   : > { %3781 = vmatprep.subr.bf16.mxu0 %v3953_v1 }
0x14ac   : > { %3772 = vmatmul.mubr.msk.bf16.vlgmr.msra.gmra.mrb[80].mxu0 %vm581_vm2, %v2853_v37 }
0x14ad   : > { %3782 = vmatpush3.bf16.msra.mxu0 %v2970_v38  ;;  %3783 = vmatprep.mubr.msk.bf16.mxu0 %vm3954_vm0, %v3953_v1 }
0x14ae   : > { %v3928_v39 = vpop.eup %3927  ;;  %3795 = vmatprep.subr.bf16.mxu0 %v3953_v1 }
0x14af   : > { %v2962_v40 = vmul.f32 %v3928_v39, %v3920_v17 }
0x14b1   : > { %v2963_v41 = vpack.c.bf16 %v2962_v40, %v2962_v40 }
0x14b4   : > { %3784 = vmatmul.mubr.msk.bf16.vlgmr.msra.gmra.mrb[84].mxu0 %vm581_vm2, %v2963_v41 }
0x14b5   : > { %3799 = vmatprep.mubr.msk.bf16.mxu0 %vm3954_vm0, %v3953_v1  ;;  %3796 = vmatpush3.bf16.msra.mxu0 %v3863_v3 }
0x14b6   : > { %3797 = vmatprep.subr.bf16.mxu0 %v3953_v1  ;;  %v3398_v1 = vld [vmem:[%s4587_s10] ss:$0 sm:$0xff] }
0x14b9   : > { %3798 = vmatpush3.bf16.msra.mxu0 %v3864_v4 }
0x1552   : > { %v2675_v42 = vpop.f32.mrb[72].mxu0 }
0x1553   : > { %v3749_v43 = vpop.f32.mrb[73].mxu0 }
0x1554   : > { %v2678_v44 = vpop.f32.mrb[74].mxu0 }
0x1555   : > { %v3750_v45 = vpop.f32.mrb[75].mxu0 }
0x155a   : > { %v2786_v46 = vpop.f32.mrb[76].mxu0 }
0x155b   : > { %3013 = vrot.lane.b32.xlu1 %v2786_v46, %s4603_s16  ;;  %v3761_v47 = vpop.f32.mrb[77].mxu0 }
0x155c   : > { %v2789_v48 = vpop.f32.mrb[78].mxu0 }
0x155d   : > { %v3762_v49 = vpop.f32.mrb[79].mxu0 }
0x157f   : > { %v2896_v51 = vpop.f32.mrb[80].mxu0 }
0x1580   : > { %3017 = vrot.lane.b32.xlu0 %v2896_v51, %s4604_s15  ;;  %v3773_v52 = vpop.f32.mrb[81].mxu0 }
0x1581   : > { %v2899_v53 = vpop.f32.mrb[82].mxu0 }
0x1582   : > { %v3774_v54 = vpop.f32.mrb[83].mxu0 }
0x1587   : > { %v3006_v55 = vpop.f32.mrb[84].mxu0 }
0x1588   : > { %3021 = vrot.lane.b32.xlu1 %v3006_v55, %s4605_s22  ;;  %v3785_v56 = vpop.f32.mrb[85].mxu0 }
0x1589   : > { %v3009_v57 = vpop.f32.mrb[86].mxu0 }
0x158a   : > { %v3786_v58 = vpop.f32.mrb[87].mxu0 }
0x15cd   : > { %v3014_v59 = vpop.permute.xlu1 %3013 }
0x15ce   : > { %v3024_v14 = vsel %vm581_vm2, %v2675_v42, %v3014_v59 }
0x15f2   : > { %v3018_v60 = vpop.permute.xlu0 %3017 }
0x15f3   : > { %v3025_v62 = vsel %vm1035_vm5, %v3024_v14, %v3018_v60 }
0x15fa   : > { %v3022_v11 = vpop.permute.xlu1 %3021 }
0x15fb   : > { %v3026_v63 = vsel %vm1037_vm6, %v3025_v62, %v3022_v11 }
0x15fc   : > { %v3027_v0 = vadd.f32 %v3026_v63, %v4438_v61 }
0x15fe   : > { %v3028_v2 = vpack.c.bf16 %v3027_v0, %v3027_v0 }
0x1600   : > { %3792 = vmatmul.mubr.msk.bf16.vlgmr.msra.gmra.mrb[84].mxu1 %vm474_vm1, %v3028_v2 }
0x16d3   : > { %v3084_v61 = vpop.f32.mrb[84].mxu1 }
0x16d4   : > { %v3085_v7 = vadd.f32 %v3394_v5, %v3084_v61  ;;  %v3793_v8 = vpop.f32.mrb[85].mxu1 }
0x16d5   : > { %v3087_v9 = vpop.f32.mrb[86].mxu1 }
0x16d6   : > { %v3090_v6 = vmax.f32 %v3085_v7, 0.0  ;;  %v3794_v12 = vpop.f32.mrb[87].mxu1 }
0x16d8   : > { %v3091_v15 = vadd.f32 %v3090_v6, %v3027_v0 }
0x16da   : > { %v3092_v13 = vpack.c.bf16 %v3091_v15, %v3091_v15 }
0x16dc   : > { %3094 = vst.msk [vmem:[#allocation2] sm:$0x3] %vm3093_vm9, %v3092_v13 }
0x16e3   : > { %v3095_v17 = vld [vmem:[#allocation2] sm:$0x3] }
0x16e4   : > { %3800 = vmatmul.mubr.msk.bf16.vlgmr.msra.gmra.mrb[88].mxu0 %vm474_vm1, %v3095_v17 }
0x17b7   : > { %v3157_v18 = vpop.f32.mrb[88].mxu0 }
0x17b8   : > { %v3158_v19 = vadd.f32 %v3398_v1, %v3157_v18  ;;  %v3801_v20 = vpop.f32.mrb[89].mxu0 }
0x17b9   : > { %v3160_v21 = vpop.f32.mrb[90].mxu0 }
0x17ba   : > { %v3163_v22 = vpack.c.bf16 %v3158_v19, %v3158_v19  ;;  %v3802_v24 = vpop.f32.mrb[91].mxu0 }
0x17bc   : > { %3164 = vst [vmem:[%s432_s25] sm:$0x3] %v3163_v22 }
0x17bd PF: > { %s21_s19 = sadd.s32 1, %s3951_s19   ;;  %s4611_s17 = smov %s3947_s18 }
0x17be   : > { %p18_p5 = scmp.ge.s32.totalorder %s21_s19, 4   ;;  %s4612_s18 = smov %s4614_s20 }
0x17c0   :  { %20 = sbr.rel (!%p18_p5) target bundleno = 2 (0x2), region = 122 }

</bundles_post_ra>
